<compile_context>
chip_gen: v6e
topology: v6e:2x2x1
jax: 0.10.0
libtpu: 0.0.40
codegen_flags: <defaults>
</compile_context>

<pallas_src>
import jax
import jax.numpy as jnp
from jax.experimental import pallas as pl
from jax.experimental.pallas import tpu as pltpu


def _se_kernel(x_ref, w1_ref, b1_ref, w2_ref, b2_ref, o_ref):
    x = x_ref[...]                                             # [TM, dim_p], native dtype

    # fc1 + ReLU: MXU matmul with f32 accumulation (bf16 inputs stay bf16).
    h = jnp.dot(x, w1_ref[...], preferred_element_type=jnp.float32)
    h = jnp.maximum(h + b1_ref[...].astype(jnp.float32), 0.0)  # [TM, hidden], f32

    # fc2 (output width 1): VPU multiply + cross-lane reduction (XLU), not MXU.
    s = jnp.sum(h * w2_ref[...].astype(jnp.float32), axis=-1, keepdims=True)
    s = jax.nn.sigmoid(s + b2_ref[0])                          # [TM, 1], f32

    # Gate in f32 (matches the reference precision), store in the output dtype.
    o_ref[...] = (x.astype(jnp.float32) * s).astype(o_ref.dtype)


def se_block(x, w1, b1, w2, b2, *, vmem_budget_bytes=24 << 20, max_tm=2048):
    """x: [..., dim]; w1: [hidden, dim]; b1: [hidden]; w2: [1, hidden]; b2: [1]."""
    orig_shape = x.shape
    dim = orig_shape[-1]
    hidden = w1.shape[0]
    x2d = x.reshape(-1, dim)
    m = x2d.shape[0]

    # --- Lane-dense layout: pad the feature dim to a multiple of 128. -------
    dim_p = ((dim + 127) // 128) * 128
    pad = dim_p - dim
    if pad:
        x2d = jnp.pad(x2d, ((0, 0), (0, pad)))

    # --- Glue-only reshapes / casts in plain JAX. ----------------------------
    wdt = x.dtype                                   # bf16 weights when x is bf16
    w1_t = jnp.transpose(w1).astype(wdt)            # [dim, hidden]
    if pad:
        w1_t = jnp.pad(w1_t, ((0, pad), (0, 0)))    # zero rows: pad cols contribute 0
    b1_2d = b1.reshape(1, hidden).astype(wdt)
    w2_row = w2.reshape(1, hidden).astype(wdt)
    b2_1d = b2.reshape(1).astype(jnp.float32)       # scalar, lives in SMEM

    itemsize = jnp.dtype(x.dtype).itemsize
    w_itemsize = jnp.dtype(wdt).itemsize

    # --- Adaptive row tile from the VMEM budget. -----------------------------
    # Pipelined x/out footprint = 2*(in) + 2*(out) = 4 * TM * dim_p * itemsize.
    m8 = ((m + 7) // 8) * 8
    tm = vmem_budget_bytes // (4 * dim_p * itemsize)
    tm = max(8, min(max_tm, m8, (tm // 8) * 8))
    grid = (pl.cdiv(m, tm),)

    # Explicit scoped-VMEM limit: x/out double buffers + single-buffered weights
    # + headroom for internal scratch. Floor at 32 MiB (above v5e's 16 MiB
    # default), cap at 64 MiB (v7x physical VMEM per TC).
    weight_bytes = (dim_p * hidden + 2 * hidden) * w_itemsize
    vmem_limit = 4 * tm * dim_p * itemsize + weight_bytes + (4 << 20)
    vmem_limit = int(min(64 << 20, max(32 << 20, vmem_limit)))

    cost = pl.CostEstimate(
        flops=2 * m * dim * hidden + 3 * m * hidden + 2 * m * dim,
        transcendentals=2 * m,  # sigmoid ~ exp + reciprocal per row
        bytes_accessed=(2 * m * dim * itemsize
                        + (dim * hidden + 2 * hidden) * w_itemsize + 4),
    )

    out = pl.pallas_call(
        _se_kernel,
        out_shape=jax.ShapeDtypeStruct((m, dim_p), x.dtype),
        grid_spec=pltpu.PrefetchScalarGridSpec(
            num_scalar_prefetch=0,
            grid=grid,
            in_specs=[
                # Streamed row tile of x (default double-buffered pipeline).
                pl.BlockSpec((tm, dim_p), lambda i: (i, 0)),
                # Resident operands: constant index_map + single buffer.
                pl.BlockSpec((dim_p, hidden), lambda i: (0, 0),
                             pipeline_mode=pl.Buffered(1)),
                pl.BlockSpec((1, hidden), lambda i: (0, 0),
                             pipeline_mode=pl.Buffered(1)),
                pl.BlockSpec((1, hidden), lambda i: (0, 0),
                             pipeline_mode=pl.Buffered(1)),
                # fc2 bias: scalar in SMEM.
                pl.BlockSpec(memory_space=pltpu.MemorySpace.SMEM),
            ],
            out_specs=pl.BlockSpec((tm, dim_p), lambda i: (i, 0)),
        ),
        compiler_params=pltpu.CompilerParams(
            dimension_semantics=("parallel",),
            vmem_limit_bytes=vmem_limit,
        ),
        cost_estimate=cost,
    )(x2d, w1_t, b1_2d, w2_row, b2_1d)

    if pad:
        out = out[:, :dim]
    return out.reshape(orig_shape)


def _reference(x, w1, b1, w2, b2):
    xf = x.astype(jnp.float32)
    h = jnp.maximum(jnp.dot(xf, w1.T.astype(jnp.float32)) + b1, 0.0)
    s = jax.nn.sigmoid(jnp.dot(h, w2.T) + b2)
    return xf * s


if __name__ == "__main__":
    key = jax.random.PRNGKey(0)
    kx, k1, k2, k3, k4, kx2 = jax.random.split(key, 6)

    # --- Test 1: f32, dim=128 (reduction=16 -> hidden=8), single-tile grid. ---
    B, S, DIM, RED = 4, 256, 128, 16
    HIDDEN = DIM // RED
    x = jax.random.normal(kx, (B, S, DIM), dtype=jnp.float32)
    w1 = jax.random.normal(k1, (HIDDEN, DIM), dtype=jnp.float32) * 0.1
    b1 = jax.random.normal(k2, (HIDDEN,), dtype=jnp.float32) * 0.1
    w2 = jax.random.normal(k3, (1, HIDDEN), dtype=jnp.float32) * 0.1
    b2 = jax.random.normal(k4, (1,), dtype=jnp.float32) * 0.1

    out = jax.block_until_ready(se_block(x, w1, b1, w2, b2))
    ref = _reference(x, w1, b1, w2, b2)
    assert out.shape == x.shape
    assert jnp.allclose(out, ref, atol=1e-5, rtol=1e-5), "f32 mismatch vs reference"

    # --- Test 2: same inputs, forced small TM -> multi-step pipelined grid. ---
    out2 = jax.block_until_ready(se_block(x, w1, b1, w2, b2, max_tm=128))
    assert jnp.allclose(out2, ref, atol=1e-5, rtol=1e-5), "multi-tile mismatch"

    # --- Test 3: bf16 input with dim % 128 != 0 (exercises the pad path). -----
    DIM3, RED3 = 200, 16
    HID3 = DIM3 // RED3
    k5, k6, k7, k8 = jax.random.split(k1, 4)
    x3 = jax.random.normal(kx2, (2, 8, DIM3), dtype=jnp.float32).astype(jnp.bfloat16)
    w1_3 = jax.random.normal(k5, (HID3, DIM3), dtype=jnp.float32) * 0.1
    b1_3 = jax.random.normal(k6, (HID3,), dtype=jnp.float32) * 0.1
    w2_3 = jax.random.normal(k7, (1, HID3), dtype=jnp.float32) * 0.1
    b2_3 = jax.random.normal(k8, (1,), dtype=jnp.float32) * 0.1

    out3 = jax.block_until_ready(se_block(x3, w1_3, b1_3, w2_3, b2_3))
    ref3 = _reference(x3, w1_3, b1_3, w2_3, b2_3)
    assert out3.shape == x3.shape
    assert jnp.allclose(out3.astype(jnp.float32), ref3, atol=5e-2, rtol=5e-2), \
        "bf16/padded-dim mismatch vs reference"

    print("KERNEL_OK")
</pallas_src>

<mosaic_0001>
module attributes {stable_mosaic.version = 11 : i64} {
  func.func @_se_kernel(%arg0: i32, %arg1: memref<1024x128xf32, #tpu.memory_space<vmem>>, %arg2: memref<128x8xf32, #tpu.memory_space<vmem>>, %arg3: memref<1x8xf32, #tpu.memory_space<vmem>>, %arg4: memref<1x8xf32, #tpu.memory_space<vmem>>, %arg5: memref<1xf32, #tpu.memory_space<smem>>, %arg6: memref<1024x128xf32, #tpu.memory_space<vmem>>) attributes {dimension_semantics = [#tpu.dimension_semantics<parallel>], iteration_bounds = array<i64: 1>, scalar_prefetch = 0 : i64, scratch_operands = 0 : i64, tpu.core_type = #tpu.core_type<tc>, window_params = [{transform_indices = @transform_0, window_bounds = array<i64: 1024, 128>}, {pipeline_mode = #tpu.pipeline_mode<synchronous>, transform_indices = @transform_1, window_bounds = array<i64: 128, 8>}, {pipeline_mode = #tpu.pipeline_mode<synchronous>, transform_indices = @transform_2, window_bounds = array<i64: 1, 8>}, {pipeline_mode = #tpu.pipeline_mode<synchronous>, transform_indices = @transform_3, window_bounds = array<i64: 1, 8>}, {transform_indices = @transform_4, window_bounds = array<i64: 1>}, {transform_indices = @transform_5, window_bounds = array<i64: 1024, 128>}]} {
    %c0 = arith.constant 0 : index
    %c0_0 = arith.constant 0 : index
    %0 = vector.load %arg1[%c0, %c0_0] : memref<1024x128xf32, #tpu.memory_space<vmem>>, vector<1024x128xf32>
    %c0_1 = arith.constant 0 : index
    %c0_2 = arith.constant 0 : index
    %1 = vector.load %arg2[%c0_1, %c0_2] : memref<128x8xf32, #tpu.memory_space<vmem>>, vector<128x8xf32>
    %cst = arith.constant dense<0.000000e+00> : vector<1024x8xf32>
    %2 = tpu.matmul %0, %1, %cst {dimension_numbers = #tpu.dot_dimension_numbers<[1], [0], [0], [1], [0, 0, 1, 1], [], []>} : vector<1024x128xf32>, vector<128x8xf32>, vector<1024x8xf32> -> vector<1024x8xf32>
    %c0_3 = arith.constant 0 : index
    %c0_4 = arith.constant 0 : index
    %3 = vector.load %arg3[%c0_3, %c0_4] : memref<1x8xf32, #tpu.memory_space<vmem>>, vector<1x8xf32>
    %4 = vector.broadcast %3 : vector<1x8xf32> to vector<1024x8xf32>
    %5 = arith.addf %2, %4 : vector<1024x8xf32>
    %cst_5 = arith.constant 0.000000e+00 : f32
    %6 = vector.broadcast %cst_5 : f32 to vector<1024x8xf32>
    %7 = arith.maximumf %5, %6 : vector<1024x8xf32>
    %c0_6 = arith.constant 0 : index
    %c0_7 = arith.constant 0 : index
    %8 = vector.load %arg4[%c0_6, %c0_7] : memref<1x8xf32, #tpu.memory_space<vmem>>, vector<1x8xf32>
    %9 = vector.broadcast %8 : vector<1x8xf32> to vector<1024x8xf32>
    %10 = arith.mulf %7, %9 : vector<1024x8xf32>
    %cst_8 = arith.constant dense<0.000000e+00> : vector<1024xf32>
    %11 = vector.multi_reduction <add>, %10, %cst_8 [1] : vector<1024x8xf32> to vector<1024xf32>
    %12 = vector.shape_cast %11 : vector<1024xf32> to vector<1024x1xf32>
    %c0_9 = arith.constant 0 : index
    %13 = memref.load %arg5[%c0_9] : memref<1xf32, #tpu.memory_space<smem>>
    %14 = vector.broadcast %13 : f32 to vector<1024x1xf32>
    %15 = arith.addf %12, %14 : vector<1024x1xf32>
    %16 = arith.negf %15 : vector<1024x1xf32>
    %17 = math.exp %16 : vector<1024x1xf32>
    %cst_10 = arith.constant 1.000000e+00 : f32
    %18 = vector.broadcast %cst_10 : f32 to vector<1024x1xf32>
    %19 = arith.addf %18, %17 : vector<1024x1xf32>
    %20 = arith.divf %18, %19 : vector<1024x1xf32>
    %21 = vector.broadcast %20 : vector<1024x1xf32> to vector<1024x128xf32>
    %22 = arith.mulf %0, %21 : vector<1024x128xf32>
    %c0_11 = arith.constant 0 : index
    %c0_12 = arith.constant 0 : index
    %23 = vector.load %arg6[%c0_11, %c0_12] : memref<1024x128xf32, #tpu.memory_space<vmem>>, vector<1024x128xf32>
    tpu.vector_store %arg6[%c0_11, %c0_12], %22 {strides = array<i32>} : memref<1024x128xf32, #tpu.memory_space<vmem>>, vector<1024x128xf32>,
    return
  }
  func.func @transform_0(%arg0: i32) -> (i32, i32) {
    %c0_i32 = arith.constant 0 : i32
    %c0_i32_0 = arith.constant 0 : i32
    return %arg0, %c0_i32 : i32, i32
  }
  func.func @transform_1(%arg0: i32) -> (i32, i32) {
    %c0_i32 = arith.constant 0 : i32
    %c0_i32_0 = arith.constant 0 : i32
    %c0_i32_1 = arith.constant 0 : i32
    return %c0_i32, %c0_i32_0 : i32, i32
  }
  func.func @transform_2(%arg0: i32) -> (i32, i32) {
    %c0_i32 = arith.constant 0 : i32
    %c0_i32_0 = arith.constant 0 : i32
    %c0_i32_1 = arith.constant 0 : i32
    return %c0_i32, %c0_i32_0 : i32, i32
  }
  func.func @transform_3(%arg0: i32) -> (i32, i32) {
    %c0_i32 = arith.constant 0 : i32
    %c0_i32_0 = arith.constant 0 : i32
    %c0_i32_1 = arith.constant 0 : i32
    return %c0_i32, %c0_i32_0 : i32, i32
  }
  func.func @transform_4(%arg0: i32) -> i32 {
    %c0_i32 = arith.constant 0 : i32
    %c0_i32_0 = arith.constant 0 : i32
    return %c0_i32 : i32
  }
  func.func @transform_5(%arg0: i32) -> (i32, i32) {
    %c0_i32 = arith.constant 0 : i32
    %c0_i32_0 = arith.constant 0 : i32
    return %arg0, %c0_i32 : i32, i32
  }
}

</mosaic_0001>

<bundles_post_ra>
// kernel: tpu_custom_call.1
= control target key start
LH: loop header
LB: loop body
LE: loop exit
PB: predicated region body
PF: predicated region fallthrough
CT: control target
= control target key end

     0   :  { %11 = vsyncpa [#allocation4], 0  ;;  %s4892_s0 = inlined_call_operand.hbm [shape: f32[1024,128], index: 0, kind: input, shape index: {}]   ;;  %s4893_s1 = inlined_call_operand.vmem [shape: f32[128,8], index: 1, kind: input, shape index: {}]   ;;  %s4894_s2 = inlined_call_operand.vmem [shape: f32[1,8], index: 2, kind: input, shape index: {}]   ;;  %s4895_s3 = inlined_call_operand.vmem [shape: f32[1,8], index: 3, kind: input, shape index: {}]   ;;  %s4896_s4 = inlined_call_operand.<no memory space> [shape: f32[1], index: 4, kind: input, shape index: {}]   ;;  %s4897_s5 = inlined_call_operand.hbm [shape: f32[1024,128], index: 5, kind: output, shape index: {}]  }
   0x1   :  { %12 = vsyncpa [#allocation5], 0  ;;  %s3933_s18 = smov [#allocation3]  }
   0x2   :  { %s18_s19 = sshll.u32 %s3933_s18, 4  ;;  %s19_s19 = int_to_ptr.vmem [resolvable:$true] %s18_s19 }
   0x3   :  { %s3897_s20 = scalar_lea.vmem %s19_s19, 16384  ;;  %p3902_p1 = scmp.lt.s32.totalorder %s19_s19, %s19_s19 }
   0x4   :  { %p3898_p0 = scmp.ne.s32.totalorder %s19_s19, %s3897_s20  ;;  %p3903_p2 = scmp.lt.s32.totalorder %s3897_s20, %s3897_s20 }
   0x6   :  { %p3904_p3 = por %p3903_p2, %p3902_p1 }
   0x8   :  { %p3905_p4 = pnand %p3904_p3, %p3898_p0 }
   0xa   :  { %3908 = shalt.err (!%p3905_p4)
}
   0xb   :  { %s3934_s21 = smov 128   ;;  %s3935_s22 = smov 8  }
   0xc   :  { %24 = dma.hbm_to_vmem [thread:$0]  %s4892_s0, 16384, %s19_s19, [#allocation4], %s3934_s21, %s3934_s21, %s3935_s22  }
   0xd   :  { %3929 = dma.done.wait [#allocation4], 16384  }
   0xe   :  { %3930 = vsyncadd [#allocation4], 4294950912  ;;  %v179_v0 = vld [vmem:[%s4893_s1 + $0x78] sm:$0xff]  ;;  %v178_v1 = vld [vmem:[%s4893_s1 + $0x70] sm:$0xff]  ;;  %vm1155_vm0 = vcmask 64512  }
   0xf   :  { %2985 = vmatprep.subr.mxu0 %v179_v0  ;;  %3209 = vmatprep.subr.mxu1 %v179_v0  ;;  %v177_v2 = vld [vmem:[%s4893_s1 + $0x68] sm:$0xff]  ;;  %v176_v3 = vld [vmem:[%s4893_s1 + $0x60] sm:$0xff]  ;;  %v175_v4 = vld [vmem:[%s4893_s1 + $0x58] sm:$0xff] }
  0x10   :  { %2986 = vmatpush3.msra.mxu0 %v179_v0  ;;  %3225 = vmatpush3.msra.mxu1 %v179_v0  ;;  %v174_v5 = vld [vmem:[%s4893_s1 + $0x50] sm:$0xff]  ;;  %v173_v6 = vld [vmem:[%s4893_s1 + $0x48] sm:$0xff]  ;;  %v172_v7 = vld [vmem:[%s4893_s1 + $0x40] sm:$0xff] }
  0x11   :  { %2987 = vmatprep.subr.mxu0 %v178_v1  ;;  %3210 = vmatprep.subr.mxu1 %v178_v1  ;;  %v171_v8 = vld [vmem:[%s4893_s1 + $0x38] sm:$0xff]  ;;  %v170_v9 = vld [vmem:[%s4893_s1 + $0x30] sm:$0xff]  ;;  %v169_v10 = vld [vmem:[%s4893_s1 + $0x28] sm:$0xff] }
  0x12   :  { %2988 = vmatpush3.msra.mxu0 %v178_v1  ;;  %3226 = vmatpush3.msra.mxu1 %v178_v1  ;;  %v168_v11 = vld [vmem:[%s4893_s1 + $0x20] sm:$0xff]  ;;  %v167_v12 = vld [vmem:[%s4893_s1 + $0x18] sm:$0xff]  ;;  %v166_v13 = vld [vmem:[%s4893_s1 + $0x10] sm:$0xff] }
  0x13   :  { %2989 = vmatprep.subr.mxu0 %v177_v2  ;;  %3211 = vmatprep.subr.mxu1 %v177_v2  ;;  %v165_v14 = vld [vmem:[%s4893_s1 + $0x8] sm:$0xff]  ;;  %v164_v15 = vld [vmem:[%s4893_s1] sm:$0xff]  ;;  %v38_v20 = vld [vmem:[#allocation3 + $0x10] sm:$0xff] }
  0x14   :  { %2990 = vmatpush3.msra.mxu0 %v177_v2  ;;  %3227 = vmatpush3.msra.mxu1 %v177_v2  ;;  %v36_v16 = vld [vmem:[#allocation3] sm:$0xff]  ;;  %v37_v18 = vld [vmem:[#allocation3 + $0x8] sm:$0xff]  ;;  %v102_v21 = vld [vmem:[#allocation3 + $0x210] sm:$0xff] }
  0x15   :  { %2991 = vmatprep.subr.mxu0 %v176_v3  ;;  %3212 = vmatprep.subr.mxu1 %v176_v3  ;;  %v100_v17 = vld [vmem:[#allocation3 + $0x200] sm:$0xff]  ;;  %v101_v19 = vld [vmem:[#allocation3 + $0x208] sm:$0xff]  ;;  %v39_v22 = vld [vmem:[#allocation3 + $0x18] sm:$0xff] }
  0x16   :  { %2992 = vmatpush3.msra.mxu0 %v176_v3  ;;  %3228 = vmatpush3.msra.mxu1 %v176_v3  ;;  %v103_v23 = vld [vmem:[#allocation3 + $0x218] sm:$0xff]  ;;  %v40_v24 = vld [vmem:[#allocation3 + $0x20] sm:$0xff]  ;;  %v41_v26 = vld [vmem:[#allocation3 + $0x28] sm:$0xff] }
  0x17   :  { %2993 = vmatprep.subr.mxu0 %v175_v4  ;;  %3213 = vmatprep.subr.mxu1 %v175_v4  ;;  %v104_v25 = vld [vmem:[#allocation3 + $0x220] sm:$0xff]  ;;  %v105_v27 = vld [vmem:[#allocation3 + $0x228] sm:$0xff]  ;;  %v42_v28 = vld [vmem:[#allocation3 + $0x30] sm:$0xff] }
  0x18   :  { %2994 = vmatpush3.msra.mxu0 %v175_v4  ;;  %3229 = vmatpush3.msra.mxu1 %v175_v4  ;;  %v106_v29 = vld [vmem:[#allocation3 + $0x230] sm:$0xff]  ;;  %v43_v30 = vld [vmem:[#allocation3 + $0x38] sm:$0xff]  ;;  %v44_v32 = vld [vmem:[#allocation3 + $0x40] sm:$0xff] }
  0x19   :  { %2995 = vmatprep.subr.mxu0 %v174_v5  ;;  %3214 = vmatprep.subr.mxu1 %v174_v5  ;;  %v107_v31 = vld [vmem:[#allocation3 + $0x238] sm:$0xff]  ;;  %v108_v33 = vld [vmem:[#allocation3 + $0x240] sm:$0xff]  ;;  %v45_v34 = vld [vmem:[#allocation3 + $0x48] sm:$0xff] }
  0x1a   :  { %2996 = vmatpush3.msra.mxu0 %v174_v5  ;;  %3230 = vmatpush3.msra.mxu1 %v174_v5  ;;  %v109_v35 = vld [vmem:[#allocation3 + $0x248] sm:$0xff]  ;;  %v46_v36 = vld [vmem:[#allocation3 + $0x50] sm:$0xff]  ;;  %v47_v38 = vld [vmem:[#allocation3 + $0x58] sm:$0xff] }
  0x1b   :  { %2997 = vmatprep.subr.mxu0 %v173_v6  ;;  %3215 = vmatprep.subr.mxu1 %v173_v6  ;;  %v110_v37 = vld [vmem:[#allocation3 + $0x250] sm:$0xff]  ;;  %v111_v39 = vld [vmem:[#allocation3 + $0x258] sm:$0xff]  ;;  %v48_v40 = vld [vmem:[#allocation3 + $0x60] sm:$0xff] }
  0x1c   :  { %2998 = vmatpush3.msra.mxu0 %v173_v6  ;;  %3231 = vmatpush3.msra.mxu1 %v173_v6  ;;  %v112_v41 = vld [vmem:[#allocation3 + $0x260] sm:$0xff]  ;;  %v49_v42 = vld [vmem:[#allocation3 + $0x68] sm:$0xff]  ;;  %v50_v44 = vld [vmem:[#allocation3 + $0x70] sm:$0xff] }
  0x1d   :  { %2999 = vmatprep.subr.mxu0 %v172_v7  ;;  %3216 = vmatprep.subr.mxu1 %v172_v7  ;;  %v113_v43 = vld [vmem:[#allocation3 + $0x268] sm:$0xff]  ;;  %v114_v45 = vld [vmem:[#allocation3 + $0x270] sm:$0xff]  ;;  %v51_v46 = vld [vmem:[#allocation3 + $0x78] sm:$0xff] }
  0x1e   :  { %3000 = vmatpush3.msra.mxu0 %v172_v7  ;;  %3232 = vmatpush3.msra.mxu1 %v172_v7  ;;  %v115_v47 = vld [vmem:[#allocation3 + $0x278] sm:$0xff]  ;;  %v52_v48 = vld [vmem:[#allocation3 + $0x80] sm:$0xff]  ;;  %v53_v50 = vld [vmem:[#allocation3 + $0x88] sm:$0xff] }
  0x1f   :  { %3001 = vmatprep.subr.mxu0 %v171_v8  ;;  %3217 = vmatprep.subr.mxu1 %v171_v8  ;;  %v116_v49 = vld [vmem:[#allocation3 + $0x280] sm:$0xff]  ;;  %v117_v51 = vld [vmem:[#allocation3 + $0x288] sm:$0xff]  ;;  %v54_v52 = vld [vmem:[#allocation3 + $0x90] sm:$0xff] }
  0x20   :  { %3002 = vmatpush3.msra.mxu0 %v171_v8  ;;  %3233 = vmatpush3.msra.mxu1 %v171_v8  ;;  %v118_v53 = vld [vmem:[#allocation3 + $0x290] sm:$0xff]  ;;  %v55_v54 = vld [vmem:[#allocation3 + $0x98] sm:$0xff]  ;;  %v56_v56 = vld [vmem:[#allocation3 + $0xa0] sm:$0xff] }
  0x21   :  { %3003 = vmatprep.subr.mxu0 %v170_v9  ;;  %3218 = vmatprep.subr.mxu1 %v170_v9  ;;  %v119_v55 = vld [vmem:[#allocation3 + $0x298] sm:$0xff]  ;;  %v120_v57 = vld [vmem:[#allocation3 + $0x2a0] sm:$0xff]  ;;  %v57_v58 = vld [vmem:[#allocation3 + $0xa8] sm:$0xff] }
  0x22   :  { %3004 = vmatpush3.msra.mxu0 %v170_v9  ;;  %3234 = vmatpush3.msra.mxu1 %v170_v9  ;;  %v121_v59 = vld [vmem:[#allocation3 + $0x2a8] sm:$0xff]  ;;  %v58_v60 = vld [vmem:[#allocation3 + $0xb0] sm:$0xff]  ;;  %v59_v62 = vld [vmem:[#allocation3 + $0xb8] sm:$0xff] }
  0x23   :  { %3005 = vmatprep.subr.mxu0 %v169_v10  ;;  %3219 = vmatprep.subr.mxu1 %v169_v10  ;;  %v122_v61 = vld [vmem:[#allocation3 + $0x2b0] sm:$0xff]  ;;  %v123_v63 = vld [vmem:[#allocation3 + $0x2b8] sm:$0xff]  ;;  %v60_v0 = vld [vmem:[#allocation3 + $0xc0] sm:$0xff] }
  0x24   :  { %3006 = vmatpush3.msra.mxu0 %v169_v10  ;;  %3235 = vmatpush3.msra.mxu1 %v169_v10  ;;  %v124_v1 = vld [vmem:[#allocation3 + $0x2c0] sm:$0xff]  ;;  %v61_v2 = vld [vmem:[#allocation3 + $0xc8] sm:$0xff]  ;;  %v62_v4 = vld [vmem:[#allocation3 + $0xd0] sm:$0xff] }
  0x25   :  { %3007 = vmatprep.subr.mxu0 %v168_v11  ;;  %3220 = vmatprep.subr.mxu1 %v168_v11  ;;  %v125_v3 = vld [vmem:[#allocation3 + $0x2c8] sm:$0xff]  ;;  %v126_v5 = vld [vmem:[#allocation3 + $0x2d0] sm:$0xff]  ;;  %v63_v6 = vld [vmem:[#allocation3 + $0xd8] sm:$0xff] }
  0x26   :  { %3008 = vmatpush3.msra.mxu0 %v168_v11  ;;  %3236 = vmatpush3.msra.mxu1 %v168_v11  ;;  %v127_v7 = vld [vmem:[#allocation3 + $0x2d8] sm:$0xff]  ;;  %v64_v8 = vld [vmem:[#allocation3 + $0xe0] sm:$0xff]  ;;  %v65_v10 = vld [vmem:[#allocation3 + $0xe8] sm:$0xff] }
  0x27   :  { %3009 = vmatprep.subr.mxu0 %v167_v12  ;;  %3221 = vmatprep.subr.mxu1 %v167_v12  ;;  %v128_v9 = vld [vmem:[#allocation3 + $0x2e0] sm:$0xff]  ;;  %v129_v11 = vld [vmem:[#allocation3 + $0x2e8] sm:$0xff] }
  0x28   :  { %3010 = vmatpush3.msra.mxu0 %v167_v12  ;;  %3237 = vmatpush3.msra.mxu1 %v167_v12  ;;  %v66_v12 = vld [vmem:[#allocation3 + $0xf0] sm:$0xff] }
  0x29   :  { %3011 = vmatprep.subr.mxu0 %v166_v13  ;;  %3222 = vmatprep.subr.mxu1 %v166_v13 }
  0x2a   :  { %3012 = vmatpush3.msra.mxu0 %v166_v13  ;;  %3238 = vmatpush3.msra.mxu1 %v166_v13  ;;  %v130_v13 = vld [vmem:[#allocation3 + $0x2f0] sm:$0xff] }
  0x2b   :  { %3013 = vmatprep.subr.mxu0 %v165_v14  ;;  %3223 = vmatprep.subr.mxu1 %v165_v14 }
  0x2c   :  { %3014 = vmatpush3.msra.mxu0 %v165_v14  ;;  %3239 = vmatpush3.msra.mxu1 %v165_v14  ;;  %v67_v14 = vld [vmem:[#allocation3 + $0xf8] sm:$0xff] }
  0x2d   :  { %3015 = vmatprep.subr.mxu0 %v164_v15  ;;  %3224 = vmatprep.subr.mxu1 %v164_v15 }
  0x2e   :  { %3016 = vmatpush3.msra.mxu0 %v164_v15  ;;  %3240 = vmatpush3.msra.mxu1 %v164_v15  ;;  %v131_v15 = vld [vmem:[#allocation3 + $0x2f8] sm:$0xff] }
  0x2f   :  { %3017 = vmatprep.mubr.f32.mxu0 %v36_v16  ;;  %3113 = vmatprep.mubr.f32.mxu1 %v100_v17  ;;  %v68_v16 = vld [vmem:[#allocation3 + $0x100] sm:$0xff] }
  0x30   :  { %3018 = vmatmul.mubr.f32.vlgmr.msra.gmra.mxu0 %v37_v18  ;;  %3114 = vmatmul.mubr.f32.vlgmr.msra.gmra.mxu1 %v101_v19  ;;  %v132_v17 = vld [vmem:[#allocation3 + $0x300] sm:$0xff]  ;;  %v69_v18 = vld [vmem:[#allocation3 + $0x108] sm:$0xff] }
  0x31   :  { %3020 = vmatprep.mubr.f32.mxu0 %v38_v20  ;;  %3116 = vmatprep.mubr.f32.mxu1 %v102_v21  ;;  %v133_v19 = vld [vmem:[#allocation3 + $0x308] sm:$0xff]  ;;  %v70_v20 = vld [vmem:[#allocation3 + $0x110] sm:$0xff] }
  0x32   :  { %v134_v21 = vld [vmem:[#allocation3 + $0x310] sm:$0xff] }
  0x34   :  { %3021 = vmatmul.mubr.f32.gmra.mxu0 %v39_v22  ;;  %3117 = vmatmul.mubr.f32.gmra.mxu1 %v103_v23  ;;  %v71_v22 = vld [vmem:[#allocation3 + $0x118] sm:$0xff] }
  0x35   :  { %3023 = vmatprep.mubr.f32.mxu0 %v40_v24  ;;  %3119 = vmatprep.mubr.f32.mxu1 %v104_v25  ;;  %v135_v23 = vld [vmem:[#allocation3 + $0x318] sm:$0xff]  ;;  %v72_v24 = vld [vmem:[#allocation3 + $0x120] sm:$0xff] }
  0x36   :  { %v136_v25 = vld [vmem:[#allocation3 + $0x320] sm:$0xff] }
  0x38   :  { %3024 = vmatmul.mubr.f32.gmra.mxu0 %v41_v26  ;;  %3120 = vmatmul.mubr.f32.gmra.mxu1 %v105_v27  ;;  %v73_v26 = vld [vmem:[#allocation3 + $0x128] sm:$0xff] }
  0x39   :  { %3026 = vmatprep.mubr.f32.mxu0 %v42_v28  ;;  %3122 = vmatprep.mubr.f32.mxu1 %v106_v29  ;;  %v137_v27 = vld [vmem:[#allocation3 + $0x328] sm:$0xff]  ;;  %v74_v28 = vld [vmem:[#allocation3 + $0x130] sm:$0xff] }
  0x3a   :  { %v138_v29 = vld [vmem:[#allocation3 + $0x330] sm:$0xff] }
  0x3c   :  { %3027 = vmatmul.mubr.f32.gmra.mxu0 %v43_v30  ;;  %3123 = vmatmul.mubr.f32.gmra.mxu1 %v107_v31  ;;  %v75_v30 = vld [vmem:[#allocation3 + $0x138] sm:$0xff] }
  0x3d   :  { %3029 = vmatprep.mubr.f32.mxu0 %v44_v32  ;;  %3125 = vmatprep.mubr.f32.mxu1 %v108_v33  ;;  %v139_v31 = vld [vmem:[#allocation3 + $0x338] sm:$0xff]  ;;  %v76_v32 = vld [vmem:[#allocation3 + $0x140] sm:$0xff] }
  0x3e   :  { %v140_v33 = vld [vmem:[#allocation3 + $0x340] sm:$0xff] }
  0x40   :  { %3030 = vmatmul.mubr.f32.gmra.mxu0 %v45_v34  ;;  %3126 = vmatmul.mubr.f32.gmra.mxu1 %v109_v35  ;;  %v77_v34 = vld [vmem:[#allocation3 + $0x148] sm:$0xff] }
  0x41   :  { %3032 = vmatprep.mubr.f32.mxu0 %v46_v36  ;;  %3128 = vmatprep.mubr.f32.mxu1 %v110_v37  ;;  %v141_v35 = vld [vmem:[#allocation3 + $0x348] sm:$0xff]  ;;  %v78_v36 = vld [vmem:[#allocation3 + $0x150] sm:$0xff] }
  0x42   :  { %v142_v37 = vld [vmem:[#allocation3 + $0x350] sm:$0xff] }
  0x44   :  { %3033 = vmatmul.mubr.f32.gmra.mxu0 %v47_v38  ;;  %3129 = vmatmul.mubr.f32.gmra.mxu1 %v111_v39  ;;  %v79_v38 = vld [vmem:[#allocation3 + $0x158] sm:$0xff] }
  0x45   :  { %3035 = vmatprep.mubr.f32.mxu0 %v48_v40  ;;  %3131 = vmatprep.mubr.f32.mxu1 %v112_v41  ;;  %v143_v39 = vld [vmem:[#allocation3 + $0x358] sm:$0xff]  ;;  %v80_v40 = vld [vmem:[#allocation3 + $0x160] sm:$0xff] }
  0x46   :  { %v144_v41 = vld [vmem:[#allocation3 + $0x360] sm:$0xff] }
  0x48   :  { %3036 = vmatmul.mubr.f32.gmra.mxu0 %v49_v42  ;;  %3132 = vmatmul.mubr.f32.gmra.mxu1 %v113_v43  ;;  %v81_v42 = vld [vmem:[#allocation3 + $0x168] sm:$0xff] }
  0x49   :  { %3038 = vmatprep.mubr.f32.mxu0 %v50_v44  ;;  %3134 = vmatprep.mubr.f32.mxu1 %v114_v45  ;;  %v145_v43 = vld [vmem:[#allocation3 + $0x368] sm:$0xff]  ;;  %v82_v44 = vld [vmem:[#allocation3 + $0x170] sm:$0xff] }
  0x4a   :  { %v146_v45 = vld [vmem:[#allocation3 + $0x370] sm:$0xff] }
  0x4c   :  { %3039 = vmatmul.mubr.f32.gmra.mxu0 %v51_v46  ;;  %3135 = vmatmul.mubr.f32.gmra.mxu1 %v115_v47  ;;  %v83_v46 = vld [vmem:[#allocation3 + $0x178] sm:$0xff] }
  0x4d   :  { %3041 = vmatprep.mubr.f32.mxu0 %v52_v48  ;;  %3137 = vmatprep.mubr.f32.mxu1 %v116_v49  ;;  %v147_v47 = vld [vmem:[#allocation3 + $0x378] sm:$0xff]  ;;  %v84_v48 = vld [vmem:[#allocation3 + $0x180] sm:$0xff] }
  0x4e   :  { %v148_v49 = vld [vmem:[#allocation3 + $0x380] sm:$0xff] }
  0x50   :  { %3042 = vmatmul.mubr.f32.gmra.mxu0 %v53_v50  ;;  %3138 = vmatmul.mubr.f32.gmra.mxu1 %v117_v51  ;;  %v85_v50 = vld [vmem:[#allocation3 + $0x188] sm:$0xff] }
  0x51   :  { %3044 = vmatprep.mubr.f32.mxu0 %v54_v52  ;;  %3140 = vmatprep.mubr.f32.mxu1 %v118_v53  ;;  %v149_v51 = vld [vmem:[#allocation3 + $0x388] sm:$0xff]  ;;  %v86_v52 = vld [vmem:[#allocation3 + $0x190] sm:$0xff] }
  0x52   :  { %v150_v53 = vld [vmem:[#allocation3 + $0x390] sm:$0xff] }
  0x54   :  { %3045 = vmatmul.mubr.f32.gmra.mxu0 %v55_v54  ;;  %3141 = vmatmul.mubr.f32.gmra.mxu1 %v119_v55  ;;  %v87_v54 = vld [vmem:[#allocation3 + $0x198] sm:$0xff] }
  0x55   :  { %3047 = vmatprep.mubr.f32.mxu0 %v56_v56  ;;  %3143 = vmatprep.mubr.f32.mxu1 %v120_v57  ;;  %v151_v55 = vld [vmem:[#allocation3 + $0x398] sm:$0xff]  ;;  %v88_v56 = vld [vmem:[#allocation3 + $0x1a0] sm:$0xff] }
  0x56   :  { %v152_v57 = vld [vmem:[#allocation3 + $0x3a0] sm:$0xff] }
  0x58   :  { %3048 = vmatmul.mubr.f32.gmra.mxu0 %v57_v58  ;;  %3144 = vmatmul.mubr.f32.gmra.mxu1 %v121_v59  ;;  %v89_v58 = vld [vmem:[#allocation3 + $0x1a8] sm:$0xff] }
  0x59   :  { %3050 = vmatprep.mubr.f32.mxu0 %v58_v60  ;;  %3146 = vmatprep.mubr.f32.mxu1 %v122_v61  ;;  %v153_v59 = vld [vmem:[#allocation3 + $0x3a8] sm:$0xff]  ;;  %v90_v60 = vld [vmem:[#allocation3 + $0x1b0] sm:$0xff] }
  0x5a   :  { %v154_v61 = vld [vmem:[#allocation3 + $0x3b0] sm:$0xff] }
  0x5c   :  { %3051 = vmatmul.mubr.f32.gmra.mxu0 %v59_v62  ;;  %3147 = vmatmul.mubr.f32.gmra.mxu1 %v123_v63  ;;  %v91_v62 = vld [vmem:[#allocation3 + $0x1b8] sm:$0xff] }
  0x5d   :  { %3053 = vmatprep.mubr.f32.mxu0 %v60_v0  ;;  %3149 = vmatprep.mubr.f32.mxu1 %v124_v1  ;;  %v155_v63 = vld [vmem:[#allocation3 + $0x3b8] sm:$0xff]  ;;  %v92_v0 = vld [vmem:[#allocation3 + $0x1c0] sm:$0xff] }
  0x5e   :  { %v156_v1 = vld [vmem:[#allocation3 + $0x3c0] sm:$0xff] }
  0x60   :  { %3054 = vmatmul.mubr.f32.gmra.mxu0 %v61_v2  ;;  %3150 = vmatmul.mubr.f32.gmra.mxu1 %v125_v3  ;;  %v93_v2 = vld [vmem:[#allocation3 + $0x1c8] sm:$0xff] }
  0x61   :  { %3056 = vmatprep.mubr.f32.mxu0 %v62_v4  ;;  %3152 = vmatprep.mubr.f32.mxu1 %v126_v5  ;;  %v157_v3 = vld [vmem:[#allocation3 + $0x3c8] sm:$0xff]  ;;  %v94_v4 = vld [vmem:[#allocation3 + $0x1d0] sm:$0xff] }
  0x62   :  { %v158_v5 = vld [vmem:[#allocation3 + $0x3d0] sm:$0xff] }
  0x64   :  { %3057 = vmatmul.mubr.f32.gmra.mxu0 %v63_v6  ;;  %3153 = vmatmul.mubr.f32.gmra.mxu1 %v127_v7  ;;  %v95_v6 = vld [vmem:[#allocation3 + $0x1d8] sm:$0xff] }
  0x65   :  { %3059 = vmatprep.mubr.f32.mxu0 %v64_v8  ;;  %3155 = vmatprep.mubr.f32.mxu1 %v128_v9  ;;  %v159_v7 = vld [vmem:[#allocation3 + $0x3d8] sm:$0xff]  ;;  %v96_v8 = vld [vmem:[#allocation3 + $0x1e0] sm:$0xff] }
  0x66   :  { %v160_v9 = vld [vmem:[#allocation3 + $0x3e0] sm:$0xff] }
  0x68   :  { %3060 = vmatmul.mubr.f32.gmra.mxu0 %v65_v10  ;;  %3156 = vmatmul.mubr.f32.gmra.mxu1 %v129_v11  ;;  %v97_v10 = vld [vmem:[#allocation3 + $0x1e8] sm:$0xff] }
  0x69   :  { %3062 = vmatprep.mubr.f32.mxu0 %v66_v12  ;;  %3158 = vmatprep.mubr.f32.mxu1 %v130_v13  ;;  %v161_v11 = vld [vmem:[#allocation3 + $0x3e8] sm:$0xff]  ;;  %v98_v12 = vld [vmem:[#allocation3 + $0x1f0] sm:$0xff] }
  0x6a   :  { %v162_v13 = vld [vmem:[#allocation3 + $0x3f0] sm:$0xff] }
  0x6c   :  { %3063 = vmatmul.mubr.f32.gmra.mxu0 %v67_v14  ;;  %3159 = vmatmul.mubr.f32.gmra.mxu1 %v131_v15  ;;  %v99_v14 = vld [vmem:[#allocation3 + $0x1f8] sm:$0xff] }
  0x6d   :  { %3065 = vmatprep.mubr.f32.mxu0 %v68_v16  ;;  %3161 = vmatprep.mubr.f32.mxu1 %v132_v17  ;;  %v163_v15 = vld [vmem:[#allocation3 + $0x3f8] sm:$0xff]  ;;  %v4024_v16 = vld [vmem:[%s4894_s2] ss:$0 sm:$0xff] }
  0x70   :  { %3066 = vmatmul.mubr.f32.gmra.mxu0 %v69_v18  ;;  %3162 = vmatmul.mubr.f32.gmra.mxu1 %v133_v19 }
  0x71   :  { %3068 = vmatprep.mubr.f32.mxu0 %v70_v20  ;;  %3164 = vmatprep.mubr.f32.mxu1 %v134_v21 }
  0x74   :  { %3069 = vmatmul.mubr.f32.gmra.mxu0 %v71_v22  ;;  %3165 = vmatmul.mubr.f32.gmra.mxu1 %v135_v23 }
  0x75   :  { %3071 = vmatprep.mubr.f32.mxu0 %v72_v24  ;;  %3167 = vmatprep.mubr.f32.mxu1 %v136_v25 }
  0x78   :  { %3072 = vmatmul.mubr.f32.gmra.mxu0 %v73_v26  ;;  %3168 = vmatmul.mubr.f32.gmra.mxu1 %v137_v27  ;;  %v4033_v27 = vld [vmem:[%s4895_s3] ss:$0 sm:$0xff] }
  0x79   :  { %3074 = vmatprep.mubr.f32.mxu0 %v74_v28  ;;  %3170 = vmatprep.mubr.f32.mxu1 %v138_v29 }
  0x7c   :  { %3075 = vmatmul.mubr.f32.gmra.mxu0 %v75_v30  ;;  %3171 = vmatmul.mubr.f32.gmra.mxu1 %v139_v31 }
  0x7d   :  { %3077 = vmatprep.mubr.f32.mxu0 %v76_v32  ;;  %3173 = vmatprep.mubr.f32.mxu1 %v140_v33 }
  0x80   :  { %3078 = vmatmul.mubr.f32.gmra.mxu0 %v77_v34  ;;  %3174 = vmatmul.mubr.f32.gmra.mxu1 %v141_v35 }
  0x81   :  { %3080 = vmatprep.mubr.f32.mxu0 %v78_v36  ;;  %3176 = vmatprep.mubr.f32.mxu1 %v142_v37 }
  0x84   :  { %3081 = vmatmul.mubr.f32.gmra.mxu0 %v79_v38  ;;  %3177 = vmatmul.mubr.f32.gmra.mxu1 %v143_v39 }
  0x85   :  { %3083 = vmatprep.mubr.f32.mxu0 %v80_v40  ;;  %3179 = vmatprep.mubr.f32.mxu1 %v144_v41 }
  0x88   :  { %3084 = vmatmul.mubr.f32.gmra.mxu0 %v81_v42  ;;  %3180 = vmatmul.mubr.f32.gmra.mxu1 %v145_v43 }
  0x89   :  { %3086 = vmatprep.mubr.f32.mxu0 %v82_v44  ;;  %3182 = vmatprep.mubr.f32.mxu1 %v146_v45 }
  0x8c   :  { %3087 = vmatmul.mubr.f32.gmra.mxu0 %v83_v46  ;;  %3183 = vmatmul.mubr.f32.gmra.mxu1 %v147_v47 }
  0x8d   :  { %3089 = vmatprep.mubr.f32.mxu0 %v84_v48  ;;  %3185 = vmatprep.mubr.f32.mxu1 %v148_v49 }
  0x90   :  { %3090 = vmatmul.mubr.f32.gmra.mxu0 %v85_v50  ;;  %3186 = vmatmul.mubr.f32.gmra.mxu1 %v149_v51 }
  0x91   :  { %3092 = vmatprep.mubr.f32.mxu0 %v86_v52  ;;  %3188 = vmatprep.mubr.f32.mxu1 %v150_v53 }
  0x94   :  { %3093 = vmatmul.mubr.f32.gmra.mxu0 %v87_v54  ;;  %3189 = vmatmul.mubr.f32.gmra.mxu1 %v151_v55 }
  0x95   :  { %3095 = vmatprep.mubr.f32.mxu0 %v88_v56  ;;  %3191 = vmatprep.mubr.f32.mxu1 %v152_v57 }
  0x98   :  { %3096 = vmatmul.mubr.f32.gmra.mxu0 %v89_v58  ;;  %3192 = vmatmul.mubr.f32.gmra.mxu1 %v153_v59 }
  0x99   :  { %3098 = vmatprep.mubr.f32.mxu0 %v90_v60  ;;  %3194 = vmatprep.mubr.f32.mxu1 %v154_v61 }
  0x9c   :  { %3099 = vmatmul.mubr.f32.gmra.mxu0 %v91_v62  ;;  %3195 = vmatmul.mubr.f32.gmra.mxu1 %v155_v63 }
  0x9d   :  { %3101 = vmatprep.mubr.f32.mxu0 %v92_v0  ;;  %3197 = vmatprep.mubr.f32.mxu1 %v156_v1 }
  0xa0   :  { %3102 = vmatmul.mubr.f32.gmra.mxu0 %v93_v2  ;;  %3198 = vmatmul.mubr.f32.gmra.mxu1 %v157_v3 }
  0xa1   :  { %3104 = vmatprep.mubr.f32.mxu0 %v94_v4  ;;  %3200 = vmatprep.mubr.f32.mxu1 %v158_v5 }
  0xa4   :  { %3105 = vmatmul.mubr.f32.gmra.mxu0 %v95_v6  ;;  %3201 = vmatmul.mubr.f32.gmra.mxu1 %v159_v7 }
  0xa5   :  { %3107 = vmatprep.mubr.f32.mxu0 %v96_v8  ;;  %3203 = vmatprep.mubr.f32.mxu1 %v160_v9 }
  0xa8   :  { %3108 = vmatmul.mubr.f32.gmra.mxu0 %v97_v10  ;;  %3204 = vmatmul.mubr.f32.gmra.mxu1 %v161_v11 }
  0xa9   :  { %3110 = vmatprep.mubr.f32.mxu0 %v98_v12  ;;  %3206 = vmatprep.mubr.f32.mxu1 %v162_v13 }
  0xac   :  { %3111 = vmatmul.mubr.f32.gmra.mxu0 %v99_v14  ;;  %3207 = vmatmul.mubr.f32.gmra.mxu1 %v163_v15 }
  0xf0   :  { %v3019_v17 = vpop.f32.mrf.mxu0  ;;  %v3115_v18 = vpop.f32.mrf.mxu1 }
  0xf1   :  { %v259_v19 = vadd.f32 %v3019_v17, %v4024_v16  ;;  %v579_v20 = vadd.f32 %v3115_v18, %v4024_v16 }
  0xf2   :  { %v253_v21 = vpop.f32.mrf.mxu0  ;;  %v573_v22 = vpop.f32.mrf.mxu1 }
  0xf3   :  { %v893_v23 = vmax.f32 %v259_v19, 0.0  ;;  %v957_v24 = vmax.f32 %v579_v20, 0.0  ;;  %v254_v25 = vadd.f32 %v4024_v16, %v253_v21  ;;  %v574_v26 = vadd.f32 %v4024_v16, %v573_v22 }
  0xf4   :  { %v3022_v28 = vpop.f32.mrf.mxu0  ;;  %v3118_v29 = vpop.f32.mrf.mxu1 }
  0xf5   :  { %v892_v30 = vmax.f32 %v254_v25, 0.0  ;;  %v269_v31 = vadd.f32 %v3022_v28, %v4024_v16  ;;  %v589_v32 = vadd.f32 %v3118_v29, %v4024_v16  ;;  %v1092_v34 = vmul.f32 %v4033_v27, %v957_v24 }
  0xf6   :  { %v263_v33 = vpop.f32.mrf.mxu0  ;;  %v583_v35 = vpop.f32.mrf.mxu1  ;;  %v1028_v36 = vmul.f32 %v4033_v27, %v893_v23  ;;  %v956_v37 = vmax.f32 %v574_v26, 0.0 }
  0xf7   :  { %v895_v38 = vmax.f32 %v269_v31, 0.0  ;;  %v264_v39 = vadd.f32 %v4024_v16, %v263_v33  ;;  %v959_v40 = vmax.f32 %v589_v32, 0.0  ;;  %v1351_v41 = vsel %vm1155_vm0, %v1092_v34, 0.0 }
  0xf8   :  { %v584_v42 = vadd.f32 %v4024_v16, %v583_v35  ;;  %v1159_v43 = vsel %vm1155_vm0, %v1028_v36, 0.0  ;;  %v3025_v44 = vpop.f32.mrf.mxu0  ;;  %v1027_v45 = vmul.f32 %v4033_v27, %v892_v30  ;;  %v3121_v46 = vpop.f32.mrf.mxu1  ;;  %1352 = vadd.xlane.f32.xlu1 %v1351_v41  ;;  %v1091_v52 = vmul.f32 %v4033_v27, %v956_v37 }
  0xf9   :  { %1160 = vadd.xlane.f32.xlu0 %v1159_v43  ;;  %v1030_v47 = vmul.f32 %v4033_v27, %v895_v38  ;;  %v1094_v49 = vmul.f32 %v4033_v27, %v959_v40  ;;  %v279_v51 = vadd.f32 %v3025_v44, %v4024_v16  ;;  %v894_v53 = vmax.f32 %v264_v39, 0.0 }
  0xfa   :  { %v273_v48 = vpop.f32.mrf.mxu0  ;;  %v958_v54 = vmax.f32 %v584_v42, 0.0  ;;  %v1156_v55 = vsel %vm1155_vm0, %v1027_v45, 0.0  ;;  %v593_v57 = vpop.f32.mrf.mxu1  ;;  %v599_v61 = vadd.f32 %v3121_v46, %v4024_v16  ;;  %v1348_v0 = vsel %vm1155_vm0, %v1091_v52, 0.0 }
  0xfb   :  { %v1165_v50 = vsel %vm1155_vm0, %v1030_v47, 0.0  ;;  %v274_v56 = vadd.f32 %v4024_v16, %v273_v48  ;;  %v1357_v59 = vsel %vm1155_vm0, %v1094_v49, 0.0  ;;  %v897_v60 = vmax.f32 %v279_v51, 0.0 }
  0xfc   :  { %1166 = vadd.xlane.f32.xlu1 %v1165_v50  ;;  %v3028_v58 = vpop.f32.mrf.mxu0  ;;  %v594_v62 = vadd.f32 %v4024_v16, %v593_v57  ;;  %v1029_v1 = vmul.f32 %v4033_v27, %v894_v53  ;;  %v1093_v2 = vmul.f32 %v4033_v27, %v958_v54  ;;  %v3124_v4 = vpop.f32.mrf.mxu1  ;;  %v961_v5 = vmax.f32 %v599_v61, 0.0 }
  0xfd   :  { %1157 = vadd.xlane.f32.xlu0 %v1156_v55  ;;  %v896_v63 = vmax.f32 %v274_v56, 0.0  ;;  %v289_v7 = vadd.f32 %v3028_v58, %v4024_v16  ;;  %v1032_v8 = vmul.f32 %v4033_v27, %v897_v60  ;;  %v609_v17 = vadd.f32 %v3124_v4, %v4024_v16 }
  0xfe   :  { %v283_v3 = vpop.f32.mrf.mxu0  ;;  %v960_v6 = vmax.f32 %v594_v62, 0.0  ;;  %v1162_v9 = vsel %vm1155_vm0, %v1029_v1, 0.0  ;;  %v1354_v10 = vsel %vm1155_vm0, %v1093_v2, 0.0  ;;  %v603_v13 = vpop.f32.mrf.mxu1  ;;  %v1096_v19 = vmul.f32 %v4033_v27, %v961_v5 }
  0xff   :  { %v284_v11 = vadd.f32 %v4024_v16, %v283_v3  ;;  %v1031_v12 = vmul.f32 %v4033_v27, %v896_v63  ;;  %v899_v15 = vmax.f32 %v289_v7, 0.0  ;;  %v1171_v18 = vsel %vm1155_vm0, %v1032_v8, 0.0 }
 0x100   :  { %1358 = vadd.xlane.f32.xlu1 %v1357_v59  ;;  %v3031_v14 = vpop.f32.mrf.mxu0  ;;  %v604_v22 = vadd.f32 %v4024_v16, %v603_v13  ;;  %v1095_v23 = vmul.f32 %v4033_v27, %v960_v6  ;;  %v3127_v25 = vpop.f32.mrf.mxu1  ;;  %v963_v26 = vmax.f32 %v609_v17, 0.0  ;;  %v1363_v29 = vsel %vm1155_vm0, %v1096_v19, 0.0 }
 0x101   :  { %1349 = vadd.xlane.f32.xlu0 %v1348_v0  ;;  %v898_v20 = vmax.f32 %v284_v11, 0.0  ;;  %v1168_v21 = vsel %vm1155_vm0, %v1031_v12, 0.0  ;;  %v299_v28 = vadd.f32 %v3031_v14, %v4024_v16  ;;  %v1034_v30 = vmul.f32 %v4033_v27, %v899_v15 }
 0x102   :  { %v293_v24 = vpop.f32.mrf.mxu0  ;;  %v962_v31 = vmax.f32 %v604_v22, 0.0  ;;  %v1360_v32 = vsel %vm1155_vm0, %v1095_v23, 0.0  ;;  %v613_v35 = vpop.f32.mrf.mxu1  ;;  %v619_v38 = vadd.f32 %v3127_v25, %v4024_v16  ;;  %v1098_v40 = vmul.f32 %v4033_v27, %v963_v26 }
 0x103   :  { %v294_v33 = vadd.f32 %v4024_v16, %v293_v24  ;;  %v1033_v34 = vmul.f32 %v4033_v27, %v898_v20  ;;  %v901_v37 = vmax.f32 %v299_v28, 0.0  ;;  %v1177_v39 = vsel %vm1155_vm0, %v1034_v30, 0.0 }
 0x104   :  { %1163 = vadd.xlane.f32.xlu1 %v1162_v9  ;;  %v3034_v36 = vpop.f32.mrf.mxu0  ;;  %v614_v43 = vadd.f32 %v4024_v16, %v613_v35  ;;  %v1097_v44 = vmul.f32 %v4033_v27, %v962_v31  ;;  %v3130_v45 = vpop.f32.mrf.mxu1  ;;  %v965_v47 = vmax.f32 %v619_v38, 0.0  ;;  %v1369_v49 = vsel %vm1155_vm0, %v1098_v40, 0.0 }
 0x105   :  { %1355 = vadd.xlane.f32.xlu0 %v1354_v10  ;;  %v900_v41 = vmax.f32 %v294_v33, 0.0  ;;  %v1174_v42 = vsel %vm1155_vm0, %v1033_v34, 0.0  ;;  %v309_v48 = vadd.f32 %v3034_v36, %v4024_v16  ;;  %v1036_v50 = vmul.f32 %v4033_v27, %v901_v37 }
 0x106   :  { %v303_v46 = vpop.f32.mrf.mxu0  ;;  %v964_v51 = vmax.f32 %v614_v43, 0.0  ;;  %v1366_v52 = vsel %vm1155_vm0, %v1097_v44, 0.0  ;;  %v623_v55 = vpop.f32.mrf.mxu1  ;;  %v629_v59 = vadd.f32 %v3130_v45, %v4024_v16  ;;  %v1100_v61 = vmul.f32 %v4033_v27, %v965_v47 }
 0x107   :  { %v304_v53 = vadd.f32 %v4024_v16, %v303_v46  ;;  %v1035_v54 = vmul.f32 %v4033_v27, %v900_v41  ;;  %v903_v58 = vmax.f32 %v309_v48, 0.0  ;;  %v1183_v60 = vsel %vm1155_vm0, %v1036_v50, 0.0 }
 0x108   :  { %1172 = vadd.xlane.f32.xlu1 %v1171_v18  ;;  %v3037_v56 = vpop.f32.mrf.mxu0  ;;  %v3133_v57 = vpop.f32.mrf.mxu1  ;;  %v624_v0 = vadd.f32 %v4024_v16, %v623_v55  ;;  %v1099_v1 = vmul.f32 %v4033_v27, %v964_v51  ;;  %v967_v5 = vmax.f32 %v629_v59, 0.0  ;;  %v1375_v7 = vsel %vm1155_vm0, %v1100_v61, 0.0 }
 0x109   :  { %1169 = vadd.xlane.f32.xlu0 %v1168_v21  ;;  %v902_v62 = vmax.f32 %v304_v53, 0.0  ;;  %v1180_v63 = vsel %vm1155_vm0, %v1035_v54, 0.0  ;;  %v319_v6 = vadd.f32 %v3037_v56, %v4024_v16  ;;  %v1038_v8 = vmul.f32 %v4033_v27, %v903_v58 }
 0x10a   :  { %v313_v2 = vpop.f32.mrf.mxu0  ;;  %v633_v3 = vpop.f32.mrf.mxu1  ;;  %v966_v9 = vmax.f32 %v624_v0, 0.0  ;;  %v1372_v10 = vsel %vm1155_vm0, %v1099_v1, 0.0  ;;  %v639_v17 = vadd.f32 %v3133_v57, %v4024_v16  ;;  %v1102_v19 = vmul.f32 %v4033_v27, %v967_v5 }
 0x10b   :  { %v314_v11 = vadd.f32 %v4024_v16, %v313_v2  ;;  %v1037_v12 = vmul.f32 %v4033_v27, %v902_v62  ;;  %v905_v15 = vmax.f32 %v319_v6, 0.0  ;;  %v1189_v18 = vsel %vm1155_vm0, %v1038_v8, 0.0 }
 0x10c   :  { %1364 = vadd.xlane.f32.xlu1 %v1363_v29  ;;  %v3040_v4 = vpop.f32.mrf.mxu0  ;;  %v3136_v13 = vpop.f32.mrf.mxu1  ;;  %v634_v22 = vadd.f32 %v4024_v16, %v633_v3  ;;  %v1101_v23 = vmul.f32 %v4033_v27, %v966_v9  ;;  %v969_v28 = vmax.f32 %v639_v17, 0.0  ;;  %v1381_v30 = vsel %vm1155_vm0, %v1102_v19, 0.0 }
 0x10d   :  { %1361 = vadd.xlane.f32.xlu0 %v1360_v32  ;;  %v904_v20 = vmax.f32 %v314_v11, 0.0  ;;  %v1186_v21 = vsel %vm1155_vm0, %v1037_v12, 0.0  ;;  %v329_v29 = vadd.f32 %v3040_v4, %v4024_v16  ;;  %v1040_v31 = vmul.f32 %v4033_v27, %v905_v15 }
 0x10e   :  { %v323_v14 = vpop.f32.mrf.mxu0  ;;  %v643_v24 = vpop.f32.mrf.mxu1  ;;  %v968_v32 = vmax.f32 %v634_v22, 0.0  ;;  %v1378_v33 = vsel %vm1155_vm0, %v1101_v23, 0.0  ;;  %v649_v40 = vadd.f32 %v3136_v13, %v4024_v16 }
 0x10f   :  { %v324_v34 = vadd.f32 %v4024_v16, %v323_v14  ;;  %v1039_v35 = vmul.f32 %v4033_v27, %v904_v20  ;;  %v1195_v41 = vsel %vm1155_vm0, %v1040_v31, 0.0  ;;  %v644_v45 = vadd.f32 %v4024_v16, %v643_v24 }
 0x110   :  { %1178 = vadd.xlane.f32.xlu1 %v1177_v39  ;;  %v3043_v25 = vpop.f32.mrf.mxu0  ;;  %v3139_v26 = vpop.f32.mrf.mxu1  ;;  %v907_v39 = vmax.f32 %v329_v29, 0.0  ;;  %v1103_v46 = vmul.f32 %v4033_v27, %v968_v32 }
 0x111   :  { %1175 = vadd.xlane.f32.xlu0 %v1174_v42  ;;  %v1104_v42 = vmul.f32 %v4033_v27, %v969_v28  ;;  %v906_v43 = vmax.f32 %v324_v34, 0.0  ;;  %v1192_v44 = vsel %vm1155_vm0, %v1039_v35, 0.0  ;;  %v339_v50 = vadd.f32 %v3043_v25, %v4024_v16 }
 0x112   :  { %v333_v36 = vpop.f32.mrf.mxu0  ;;  %v653_v37 = vpop.f32.mrf.mxu1  ;;  %v970_v53 = vmax.f32 %v644_v45, 0.0  ;;  %v1384_v54 = vsel %vm1155_vm0, %v1103_v46, 0.0  ;;  %v659_v61 = vadd.f32 %v3139_v26, %v4024_v16 }
 0x113   :  { %v1387_v51 = vsel %vm1155_vm0, %v1104_v42, 0.0  ;;  %v334_v55 = vadd.f32 %v4024_v16, %v333_v36  ;;  %v1041_v56 = vmul.f32 %v4033_v27, %v906_v43  ;;  %v654_v2 = vadd.f32 %v4024_v16, %v653_v37 }
 0x114   :  { %1370 = vadd.xlane.f32.xlu1 %v1369_v49  ;;  %v3046_v38 = vpop.f32.mrf.mxu0  ;;  %v3142_v47 = vpop.f32.mrf.mxu1  ;;  %v971_v49 = vmax.f32 %v649_v40, 0.0  ;;  %v1105_v3 = vmul.f32 %v4033_v27, %v970_v53 }
 0x115   :  { %1367 = vadd.xlane.f32.xlu0 %v1366_v52  ;;  %v1042_v52 = vmul.f32 %v4033_v27, %v907_v39  ;;  %v908_v0 = vmax.f32 %v334_v55, 0.0  ;;  %v1198_v1 = vsel %vm1155_vm0, %v1041_v56, 0.0  ;;  %v349_v8 = vadd.f32 %v3046_v38, %v4024_v16 }
 0x116   :  { %v343_v48 = vpop.f32.mrf.mxu0  ;;  %v663_v57 = vpop.f32.mrf.mxu1  ;;  %v972_v11 = vmax.f32 %v654_v2, 0.0  ;;  %v1390_v12 = vsel %vm1155_vm0, %v1105_v3, 0.0  ;;  %v669_v19 = vadd.f32 %v3142_v47, %v4024_v16 }
 0x117   :  { %v1201_v62 = vsel %vm1155_vm0, %v1042_v52, 0.0  ;;  %v344_v13 = vadd.f32 %v4024_v16, %v343_v48  ;;  %v1043_v14 = vmul.f32 %v4033_v27, %v908_v0  ;;  %v664_v24 = vadd.f32 %v4024_v16, %v663_v57 }
 0x118   :  { %1184 = vadd.xlane.f32.xlu1 %v1183_v60  ;;  %v3049_v58 = vpop.f32.mrf.mxu0  ;;  %v3145_v59 = vpop.f32.mrf.mxu1  ;;  %v909_v60 = vmax.f32 %v339_v50, 0.0  ;;  %v1107_v25 = vmul.f32 %v4033_v27, %v972_v11 }
 0x119   :  { %1181 = vadd.xlane.f32.xlu0 %v1180_v63  ;;  %v1106_v63 = vmul.f32 %v4033_v27, %v971_v49  ;;  %v910_v22 = vmax.f32 %v344_v13, 0.0  ;;  %v1204_v23 = vsel %vm1155_vm0, %v1043_v14, 0.0  ;;  %v359_v31 = vadd.f32 %v3049_v58, %v4024_v16 }
 0x11a   :  { %v353_v4 = vpop.f32.mrf.mxu0  ;;  %v673_v5 = vpop.f32.mrf.mxu1  ;;  %v974_v34 = vmax.f32 %v664_v24, 0.0  ;;  %v1396_v35 = vsel %vm1155_vm0, %v1107_v25, 0.0  ;;  %v679_v42 = vadd.f32 %v3145_v59, %v4024_v16 }
 0x11b   :  { %v1393_v9 = vsel %vm1155_vm0, %v1106_v63, 0.0  ;;  %v354_v36 = vadd.f32 %v4024_v16, %v353_v4  ;;  %v1045_v37 = vmul.f32 %v4033_v27, %v910_v22  ;;  %v674_v47 = vadd.f32 %v4024_v16, %v673_v5 }
 0x11c   :  { %1376 = vadd.xlane.f32.xlu1 %v1375_v7  ;;  %v3052_v6 = vpop.f32.mrf.mxu0  ;;  %v973_v7 = vmax.f32 %v659_v61, 0.0  ;;  %v3148_v15 = vpop.f32.mrf.mxu1  ;;  %v1109_v48 = vmul.f32 %v4033_v27, %v974_v34 }
 0x11d   :  { %1373 = vadd.xlane.f32.xlu0 %v1372_v10  ;;  %v1044_v10 = vmul.f32 %v4033_v27, %v909_v60  ;;  %v912_v45 = vmax.f32 %v354_v36, 0.0  ;;  %v1210_v46 = vsel %vm1155_vm0, %v1045_v37, 0.0  ;;  %v369_v52 = vadd.f32 %v3052_v6, %v4024_v16 }
 0x11e   :  { %v363_v17 = vpop.f32.mrf.mxu0  ;;  %v683_v26 = vpop.f32.mrf.mxu1  ;;  %v976_v55 = vmax.f32 %v674_v47, 0.0  ;;  %v1402_v56 = vsel %vm1155_vm0, %v1109_v48, 0.0  ;;  %v689_v63 = vadd.f32 %v3148_v15, %v4024_v16 }
 0x11f   :  { %v1207_v20 = vsel %vm1155_vm0, %v1044_v10, 0.0  ;;  %v364_v57 = vadd.f32 %v4024_v16, %v363_v17  ;;  %v1047_v58 = vmul.f32 %v4033_v27, %v912_v45  ;;  %v684_v4 = vadd.f32 %v4024_v16, %v683_v26 }
 0x120   :  { %1190 = vadd.xlane.f32.xlu1 %v1189_v18  ;;  %v911_v18 = vmax.f32 %v349_v8, 0.0  ;;  %v3055_v28 = vpop.f32.mrf.mxu0  ;;  %v4141_v29 = vpop.f32.mrf.mxu1  ;;  %v1111_v5 = vmul.f32 %v4033_v27, %v976_v55 }
 0x121   :  { %1187 = vadd.xlane.f32.xlu0 %v1186_v21  ;;  %v1108_v21 = vmul.f32 %v4033_v27, %v973_v7  ;;  %v914_v2 = vmax.f32 %v364_v57, 0.0  ;;  %v1216_v3 = vsel %vm1155_vm0, %v1047_v58, 0.0  ;;  %v379_v10 = vadd.f32 %v3055_v28, %v4024_v16 }
 0x122   :  { %v373_v38 = vpop.f32.mrf.mxu0  ;;  %v693_v39 = vpop.f32.mrf.mxu1  ;;  %v978_v13 = vmax.f32 %v684_v4, 0.0  ;;  %v1408_v14 = vsel %vm1155_vm0, %v1111_v5, 0.0 }
 0x123   :  { %v1399_v32 = vsel %vm1155_vm0, %v1108_v21, 0.0  ;;  %v374_v15 = vadd.f32 %v4024_v16, %v373_v38  ;;  %v1049_v17 = vmul.f32 %v4033_v27, %v914_v2  ;;  %v699_v21 = vadd.f32 %v4141_v29, %v4024_v16 }
 0x124   :  { %1382 = vadd.xlane.f32.xlu1 %v1381_v30  ;;  %v975_v30 = vmax.f32 %v669_v19, 0.0  ;;  %v4149_v40 = vpop.f32.mrf.mxu0  ;;  %v4157_v49 = vpop.f32.mrf.mxu1  ;;  %v694_v26 = vadd.f32 %v4024_v16, %v693_v39  ;;  %v1113_v28 = vmul.f32 %v4033_v27, %v978_v13 }
 0x125   :  { %1379 = vadd.xlane.f32.xlu0 %v1378_v33  ;;  %v1046_v33 = vmul.f32 %v4033_v27, %v911_v18  ;;  %v916_v24 = vmax.f32 %v374_v15, 0.0  ;;  %v1222_v25 = vsel %vm1155_vm0, %v1049_v17, 0.0  ;;  %v389_v29 = vadd.f32 %v4149_v40, %v4024_v16 }
 0x126   :  { %v383_v50 = vpop.f32.mrf.mxu0  ;;  %v703_v59 = vpop.f32.mrf.mxu1  ;;  %v980_v36 = vmax.f32 %v694_v26, 0.0  ;;  %v1414_v37 = vsel %vm1155_vm0, %v1113_v28, 0.0  ;;  %v709_v40 = vadd.f32 %v4157_v49, %v4024_v16 }
 0x127   :  { %v1213_v43 = vsel %vm1155_vm0, %v1046_v33, 0.0  ;;  %v981_v33 = vmax.f32 %v699_v21, 0.0  ;;  %v384_v38 = vadd.f32 %v4024_v16, %v383_v50  ;;  %v1051_v39 = vmul.f32 %v4033_v27, %v916_v24 }
 0x128   :  { %1196 = vadd.xlane.f32.xlu1 %v1195_v41  ;;  %v913_v41 = vmax.f32 %v359_v31, 0.0  ;;  %v4165_v60 = vpop.f32.mrf.mxu0  ;;  %v4167_v61 = vpop.f32.mrf.mxu1  ;;  %v704_v50 = vadd.f32 %v4024_v16, %v703_v59  ;;  %v983_v55 = vmax.f32 %v709_v40, 0.0 }
 0x129   :  { %1193 = vadd.xlane.f32.xlu0 %v1192_v44  ;;  %v1110_v44 = vmul.f32 %v4033_v27, %v975_v30  ;;  %v918_v47 = vmax.f32 %v384_v38, 0.0  ;;  %v1228_v48 = vsel %vm1155_vm0, %v1051_v39, 0.0 }
 0x12a   :  { %v393_v6 = vpop.f32.mrf.mxu0  ;;  %v4175_v7 = vpop.f32.mrf.mxu1  ;;  %v982_v57 = vmax.f32 %v704_v50, 0.0  ;;  %v1118_v5 = vmul.f32 %v4033_v27, %v983_v55 }
 0x12b   :  { %v1405_v53 = vsel %vm1155_vm0, %v1110_v44, 0.0  ;;  %v919_v44 = vmax.f32 %v389_v29, 0.0  ;;  %v1053_v59 = vmul.f32 %v4033_v27, %v918_v47 }
 0x12c   :  { %1388 = vadd.xlane.f32.xlu1 %v1387_v51  ;;  %v977_v51 = vmax.f32 %v679_v42, 0.0  ;;  %v4177_v8 = vpop.f32.mrf.mxu0  ;;  %v4185_v18 = vpop.f32.mrf.mxu1 }
 0x12d   :  { %1385 = vadd.xlane.f32.xlu0 %v1384_v54  ;;  %v1048_v54 = vmul.f32 %v4033_v27, %v913_v41 }
 0x12e   :  { %v4187_v19 = vpop.f32.mrf.mxu0  ;;  %v723_v30 = vpop.f32.mrf.mxu1 }
 0x12f   :  { %v1219_v0 = vsel %vm1155_vm0, %v1048_v54, 0.0  ;;  %v404_v13 = vadd.f32 %v4024_v16, %v4187_v19  ;;  %v724_v17 = vadd.f32 %v4024_v16, %v723_v30 }
 0x130   :  { %1202 = vadd.xlane.f32.xlu1 %v1201_v62  ;;  %v915_v62 = vmax.f32 %v369_v52, 0.0  ;;  %v4196_v31 = vpop.f32.mrf.mxu0 }
 0x131   :  { %1199 = vadd.xlane.f32.xlu0 %v1198_v1  ;;  %v1112_v1 = vmul.f32 %v4033_v27, %v977_v51  ;;  %v1115_v51 = vmul.f32 %v4033_v27, %v980_v36  ;;  %v922_v30 = vmax.f32 %v404_v13, 0.0 }
 0x132   :  { %v413_v41 = vpop.f32.mrf.mxu0 }
 0x133   :  { %v1411_v11 = vsel %vm1155_vm0, %v1112_v1, 0.0  ;;  %v1420_v58 = vsel %vm1155_vm0, %v1115_v51, 0.0  ;;  %v714_v1 = vadd.f32 %v4024_v16, %v4175_v7  ;;  %v1057_v51 = vmul.f32 %v4033_v27, %v922_v30 }
 0x134   :  { %1394 = vadd.xlane.f32.xlu1 %v1393_v9  ;;  %v979_v9 = vmax.f32 %v689_v63, 0.0 }
 0x135   :  { %1391 = vadd.xlane.f32.xlu0 %v1390_v12  ;;  %v1050_v12 = vmul.f32 %v4033_v27, %v915_v62  ;;  %v1054_v62 = vmul.f32 %v4033_v27, %v919_v44  ;;  %v984_v7 = vmax.f32 %v714_v1, 0.0 }
 0x137   :  { %v1225_v22 = vsel %vm1155_vm0, %v1050_v12, 0.0 }
 0x138   :  { %1208 = vadd.xlane.f32.xlu1 %v1207_v20  ;;  %v917_v20 = vmax.f32 %v379_v10, 0.0  ;;  %v409_v10 = vadd.f32 %v4177_v8, %v4024_v16  ;;  %v1429_v8 = vsel %vm1155_vm0, %v1118_v5, 0.0 }
 0x139   :  { %1205 = vadd.xlane.f32.xlu0 %v1204_v23  ;;  %v1114_v23 = vmul.f32 %v4033_v27, %v979_v9  ;;  %v1234_v9 = vsel %vm1155_vm0, %v1053_v59, 0.0 }
 0x13a   :  { %v923_v19 = vmax.f32 %v409_v10, 0.0 }
 0x13b   :  { %v1417_v34 = vsel %vm1155_vm0, %v1114_v23, 0.0  ;;  %v419_v23 = vadd.f32 %v4196_v31, %v4024_v16 }
 0x13c   :  { %1400 = vadd.xlane.f32.xlu1 %v1399_v32  ;;  %v3163_v32 = vpop.f32.mrf.mxu1  ;;  %v1058_v40 = vmul.f32 %v4033_v27, %v923_v19 }
 0x13d   :  { %1397 = vadd.xlane.f32.xlu0 %v1396_v35  ;;  %v1052_v35 = vmul.f32 %v4033_v27, %v917_v20  ;;  %v739_v24 = vadd.f32 %v3163_v32, %v4024_v16  ;;  %v986_v32 = vmax.f32 %v724_v17, 0.0  ;;  %v925_v39 = vmax.f32 %v419_v23, 0.0 }
 0x13e   :  { %v733_v42 = vpop.f32.mrf.mxu1 }
 0x13f   :  { %v1231_v45 = vsel %vm1155_vm0, %v1052_v35, 0.0  ;;  %v734_v26 = vadd.f32 %v4024_v16, %v733_v42 }
 0x140   :  { %1214 = vadd.xlane.f32.xlu1 %v1213_v43  ;;  %v4205_v43 = vpop.f32.mrf.mxu0  ;;  %v3166_v52 = vpop.f32.mrf.mxu1 }
 0x141   :  { %1211 = vadd.xlane.f32.xlu0 %v1210_v46  ;;  %v1116_v46 = vmul.f32 %v4033_v27, %v981_v33  ;;  %v429_v35 = vadd.f32 %v4205_v43, %v4024_v16  ;;  %v749_v42 = vadd.f32 %v3166_v52, %v4024_v16  ;;  %v1121_v52 = vmul.f32 %v4033_v27, %v986_v32 }
 0x142   :  { %v423_v54 = vpop.f32.mrf.mxu0  ;;  %v743_v63 = vpop.f32.mrf.mxu1 }
 0x143   :  { %v1423_v49 = vsel %vm1155_vm0, %v1116_v46, 0.0  ;;  %v424_v36 = vadd.f32 %v4024_v16, %v423_v54  ;;  %v744_v46 = vadd.f32 %v4024_v16, %v743_v63  ;;  %v927_v54 = vmax.f32 %v429_v35, 0.0 }
 0x144   :  { %1406 = vadd.xlane.f32.xlu1 %v1405_v53  ;;  %v399_v53 = vadd.f32 %v4165_v60, %v4024_v16  ;;  %v719_v60 = vadd.f32 %v4167_v61, %v4024_v16  ;;  %v1249_v63 = vsel %vm1155_vm0, %v1058_v40, 0.0  ;;  %v1438_v10 = vsel %vm1155_vm0, %v1121_v52, 0.0 }
 0x145   :  { %1403 = vadd.xlane.f32.xlu0 %v1402_v56  ;;  %v394_v56 = vadd.f32 %v4024_v16, %v393_v6  ;;  %v1237_v6 = vsel %vm1155_vm0, %v1054_v62, 0.0  ;;  %v926_v55 = vmax.f32 %v424_v36, 0.0  ;;  %v990_v1 = vmax.f32 %v744_v46, 0.0 }
 0x146   :  { %v921_v2 = vmax.f32 %v399_v53, 0.0  ;;  %v985_v61 = vmax.f32 %v719_v60, 0.0 }
 0x147   :  { %v920_v4 = vmax.f32 %v394_v56, 0.0  ;;  %v1125_v23 = vmul.f32 %v4033_v27, %v990_v1 }
 0x148   :  { %1220 = vadd.xlane.f32.xlu1 %v1219_v0  ;;  %v4221_v0 = vpop.f32.mrf.mxu0  ;;  %v1056_v15 = vmul.f32 %v4033_v27, %v921_v2  ;;  %v1120_v29 = vmul.f32 %v4033_v27, %v985_v61  ;;  %v1061_v61 = vmul.f32 %v4033_v27, %v926_v55 }
 0x149   :  { %1217 = vadd.xlane.f32.xlu0 %v1216_v3  ;;  %v4227_v3 = vpop.f32.mrf.mxu1 }
 0x14a   :  { %v433_v12 = vpop.f32.mrf.mxu0  ;;  %v1243_v31 = vsel %vm1155_vm0, %v1056_v15, 0.0  ;;  %v1435_v43 = vsel %vm1155_vm0, %v1120_v29, 0.0 }
 0x14b   :  { %v753_v20 = vpop.f32.mrf.mxu1  ;;  %v434_v59 = vadd.f32 %v4024_v16, %v433_v12  ;;  %v1062_v12 = vmul.f32 %v4033_v27, %v927_v54 }
 0x14c   :  { %1412 = vadd.xlane.f32.xlu1 %v1411_v11  ;;  %v1117_v11 = vmul.f32 %v4033_v27, %v982_v57  ;;  %v4241_v21 = vpop.f32.mrf.mxu0  ;;  %v991_v57 = vmax.f32 %v749_v42, 0.0 }
 0x14d   :  { %1409 = vadd.xlane.f32.xlu0 %v1408_v14  ;;  %v729_v14 = vadd.f32 %v4185_v18, %v4024_v16  ;;  %v414_v18 = vadd.f32 %v4024_v16, %v413_v41  ;;  %v4251_v28 = vpop.f32.mrf.mxu1  ;;  %v989_v41 = vmax.f32 %v739_v24, 0.0  ;;  %v928_v17 = vmax.f32 %v434_v59, 0.0 }
 0x14e   :  { %v4303_v30 = vsel %vm1155_vm0, %v1062_v12, 0.0 }
 0x14f   :  { %v987_v33 = vmax.f32 %v729_v14, 0.0  ;;  %v924_v44 = vmax.f32 %v414_v18, 0.0  ;;  %v763_v47 = vpop.f32.mrf.mxu1  ;;  %v1124_v62 = vmul.f32 %v4033_v27, %v989_v41  ;;  %v1063_v32 = vmul.f32 %v4033_v27, %v928_v17 }
 0x150   :  { %1226 = vadd.xlane.f32.xlu1 %v1225_v22  ;;  %v1055_v22 = vmul.f32 %v4033_v27, %v920_v4  ;;  %v764_v35 = vadd.f32 %v4024_v16, %v763_v47 }
 0x151   :  { %1223 = vadd.xlane.f32.xlu0 %v1222_v25  ;;  %v1426_v25 = vsel %vm1155_vm0, %v1117_v11, 0.0  ;;  %v1122_v53 = vmul.f32 %v4033_v27, %v987_v33  ;;  %v3175_v56 = vpop.f32.mrf.mxu1  ;;  %v1059_v60 = vmul.f32 %v4033_v27, %v924_v44  ;;  %v4286_v15 = vsel %vm1155_vm0, %v1124_v62, 0.0 }
 0x152   :  { %v1240_v38 = vsel %vm1155_vm0, %v1055_v22, 0.0  ;;  %v449_v22 = vadd.f32 %v4241_v21, %v4024_v16  ;;  %v4306_v33 = vsel %vm1155_vm0, %v1061_v61, 0.0  ;;  %v769_v21 = vadd.f32 %v4251_v28, %v4024_v16 }
 0x153   :  { %v1441_v5 = vsel %vm1155_vm0, %v1122_v53, 0.0  ;;  %v779_v28 = vadd.f32 %v3175_v56, %v4024_v16  ;;  %v4331_v53 = vsel %vm1155_vm0, %v1063_v32, 0.0  ;;  %v994_v54 = vmax.f32 %v764_v35, 0.0  ;;  %v4379_v35 = vld [vmem:[%s4894_s2] ss:$0 sm:$0xff] }
 0x154   :  { %1418 = vadd.xlane.f32.xlu1 %v1417_v34  ;;  %v1119_v34 = vmul.f32 %v4033_v27, %v984_v7  ;;  %v773_v7 = vpop.f32.mrf.mxu1  ;;  %v995_v47 = vmax.f32 %v769_v21, 0.0 }
 0x155   :  { %1415 = vadd.xlane.f32.xlu0 %v1414_v37  ;;  %v443_v37 = vpop.f32.mrf.mxu0  ;;  %v774_v46 = vadd.f32 %v4024_v16, %v773_v7  ;;  %v997_v56 = vmax.f32 %v779_v28, 0.0 }
 0x156   :  { %v1432_v50 = vsel %vm1155_vm0, %v1119_v34, 0.0  ;;  %v3178_v24 = vpop.f32.mrf.mxu1 }
 0x157   :  { %v789_v55 = vadd.f32 %v3178_v24, %v4024_v16  ;;  %v996_v1 = vmax.f32 %v774_v46, 0.0  ;;  %v1132_v17 = vmul.f32 %v4033_v27, %v997_v56 }
 0x158   :  { %1232 = vadd.xlane.f32.xlu1 %v1231_v45  ;;  %v988_v45 = vmax.f32 %v734_v26, 0.0  ;;  %v444_v26 = vadd.f32 %v4024_v16, %v443_v37  ;;  %v931_v37 = vmax.f32 %v449_v22, 0.0  ;;  %v783_v41 = vpop.f32.mrf.mxu1 }
 0x159   :  { %1229 = vadd.xlane.f32.xlu0 %v1228_v48  ;;  %v3079_v48 = vpop.f32.mrf.mxu0  ;;  %v4389_v28 = vsel %vm1155_vm0, %v1132_v17, 0.0 }
 0x15a   :  { %v1123_v2 = vmul.f32 %v4033_v27, %v988_v45  ;;  %v459_v36 = vadd.f32 %v3079_v48, %v4024_v16  ;;  %v930_v44 = vmax.f32 %v444_v26, 0.0 }
 0x15b   :  { %v453_v4 = vpop.f32.mrf.mxu0 }
 0x15c   :  { %1424 = vadd.xlane.f32.xlu1 %v1423_v49  ;;  %v439_v49 = vadd.f32 %v4221_v0, %v4024_v16  ;;  %v1246_v0 = vsel %vm1155_vm0, %v1057_v51, 0.0  ;;  %v3181_v51 = vpop.f32.mrf.mxu1  ;;  %v933_v52 = vmax.f32 %v459_v36, 0.0 }
 0x15d   :  { %1421 = vadd.xlane.f32.xlu0 %v1420_v58  ;;  %v1060_v58 = vmul.f32 %v4033_v27, %v925_v39  ;;  %v3082_v13 = vpop.f32.mrf.mxu0  ;;  %v454_v39 = vadd.f32 %v4024_v16, %v453_v4  ;;  %v1130_v4 = vmul.f32 %v4033_v27, %v995_v47  ;;  %v799_v22 = vadd.f32 %v3181_v51, %v4024_v16 }
 0x15e   :  { %v929_v11 = vmax.f32 %v439_v49, 0.0 }
 0x15f   :  { %v1255_v14 = vsel %vm1155_vm0, %v1060_v58, 0.0  ;;  %v463_v34 = vpop.f32.mrf.mxu0  ;;  %v932_v49 = vmax.f32 %v454_v39, 0.0  ;;  %v784_v58 = vadd.f32 %v4024_v16, %v783_v41 }
 0x160   :  { %1238 = vadd.xlane.f32.xlu1 %v1237_v6  ;;  %v759_v6 = vadd.f32 %v4227_v3, %v4024_v16  ;;  %v1252_v3 = vsel %vm1155_vm0, %v1059_v60, 0.0  ;;  %v1064_v29 = vmul.f32 %v4033_v27, %v929_v11  ;;  %v1065_v60 = vmul.f32 %v4033_v27, %v930_v44 }
 0x161   :  { %1235 = vadd.xlane.f32.xlu0 %v1234_v9  ;;  %v754_v9 = vadd.f32 %v4024_v16, %v753_v20  ;;  %v4291_v20 = vsel %vm1155_vm0, %v1123_v2, 0.0  ;;  %v3085_v42 = vpop.f32.mrf.mxu0  ;;  %v1068_v11 = vmul.f32 %v4033_v27, %v933_v52 }
 0x162   :  { %v993_v19 = vmax.f32 %v759_v6, 0.0  ;;  %v4326_v48 = vsel %vm1155_vm0, %v1064_v29, 0.0  ;;  %v793_v6 = vpop.f32.mrf.mxu1 }
 0x163   :  { %v992_v18 = vmax.f32 %v754_v9, 0.0  ;;  %v473_v62 = vpop.f32.mrf.mxu0  ;;  %v1129_v9 = vmul.f32 %v4033_v27, %v994_v54  ;;  %v4370_v21 = vsel %vm1155_vm0, %v1068_v11, 0.0 }
 0x164   :  { %1430 = vadd.xlane.f32.xlu1 %v1429_v8  ;;  %v1126_v8 = vmul.f32 %v4033_v27, %v991_v57  ;;  %v1128_v40 = vmul.f32 %v4033_v27, %v993_v19  ;;  %v1066_v57 = vmul.f32 %v4033_v27, %v931_v37  ;;  %v474_v12 = vadd.f32 %v4024_v16, %v473_v62  ;;  %v3184_v24 = vpop.f32.mrf.mxu1 }
 0x165   :  { %1427 = vadd.xlane.f32.xlu0 %v1426_v25  ;;  %v4299_v25 = vstv %s4896_s4  ;;  %v1127_v45 = vmul.f32 %v4033_v27, %v992_v18  ;;  %v3088_v61 = vpop.f32.mrf.mxu0  ;;  %v4362_v19 = vsel %vm1155_vm0, %v1130_v4, 0.0  ;;  %v4384_v39 = vadd.f32 %v4379_v35, %v3184_v24 }
 0x166   :  { %v4337_v59 = vsel %vm1155_vm0, %v1128_v40, 0.0  ;;  %v4349_v7 = vsel %vm1155_vm0, %v1066_v57, 0.0  ;;  %v936_v29 = vmax.f32 %v474_v12, 0.0  ;;  %v489_v36 = vadd.f32 %v4379_v35, %v3088_v61  ;;  %v803_v40 = vpop.f32.mrf.mxu1 }
 0x167   :  { %v483_v32 = vpop.f32.mrf.mxu0  ;;  %v804_v62 = vadd.f32 %v4379_v35, %v803_v40 }
 0x168   :  { %1244 = vadd.xlane.f32.xlu1 %v1243_v31  ;;  %v4312_v31 = vsel %vm1155_vm0, %v1126_v8, 0.0  ;;  %v4356_v8 = vsel %vm1155_vm0, %v1065_v60, 0.0  ;;  %v939_v56 = vmax.f32 %v489_v36, 0.0 }
 0x169   :  { %1241 = vadd.xlane.f32.xlu0 %v1240_v38  ;;  %v4318_v38 = vsel %vm1155_vm0, %v1125_v23, 0.0  ;;  %v794_v23 = vadd.f32 %v4024_v16, %v793_v6  ;;  %v1002_v17 = vmax.f32 %v804_v62, 0.0 }
 0x16b   :  { %v1000_v44 = vmax.f32 %v794_v23, 0.0 }
 0x16c   :  { %1436 = vadd.xlane.f32.xlu1 %v1435_v43  ;;  %v469_v43 = vadd.f32 %v3082_v13, %v4024_v16  ;;  %v1067_v13 = vmul.f32 %v4033_v27, %v932_v49  ;;  %v3187_v49 = vpop.f32.mrf.mxu1 }
 0x16d   :  { %1433 = vadd.xlane.f32.xlu0 %v1432_v50  ;;  %v464_v50 = vadd.f32 %v4024_v16, %v463_v34  ;;  %v819_v12 = vadd.f32 %v4379_v35, %v3187_v49 }
 0x16e   :  { %v935_v2 = vmax.f32 %v469_v43, 0.0 }
 0x16f   :  { %v1005_v36 = vmax.f32 %v819_v12, 0.0 }
 0x170   :  { %1250 = vadd.xlane.f32.xlu1 %v1249_v63  ;;  %v4340_v63 = vsel %vm1155_vm0, %v1127_v45, 0.0  ;;  %v1070_v26 = vmul.f32 %v4033_v27, %v935_v2  ;;  %v3091_v45 = vpop.f32.mrf.mxu0 }
 0x171   :  { %1247 = vadd.xlane.f32.xlu0 %v1246_v0  ;;  %v934_v0 = vmax.f32 %v464_v50, 0.0  ;;  %v499_v11 = vadd.f32 %v4379_v35, %v3091_v45 }
 0x174   :  { %1442 = vadd.xlane.f32.xlu1 %v1441_v5  ;;  %v479_v5 = vadd.f32 %v3085_v42, %v4024_v16  ;;  %v4374_v16 = vsel %vm1155_vm0, %v1067_v13, 0.0  ;;  %v1001_v42 = vmax.f32 %v799_v22, 0.0  ;;  %v813_v13 = vpop.f32.mrf.mxu1 }
 0x175   :  { %1439 = vadd.xlane.f32.xlu0 %v1438_v10  ;;  %v999_v10 = vmax.f32 %v789_v55, 0.0 }
 0x176   :  { %v937_v18 = vmax.f32 %v479_v5, 0.0 }
 0x177   :  { %v1134_v34 = vmul.f32 %v4033_v27, %v999_v10 }
 0x178   :  { %1256 = vadd.xlane.f32.xlu1 %v1255_v14  ;;  %v998_v14 = vmax.f32 %v784_v58, 0.0  ;;  %v1003_v58 = vmax.f32 %v4384_v39, 0.0  ;;  %v814_v39 = vadd.f32 %v4379_v35, %v813_v13 }
 0x179   :  { %1253 = vadd.xlane.f32.xlu0 %v1252_v3  ;;  %v1131_v3 = vmul.f32 %v4033_v27, %v996_v1  ;;  %v4410_v52 = vsel %vm1155_vm0, %v1134_v34, 0.0 }
 0x17a   :  { %v1133_v37 = vmul.f32 %v4033_v27, %v998_v14 }
 0x17b   :  { %v4392_v41 = vsel %vm1155_vm0, %v1131_v3, 0.0 }
 0x17c   :  { %1448 = vadd.xlane.f32.xlu1 %v4286_v15  ;;  %v1069_v15 = vmul.f32 %v4033_v27, %v934_v0  ;;  %v4395_v27 = vsel %vm1155_vm0, %v1070_v26, 0.0  ;;  %v4414_v57 = vsel %vm1155_vm0, %v1133_v37, 0.0  ;;  %v493_v0 = vpop.f32.mrf.mxu0 }
 0x17d   :  { %1445 = vadd.xlane.f32.xlu0 %v4291_v20  ;;  %v4367_v20 = vsel %vm1155_vm0, %v1129_v9, 0.0  ;;  %v494_v3 = vadd.f32 %v4379_v35, %v493_v0 }
 0x17e   :  { %v4398_v43 = vsel %vm1155_vm0, %v1069_v15, 0.0  ;;  %v3094_v14 = vpop.f32.mrf.mxu0  ;;  %v3190_v15 = vpop.f32.mrf.mxu1 }
 0x17f   :  { %v940_v40 = vmax.f32 %v494_v3, 0.0 }
 0x180   :  { %1262 = vadd.xlane.f32.xlu1 %v4303_v30  ;;  %v484_v30 = vadd.f32 %v4379_v35, %v483_v32  ;;  %v941_v32 = vmax.f32 %v499_v11, 0.0 }
 0x181   :  { %1259 = vadd.xlane.f32.xlu0 %v4306_v33  ;;  %v1353_v46 = vpop.xlane.xlu1 %1352  ;;  %v4404_v33 = vld [vmem:[%s4895_s3] ss:$0 sm:$0xff] }
 0x182   :  { %v1161_v47 = vpop.xlane.xlu0 %1160  ;;  %v1072_v50 = vmul.f32 %v4404_v33, %v937_v18  ;;  %v1607_v51 = vadd.f32 %v4299_v25, %v1353_v46  ;;  %v1071_v55 = vmul.f32 %v4404_v33, %v936_v29  ;;  %v1136_v2 = vmul.f32 %v4404_v33, %v1001_v42 }
 0x183   :  { %v1543_v54 = vadd.f32 %v4299_v25, %v1161_v47  ;;  %v1135_v4 = vmul.f32 %v4404_v33, %v1000_v44  ;;  %v938_v9 = vmax.f32 %v484_v30, 0.0  ;;  %v1074_v22 = vmul.f32 %v4404_v33, %v939_v56  ;;  %v503_v44 = vpop.f32.mrf.mxu0 }
 0x184   :  { %v2778_v60 = vmul.f32 -1.442695, %v1607_v51  ;;  %1454 = vadd.xlane.f32.xlu1 %v4312_v31  ;;  %v4423_v10 = vsel %vm1155_vm0, %v1072_v50, 0.0  ;;  %v4430_v61 = vsel %vm1155_vm0, %v1071_v55, 0.0  ;;  %v4437_v18 = vsel %vm1155_vm0, %v1136_v2, 0.0 }
 0x185   :  { %v2714_v1 = vmul.f32 -1.442695, %v1543_v54  ;;  %1451 = vadd.xlane.f32.xlu0 %v4318_v38  ;;  %v1167_v5 = vpop.xlane.xlu1 %1166  ;;  %v4440_v26 = vsel %vm1155_vm0, %v1135_v4, 0.0  ;;  %v1073_v37 = vmul.f32 %v4404_v33, %v938_v9  ;;  %v509_v42 = vadd.f32 %v4379_v35, %v3094_v14  ;;  %v823_v54 = vpop.f32.mrf.mxu1 }
 0x186   :  { %v1158_v6 = vpop.xlane.xlu0 %1157  ;;  %3245 = vpow2.f32 %v2778_v60  ;;  %v1545_v31 = vadd.f32 %v4299_v25, %v1167_v5  ;;  %v4448_v45 = vsel %vm1155_vm0, %v1074_v22, 0.0  ;;  %v1138_v46 = vmul.f32 %v4404_v33, %v1003_v58  ;;  %v3097_v5 = vpop.f32.mrf.mxu0 }
 0x187   :  { %v1542_v38 = vadd.f32 %v4299_v25, %v1158_v6  ;;  %3247 = vpow2.f32 %v2714_v1  ;;  %v1137_v50 = vmul.f32 %v4404_v33, %v1002_v17  ;;  %v829_v51 = vadd.f32 %v4379_v35, %v3190_v15 }
 0x188   :  { %v2716_v23 = vmul.f32 -1.442695, %v1545_v31  ;;  %1268 = vadd.xlane.f32.xlu1 %v4326_v48  ;;  %v1140_v56 = vmul.f32 %v4404_v33, %v1005_v36  ;;  %v4457_v62 = vsel %vm1155_vm0, %v1073_v37, 0.0  ;;  %v1004_v60 = vmax.f32 %v814_v39, 0.0 }
 0x189   :  { %v2713_v24 = vmul.f32 -1.442695, %v1542_v38  ;;  %1265 = vadd.xlane.f32.xlu0 %v4331_v53  ;;  %v1359_v29 = vpop.xlane.xlu1 %1358  ;;  %v504_v58 = vadd.f32 %v4379_v35, %v503_v44  ;;  %v943_v1 = vmax.f32 %v509_v42, 0.0  ;;  %v1076_v2 = vmul.f32 %v4404_v33, %v941_v32  ;;  %v513_v32 = vpop.f32.mrf.mxu0 }
 0x18a   :  { %v1350_v34 = vpop.xlane.xlu0 %1349  ;;  %3249 = vpow2.f32 %v2716_v23  ;;  %v1609_v48 = vadd.f32 %v4299_v25, %v1359_v29  ;;  %v1075_v4 = vmul.f32 %v4404_v33, %v940_v40  ;;  %v824_v0 = vadd.f32 %v4379_v35, %v823_v54  ;;  %v3193_v23 = vpop.f32.mrf.mxu1 }
 0x18b   :  { %v1606_v53 = vadd.f32 %v4299_v25, %v1350_v34  ;;  %3251 = vpow2.f32 %v2713_v24  ;;  %v4468_v11 = vsel %vm1155_vm0, %v1138_v46, 0.0  ;;  %v1007_v12 = vmax.f32 %v829_v51, 0.0 }
 0x18c   :  { %v2780_v47 = vmul.f32 -1.442695, %v1609_v48  ;;  %1460 = vadd.xlane.f32.xlu1 %v4337_v59  ;;  %v1139_v13 = vmul.f32 %v4404_v33, %v1004_v60  ;;  %v4472_v14 = vsel %vm1155_vm0, %v1137_v50, 0.0  ;;  %v942_v17 = vmax.f32 %v504_v58, 0.0  ;;  %v833_v51 = vpop.f32.mrf.mxu1 }
 0x18d   :  { %v2777_v30 = vmul.f32 -1.442695, %v1606_v53  ;;  %1457 = vadd.xlane.f32.xlu0 %v4340_v63  ;;  %v1164_v55 = vpop.xlane.xlu1 %1163  ;;  %v4475_v3 = vsel %vm1155_vm0, %v1140_v56, 0.0  ;;  %v1078_v22 = vmul.f32 %v4404_v33, %v943_v1  ;;  %v4481_v15 = vsel %vm1155_vm0, %v1076_v2, 0.0 }
 0x18e   :  { %v1356_v49 = vpop.xlane.xlu0 %1355  ;;  %3253 = vpow2.f32 %v2780_v47  ;;  %v1544_v59 = vadd.f32 %v4299_v25, %v1164_v55  ;;  %v4484_v29 = vsel %vm1155_vm0, %v1075_v4, 0.0  ;;  %v1006_v34 = vmax.f32 %v824_v0, 0.0 }
 0x18f   :  { %v1608_v63 = vadd.f32 %v4299_v25, %v1356_v49  ;;  %3255 = vpow2.f32 %v2777_v30  ;;  %v1142_v48 = vmul.f32 %v4404_v33, %v1007_v12  ;;  %v519_v53 = vadd.f32 %v4379_v35, %v3097_v5 }
 0x190   :  { %v2715_v6 = vmul.f32 -1.442695, %v1544_v59  ;;  %1274 = vadd.xlane.f32.xlu1 %v4349_v7  ;;  %v1077_v47 = vmul.f32 %v4404_v33, %v942_v17  ;;  %v4492_v30 = vsel %vm1155_vm0, %v1139_v13, 0.0  ;;  %v1141_v55 = vmul.f32 %v4404_v33, %v1006_v34  ;;  %v3100_v13 = vpop.f32.mrf.mxu0 }
 0x191   :  { %v2779_v9 = vmul.f32 -1.442695, %v1608_v63  ;;  %1271 = vadd.xlane.f32.xlu0 %v4356_v8  ;;  %v1173_v31 = vpop.xlane.xlu1 %1172  ;;  %v839_v49 = vadd.f32 %v4379_v35, %v3193_v23  ;;  %v4500_v56 = vsel %vm1155_vm0, %v1078_v22, 0.0  ;;  %v945_v63 = vmax.f32 %v519_v53, 0.0  ;;  %v3196_v53 = vpop.f32.mrf.mxu1 }
 0x192   :  { %v1170_v38 = vpop.xlane.xlu0 %1169  ;;  %3257 = vpow2.f32 %v2715_v6  ;;  %v1547_v7 = vadd.f32 %v4299_v25, %v1173_v31  ;;  %v834_v5 = vadd.f32 %v4379_v35, %v833_v51  ;;  %v4508_v12 = vsel %vm1155_vm0, %v1142_v48, 0.0 }
 0x193   :  { %v1546_v8 = vadd.f32 %v4299_v25, %v1170_v38  ;;  %v3246_v24 = vpop.eup %3245  ;;  %3259 = vpow2.f32 %v2779_v9  ;;  %v4511_v38 = vsel %vm1155_vm0, %v1077_v47, 0.0  ;;  %v529_v22 = vadd.f32 %v4379_v35, %v3100_v13 }
 0x194   :  { %v3248_v36 = vpop.eup %3247  ;;  %v2119_v37 = vadd.f32 1.0, %v3246_v24  ;;  %v2718_v39 = vmul.f32 -1.442695, %v1547_v7  ;;  %1466 = vadd.xlane.f32.xlu1 %v4362_v19  ;;  %v1008_v48 = vmax.f32 %v834_v5, 0.0 }
 0x195   :  { %1463 = vadd.xlane.f32.xlu0 %v4367_v20  ;;  %v2055_v42 = vadd.f32 1.0, %v3248_v36  ;;  %v2717_v44 = vmul.f32 -1.442695, %v1546_v8  ;;  %v1365_v40 = vpop.xlane.xlu1 %1364  ;;  %v514_v20 = vadd.f32 %v4379_v35, %v513_v32  ;;  %v1080_v36 = vmul.f32 %v4404_v33, %v945_v63 }
 0x196   :  { %v1362_v46 = vpop.xlane.xlu0 %1361  ;;  %3261 = vrcp.f32 %v2119_v37  ;;  %v1611_v50 = vadd.f32 %v4299_v25, %v1365_v40  ;;  %v4524_v40 = vadd.f32 %v4379_v35, %v3196_v53 }
 0x197   :  { %v1610_v19 = vadd.f32 %v4299_v25, %v1362_v46  ;;  %v3250_v54 = vpop.eup %3249  ;;  %3263 = vrcp.f32 %v2055_v42 }
 0x198   :  { %v3252_v60 = vpop.eup %3251  ;;  %v2057_v58 = vadd.f32 1.0, %v3250_v54  ;;  %3265 = vpow2.f32 %v2718_v39  ;;  %v2782_v59 = vmul.f32 -1.442695, %v1611_v50  ;;  %1280 = vadd.xlane.f32.xlu1 %v4370_v21  ;;  %v944_v21 = vmax.f32 %v514_v20, 0.0 }
 0x199   :  { %1277 = vadd.xlane.f32.xlu0 %v4374_v16  ;;  %v2054_v1 = vadd.f32 1.0, %v3252_v60  ;;  %3267 = vpow2.f32 %v2717_v44  ;;  %v2781_v2 = vmul.f32 -1.442695, %v1610_v19  ;;  %v1179_v4 = vpop.xlane.xlu1 %1178  ;;  %v1009_v16 = vmax.f32 %v839_v49, 0.0  ;;  %v523_v44 = vpop.f32.mrf.mxu0 }
 0x19a   :  { %v1176_v0 = vpop.xlane.xlu0 %1175  ;;  %3269 = vrcp.f32 %v2057_v58  ;;  %v1549_v6 = vadd.f32 %v4299_v25, %v1179_v4  ;;  %v947_v49 = vmax.f32 %v529_v22, 0.0 }
 0x19b   :  { %v1548_v9 = vadd.f32 %v4299_v25, %v1176_v0  ;;  %v3254_v31 = vpop.eup %3253  ;;  %3271 = vrcp.f32 %v2054_v1  ;;  %v4529_v19 = vmul.f32 %v4404_v33, %v1009_v16  ;;  %v1011_v1 = vmax.f32 %v4524_v40, 0.0  ;;  %v3759_v0 = vld [vmem:[#allocation3 + $0x208] sm:$0xff] }
 0x19c   :  { %v3256_v17 = vpop.eup %3255  ;;  %v2121_v7 = vadd.f32 1.0, %v3254_v31  ;;  %3273 = vpow2.f32 %v2782_v59  ;;  %v2720_v8 = vmul.f32 -1.442695, %v1549_v6  ;;  %1472 = vadd.xlane.f32.xlu1 %v4389_v28  ;;  %v1079_v28 = vmul.f32 %v4404_v33, %v944_v21  ;;  %v3760_v21 = vld [vmem:[#allocation3 + $0x8] sm:$0xff] }
 0x19d   :  { %1469 = vadd.xlane.f32.xlu0 %v4392_v41  ;;  %v2118_v23 = vadd.f32 1.0, %v3256_v17  ;;  %3275 = vpow2.f32 %v2781_v2  ;;  %v2719_v24 = vmul.f32 -1.442695, %v1548_v9  ;;  %v1371_v34 = vpop.xlane.xlu1 %1370  ;;  %v4521_v41 = vsel %vm1155_vm0, %v1141_v55, 0.0 }
 0x19e   :  { %v1368_v32 = vpop.xlane.xlu0 %1367  ;;  %3277 = vrcp.f32 %v2121_v7  ;;  %v1613_v37 = vadd.f32 %v4299_v25, %v1371_v34  ;;  %v4534_v59 = vadd.f32 %v4379_v35, %v523_v44  ;;  %v4541_v2 = vsel %vm1155_vm0, %v1080_v36, 0.0  ;;  %v3103_v44 = vpop.f32.mrf.mxu0 }
 0x19f   :  { %v1612_v39 = vadd.f32 %v4299_v25, %v1368_v32  ;;  %v3258_v42 = vpop.eup %3257  ;;  %3279 = vrcp.f32 %v2118_v23  ;;  %v4546_v7 = vmul.f32 %v4404_v33, %v947_v49  ;;  %v4555_v36 = vsel %vm1155_vm0, %v1079_v28, 0.0 }
 0x1a0   :  { %v3260_v46 = vpop.eup %3259  ;;  %v2056_v47 = vadd.f32 1.0, %v3258_v42  ;;  %3281 = vpow2.f32 %v2720_v8  ;;  %v2784_v50 = vmul.f32 -1.442695, %v1613_v37  ;;  %1286 = vadd.xlane.f32.xlu1 %v4395_v27  ;;  %v843_v27 = vpop.f32.mrf.mxu1  ;;  %v946_v32 = vmax.f32 %v4534_v59, 0.0 }
 0x1a1   :  { %1283 = vadd.xlane.f32.xlu0 %v4398_v43  ;;  %v2120_v20 = vadd.f32 1.0, %v3260_v46  ;;  %3283 = vpow2.f32 %v2719_v24  ;;  %v2783_v51 = vmul.f32 -1.442695, %v1612_v39  ;;  %v1185_v54 = vpop.xlane.xlu1 %1184  ;;  %v4537_v43 = vmul.f32 %v4404_v33, %v1008_v48  ;;  %v3761_v39 = vld [vmem:[#allocation3 + $0x18] sm:$0xff]  ;;  %v3762_v46 = vld [vmem:[#allocation3] sm:$0xff] }
 0x1a2   :  { %v1182_v55 = vpop.xlane.xlu0 %1181  ;;  %3285 = vrcp.f32 %v2056_v47  ;;  %v1551_v60 = vadd.f32 %v4299_v25, %v1185_v54  ;;  %v4549_v8 = vadd.f32 %v4379_v35, %v843_v27  ;;  %v4560_v28 = vmul.f32 %v4404_v33, %v1011_v1 }
 0x1a3   :  { %v1550_v58 = vadd.f32 %v4299_v25, %v1182_v55  ;;  %v3262_v63 = vpop.eup %3261  ;;  %3287 = vrcp.f32 %v2120_v20  ;;  %v4570_v59 = vsel %vm1155_vm0, %v4529_v19, 0.0  ;;  %v4575_v19 = vmul.f32 %v4404_v33, %v946_v32 }
 0x1a4   :  { %v3264_v4 = vpop.eup %3263  ;;  %v2503_v5 = vmul.f32 %v3759_v0, %v3262_v63  ;;  %3289 = vpow2.f32 %v2784_v50  ;;  %v2722_v6 = vmul.f32 -1.442695, %v1551_v60  ;;  %1478 = vadd.xlane.f32.xlu1 %v4410_v52  ;;  %v3763_v63 = vld [vmem:[#allocation3 + $0x218] sm:$0xff] }
 0x1a5   :  { %v2721_v9 = vmul.f32 -1.442695, %v1550_v58  ;;  %1475 = vadd.xlane.f32.xlu0 %v4414_v57  ;;  %v3266_v31 = vpop.eup %3265  ;;  %v2439_v16 = vmul.f32 %v3760_v21, %v3264_v4  ;;  %3291 = vpow2.f32 %v2783_v51  ;;  %v1377_v13 = vpop.xlane.xlu1 %1376  ;;  %v4563_v51 = vadd.f32 %v4379_v35, %v3103_v44 }
 0x1a6   :  { %v1374_v17 = vpop.xlane.xlu0 %1373  ;;  %v3268_v22 = vpop.eup %3267  ;;  %2631 = vst [vmem:[#allocation6 + $0x208] sm:$0xff] %v2503_v5  ;;  %v2059_v23 = vadd.f32 1.0, %v3266_v31  ;;  %3293 = vpow2.f32 %v2722_v6  ;;  %v1615_v52 = vadd.f32 %v4299_v25, %v1377_v13  ;;  %v1010_v58 = vmax.f32 %v4549_v8, 0.0  ;;  %v3764_v31 = vld [vmem:[#allocation3 + $0x200] sm:$0xff] }
 0x1a7   :  { %v1614_v57 = vadd.f32 %v4299_v25, %v1374_v17  ;;  %v3270_v24 = vpop.eup %3269  ;;  %2567 = vst [vmem:[#allocation6 + $0x8] sm:$0xff] %v2439_v16  ;;  %v2058_v34 = vadd.f32 1.0, %v3268_v22  ;;  %3295 = vpow2.f32 %v2721_v9  ;;  %v533_v5 = vpop.f32.mrf.mxu0  ;;  %v4579_v17 = vsel %vm1155_vm0, %v4537_v43, 0.0  ;;  %v3765_v43 = vld [vmem:[#allocation3 + $0x10] sm:$0xff] }
 0x1a8   :  { %v3272_v37 = vpop.eup %3271  ;;  %v2441_v48 = vmul.f32 %v3761_v39, %v3270_v24  ;;  %3297 = vrcp.f32 %v2059_v23  ;;  %v2786_v53 = vmul.f32 -1.442695, %v1615_v52  ;;  %1292 = vadd.xlane.f32.xlu1 %v4423_v10  ;;  %v3199_v6 = vpop.f32.mrf.mxu1  ;;  %v4585_v24 = vadd.f32 %v4379_v35, %v533_v5 }
 0x1a9   :  { %v2785_v42 = vmul.f32 -1.442695, %v1614_v57  ;;  %1289 = vadd.xlane.f32.xlu0 %v4430_v61  ;;  %v3274_v40 = vpop.eup %3273  ;;  %v2438_v47 = vmul.f32 %v3762_v46, %v3272_v37  ;;  %3299 = vrcp.f32 %v2058_v34  ;;  %v1191_v50 = vpop.xlane.xlu1 %1190  ;;  %v949_v57 = vmax.f32 %v4563_v51, 0.0 }
 0x1aa   :  { %v1188_v20 = vpop.xlane.xlu0 %1187  ;;  %v3276_v54 = vpop.eup %3275  ;;  %2569 = vst [vmem:[#allocation6 + $0x18] sm:$0xff] %v2441_v48  ;;  %v2123_v55 = vadd.f32 1.0, %v3274_v40  ;;  %3301 = vpow2.f32 %v2786_v53  ;;  %v1553_v10 = vadd.f32 %v4299_v25, %v1191_v50  ;;  %v4593_v50 = vadd.f32 %v4379_v35, %v3199_v6 }
 0x1ab   :  { %v1552_v61 = vadd.f32 %v4299_v25, %v1188_v20  ;;  %v3278_v49 = vpop.eup %3277  ;;  %2566 = vst [vmem:[#allocation6] sm:$0xff] %v2438_v47  ;;  %v2122_v60 = vadd.f32 1.0, %v3276_v54  ;;  %3303 = vpow2.f32 %v2785_v42  ;;  %v853_v48 = vpop.f32.mrf.mxu1  ;;  %v3766_v42 = vld [vmem:[#allocation3 + $0x210] sm:$0xff]  ;;  %v4590_v47 = vmul.f32 %v4404_v33, %v1010_v58 }
 0x1ac   :  { %v3280_v27 = vpop.eup %3279  ;;  %v2505_v1 = vmul.f32 %v3763_v63, %v3278_v49  ;;  %3305 = vrcp.f32 %v2123_v55  ;;  %v2724_v4 = vmul.f32 -1.442695, %v1553_v10  ;;  %1484 = vadd.xlane.f32.xlu1 %v4437_v18  ;;  %v4599_v10 = vsel %vm1155_vm0, %v4546_v7, 0.0 }
 0x1ad   :  { %v2723_v0 = vmul.f32 -1.442695, %v1552_v61  ;;  %1481 = vadd.xlane.f32.xlu0 %v4440_v26  ;;  %v3282_v9 = vpop.eup %3281  ;;  %v2502_v21 = vmul.f32 %v3764_v31, %v3280_v27  ;;  %3307 = vrcp.f32 %v2122_v60  ;;  %v1383_v16 = vpop.xlane.xlu1 %1382  ;;  %v4602_v61 = vadd.f32 %v4379_v35, %v853_v48  ;;  %v3769_v48 = vld [vmem:[#allocation3 + $0x228] sm:$0xff] }
 0x1ae   :  { %v1380_v13 = vpop.xlane.xlu0 %1379  ;;  %v3284_v8 = vpop.eup %3283  ;;  %2633 = vst [vmem:[#allocation6 + $0x218] sm:$0xff] %v2505_v1  ;;  %v2061_v18 = vadd.f32 1.0, %v3282_v9  ;;  %3309 = vpow2.f32 %v2724_v4  ;;  %v1617_v26 = vadd.f32 %v4299_v25, %v1383_v16  ;;  %v4608_v27 = vsel %vm1155_vm0, %v4560_v28, 0.0  ;;  %v3767_v9 = vld [vmem:[#allocation3 + $0x28] sm:$0xff]  ;;  %v3768_v28 = vld [vmem:[#allocation3 + $0x20] sm:$0xff] }
 0x1af   :  { %v1616_v22 = vadd.f32 %v4299_v25, %v1380_v13  ;;  %v3286_v23 = vpop.eup %3285  ;;  %2630 = vst [vmem:[#allocation6 + $0x200] sm:$0xff] %v2502_v21  ;;  %v2060_v52 = vadd.f32 1.0, %v3284_v8  ;;  %3311 = vpow2.f32 %v2723_v0  ;;  %v4611_v5 = vmul.f32 %v4404_v33, %v949_v57 }
 0x1b0   :  { %v3288_v34 = vpop.eup %3287  ;;  %v2440_v32 = vmul.f32 %v3765_v43, %v3286_v23  ;;  %3313 = vrcp.f32 %v2061_v18  ;;  %v2788_v37 = vmul.f32 -1.442695, %v1617_v26  ;;  %1298 = vadd.xlane.f32.xlu1 %v4448_v45  ;;  %v948_v13 = vmax.f32 %v4585_v24, 0.0 }
 0x1b1   :  { %v2787_v39 = vmul.f32 -1.442695, %v1616_v22  ;;  %1295 = vadd.xlane.f32.xlu0 %v4457_v62  ;;  %v3290_v53 = vpop.eup %3289  ;;  %v2504_v44 = vmul.f32 %v3766_v42, %v3288_v34  ;;  %3315 = vrcp.f32 %v2060_v52  ;;  %v1197_v40 = vpop.xlane.xlu1 %1196  ;;  %v1013_v8 = vmax.f32 %v4593_v50, 0.0  ;;  %v3770_v42 = vld [vmem:[#allocation3 + $0x220] sm:$0xff] }
 0x1b2   :  { %v1194_v46 = vpop.xlane.xlu0 %1193  ;;  %v3292_v20 = vpop.eup %3291  ;;  %2568 = vst [vmem:[#allocation6 + $0x10] sm:$0xff] %v2440_v32  ;;  %v2125_v51 = vadd.f32 1.0, %v3290_v53  ;;  %3317 = vpow2.f32 %v2788_v37  ;;  %v1555_v45 = vadd.f32 %v4299_v25, %v1197_v40  ;;  %v4621_v23 = vsel %vm1155_vm0, %v4575_v19, 0.0 }
 0x1b3   :  { %v1554_v62 = vadd.f32 %v4299_v25, %v1194_v46  ;;  %v3294_v54 = vpop.eup %3293  ;;  %2632 = vst [vmem:[#allocation6 + $0x210] sm:$0xff] %v2504_v44  ;;  %v2124_v55 = vadd.f32 1.0, %v3292_v20  ;;  %3319 = vpow2.f32 %v2787_v39  ;;  %v3106_v52 = vpop.f32.mrf.mxu0  ;;  %v1012_v37 = vmax.f32 %v4602_v61, 0.0 }
 0x1b4   :  { %v3296_v49 = vpop.eup %3295  ;;  %3321 = vrcp.f32 %v2125_v51  ;;  %v2063_v60 = vadd.f32 1.0, %v3294_v54  ;;  %v2726_v58 = vmul.f32 -1.442695, %v1555_v45  ;;  %1490 = vadd.xlane.f32.xlu1 %v4468_v11  ;;  %v4627_v40 = vadd.f32 %v4379_v35, %v3106_v52  ;;  %v3202_v50 = vpop.f32.mrf.mxu1 }
 0x1b5   :  { %1487 = vadd.xlane.f32.xlu0 %v4472_v14  ;;  %v3298_v63 = vpop.eup %3297  ;;  %3323 = vrcp.f32 %v2124_v55  ;;  %v2062_v1 = vadd.f32 1.0, %v3296_v49  ;;  %v2725_v7 = vmul.f32 -1.442695, %v1554_v62  ;;  %v1389_v4 = vpop.xlane.xlu1 %1388  ;;  %v4631_v46 = vsel %vm1155_vm0, %v4590_v47, 0.0 }
 0x1b6   :  { %v1386_v0 = vpop.xlane.xlu0 %1385  ;;  %v3300_v6 = vpop.eup %3299  ;;  %v2443_v31 = vmul.f32 %v3767_v9, %v3298_v63  ;;  %3325 = vrcp.f32 %v2063_v60  ;;  %v1619_v11 = vadd.f32 %v4299_v25, %v1389_v4  ;;  %v4636_v54 = vadd.f32 %v4379_v35, %v3202_v50 }
 0x1b7   :  { %v1618_v14 = vadd.f32 %v4299_v25, %v1386_v0  ;;  %v3302_v21 = vpop.eup %3301  ;;  %v2442_v16 = vmul.f32 %v3768_v28, %v3300_v6  ;;  %3327 = vrcp.f32 %v2062_v1  ;;  %v543_v62 = vpop.f32.mrf.mxu0  ;;  %v3771_v1 = vld [vmem:[#allocation3 + $0x38] sm:$0xff]  ;;  %v3772_v0 = vld [vmem:[#allocation3 + $0x30] sm:$0xff]  ;;  %v4644_v9 = vmul.f32 %v4404_v33, %v1013_v8 }
 0x1b8   :  { %v3304_v18 = vpop.eup %3303  ;;  %2571 = vst [vmem:[#allocation6 + $0x28] sm:$0xff] %v2443_v31  ;;  %v2127_v26 = vadd.f32 1.0, %v3302_v21  ;;  %3329 = vpow2.f32 %v2726_v58  ;;  %v2790_v22 = vmul.f32 -1.442695, %v1619_v11  ;;  %1304 = vadd.xlane.f32.xlu1 %v4481_v15  ;;  %v4639_v58 = vmul.f32 %v4404_v33, %v948_v13 }
 0x1b9   :  { %1301 = vadd.xlane.f32.xlu0 %v4484_v29  ;;  %v3306_v57 = vpop.eup %3305  ;;  %2570 = vst [vmem:[#allocation6 + $0x20] sm:$0xff] %v2442_v16  ;;  %v2126_v34 = vadd.f32 1.0, %v3304_v18  ;;  %3331 = vpow2.f32 %v2725_v7  ;;  %v2789_v24 = vmul.f32 -1.442695, %v1618_v14  ;;  %v1203_v43 = vpop.xlane.xlu1 %1202  ;;  %v4647_v31 = vadd.f32 %v4379_v35, %v543_v62 }
 0x1ba   :  { %v1200_v32 = vpop.xlane.xlu0 %1199  ;;  %v3308_v39 = vpop.eup %3307  ;;  %v2507_v53 = vmul.f32 %v3769_v48, %v3306_v57  ;;  %3333 = vrcp.f32 %v2127_v26  ;;  %v1557_v15 = vadd.f32 %v4299_v25, %v1203_v43  ;;  %v4653_v28 = vsel %vm1155_vm0, %v4611_v5, 0.0  ;;  %v3773_v57 = vld [vmem:[#allocation3 + $0x238] sm:$0xff]  ;;  %v3774_v43 = vld [vmem:[#allocation3 + $0x230] sm:$0xff] }
 0x1bb   :  { %v1556_v29 = vadd.f32 %v4299_v25, %v1200_v32  ;;  %v3310_v19 = vpop.eup %3309  ;;  %v2506_v44 = vmul.f32 %v3770_v42, %v3308_v39  ;;  %3335 = vrcp.f32 %v2126_v34  ;;  %v863_v5 = vpop.f32.mrf.mxu1  ;;  %v951_v39 = vmax.f32 %v4627_v40, 0.0 }
 0x1bc   :  { %v3312_v20 = vpop.eup %3311  ;;  %2635 = vst [vmem:[#allocation6 + $0x228] sm:$0xff] %v2507_v53  ;;  %v2065_v51 = vadd.f32 1.0, %v3310_v19  ;;  %3337 = vpow2.f32 %v2790_v22  ;;  %v2728_v45 = vmul.f32 -1.442695, %v1557_v15  ;;  %1496 = vadd.xlane.f32.xlu1 %v4475_v3  ;;  %v4656_v22 = vmul.f32 %v4404_v33, %v1012_v37  ;;  %v3775_v37 = vld [vmem:[#allocation3 + $0x48] sm:$0xff] }
 0x1bd   :  { %1493 = vadd.xlane.f32.xlu0 %v4492_v30  ;;  %v3314_v55 = vpop.eup %3313  ;;  %2634 = vst [vmem:[#allocation6 + $0x220] sm:$0xff] %v2506_v44  ;;  %v2064_v61 = vadd.f32 1.0, %v3312_v20  ;;  %3339 = vpow2.f32 %v2789_v24  ;;  %v2727_v47 = vmul.f32 -1.442695, %v1556_v29  ;;  %v1395_v49 = vpop.xlane.xlu1 %1394  ;;  %v1015_v48 = vmax.f32 %v4636_v54, 0.0  ;;  %v3776_v44 = vld [vmem:[#allocation3 + $0x40] sm:$0xff] }
 0x1be   :  { %v1392_v60 = vpop.xlane.xlu0 %1391  ;;  %v3316_v63 = vpop.eup %3315  ;;  %v2445_v7 = vmul.f32 %v3771_v1, %v3314_v55  ;;  %3341 = vrcp.f32 %v2065_v51  ;;  %v1621_v3 = vadd.f32 %v4299_v25, %v1395_v49  ;;  %v950_v51 = vmax.f32 %v4647_v31, 0.0  ;;  %v3777_v1 = vld [vmem:[#allocation3 + $0x248] sm:$0xff] }
 0x1bf   :  { %v1620_v30 = vadd.f32 %v4299_v25, %v1392_v60  ;;  %v3318_v4 = vpop.eup %3317  ;;  %v2444_v6 = vmul.f32 %v3772_v0, %v3316_v63  ;;  %3343 = vrcp.f32 %v2064_v61  ;;  %v3109_v55 = vpop.f32.mrf.mxu0  ;;  %v4672_v49 = vsel %vm1155_vm0, %v4639_v58, 0.0  ;;  %v3778_v0 = vld [vmem:[#allocation3 + $0x240] sm:$0xff] }
 0x1c0   :  { %v3320_v11 = vpop.eup %3319  ;;  %2573 = vst [vmem:[#allocation6 + $0x38] sm:$0xff] %v2445_v7  ;;  %v2129_v14 = vadd.f32 1.0, %v3318_v4  ;;  %3345 = vpow2.f32 %v2728_v45  ;;  %v2792_v21 = vmul.f32 -1.442695, %v1621_v3  ;;  %1310 = vadd.xlane.f32.xlu1 %v4500_v56  ;;  %v4666_v45 = vadd.f32 %v4379_v35, %v863_v5  ;;  %v3205_v5 = vpop.f32.mrf.mxu1 }
 0x1c1   :  { %1307 = vadd.xlane.f32.xlu0 %v4511_v38  ;;  %v3322_v16 = vpop.eup %3321  ;;  %2572 = vst [vmem:[#allocation6 + $0x30] sm:$0xff] %v2444_v6  ;;  %v2128_v13 = vadd.f32 1.0, %v3320_v11  ;;  %3347 = vpow2.f32 %v2727_v47  ;;  %v2791_v8 = vmul.f32 -1.442695, %v1620_v30  ;;  %v1209_v18 = vpop.xlane.xlu1 %1208  ;;  %v4675_v60 = vadd.f32 %v4379_v35, %v3109_v55 }
 0x1c2   :  { %v1206_v26 = vpop.xlane.xlu0 %1205  ;;  %v3324_v52 = vpop.eup %3323  ;;  %v2509_v34 = vmul.f32 %v3773_v57, %v3322_v16  ;;  %3349 = vrcp.f32 %v2129_v14  ;;  %v1559_v56 = vadd.f32 %v4299_v25, %v1209_v18  ;;  %v4680_v11 = vmul.f32 %v4404_v33, %v951_v39 }
 0x1c3   :  { %v1558_v38 = vadd.f32 %v4299_v25, %v1206_v26  ;;  %v3326_v24 = vpop.eup %3325  ;;  %v2508_v32 = vmul.f32 %v3774_v43, %v3324_v52  ;;  %3351 = vrcp.f32 %v2128_v13  ;;  %v4684_v14 = vsel %vm1155_vm0, %v4644_v9, 0.0  ;;  %v3779_v9 = vld [vmem:[#allocation3 + $0x58] sm:$0xff]  ;;  %v3780_v43 = vld [vmem:[#allocation3 + $0x50] sm:$0xff] }
 0x1c4   :  { %v3328_v53 = vpop.eup %3327  ;;  %2637 = vst [vmem:[#allocation6 + $0x238] sm:$0xff] %v2509_v34  ;;  %v2447_v15 = vmul.f32 %v3775_v37, %v3326_v24  ;;  %3353 = vpow2.f32 %v2792_v21  ;;  %v2730_v29 = vmul.f32 -1.442695, %v1559_v56  ;;  %1502 = vadd.xlane.f32.xlu1 %v4508_v12  ;;  %v4689_v18 = vmul.f32 %v4404_v33, %v1015_v48 }
 0x1c5   :  { %v2729_v19 = vmul.f32 -1.442695, %v1558_v38  ;;  %1499 = vadd.xlane.f32.xlu0 %v4521_v41  ;;  %v3330_v42 = vpop.eup %3329  ;;  %2636 = vst [vmem:[#allocation6 + $0x230] sm:$0xff] %v2508_v32  ;;  %v2446_v50 = vmul.f32 %v3776_v44, %v3328_v53  ;;  %3355 = vpow2.f32 %v2791_v8  ;;  %v1401_v20 = vpop.xlane.xlu1 %1400  ;;  %v1014_v26 = vmax.f32 %v4666_v45, 0.0 }
 0x1c6   :  { %v1398_v40 = vpop.xlane.xlu0 %1397  ;;  %v3332_v62 = vpop.eup %3331  ;;  %2575 = vst [vmem:[#allocation6 + $0x48] sm:$0xff] %v2447_v15  ;;  %v2067_v54 = vadd.f32 1.0, %v3330_v42  ;;  %3357 = vpow2.f32 %v2730_v29  ;;  %v1623_v12 = vadd.f32 %v4299_v25, %v1401_v20  ;;  %v4695_v53 = vmul.f32 %v4404_v33, %v950_v51 }
 0x1c7   :  { %v1622_v41 = vadd.f32 %v4299_v25, %v1398_v40  ;;  %v3334_v61 = vpop.eup %3333  ;;  %2574 = vst [vmem:[#allocation6 + $0x40] sm:$0xff] %v2446_v50  ;;  %v2066_v47 = vadd.f32 1.0, %v3332_v62  ;;  %3359 = vpow2.f32 %v2729_v19  ;;  %v553_v38 = vpop.f32.mrf.mxu0  ;;  %v4699_v37 = vsel %vm1155_vm0, %v4656_v22, 0.0  ;;  %v3781_v22 = vld [vmem:[#allocation3 + $0x258] sm:$0xff] }
 0x1c8   :  { %v3336_v63 = vpop.eup %3335  ;;  %v2511_v7 = vmul.f32 %v3777_v1, %v3334_v61  ;;  %3361 = vrcp.f32 %v2067_v54  ;;  %v2794_v3 = vmul.f32 -1.442695, %v1623_v12  ;;  %1316 = vadd.xlane.f32.xlu1 %v4541_v2  ;;  %v953_v44 = vmax.f32 %v4675_v60, 0.0  ;;  %v873_v62 = vpop.f32.mrf.mxu1  ;;  %v3782_v12 = vld [vmem:[#allocation3 + $0x250] sm:$0xff] }
 0x1c9   :  { %v2793_v30 = vmul.f32 -1.442695, %v1622_v41  ;;  %1313 = vadd.xlane.f32.xlu0 %v4555_v36  ;;  %v3338_v4 = vpop.eup %3337  ;;  %v2510_v6 = vmul.f32 %v3778_v0, %v3336_v63  ;;  %3363 = vrcp.f32 %v2066_v47  ;;  %v1215_v31 = vpop.xlane.xlu1 %1214  ;;  %v4705_v50 = vadd.f32 %v4379_v35, %v553_v38  ;;  %v4715_v47 = vld [vmem:[%s4894_s2] ss:$0 sm:$0xff] }
 0x1ca   :  { %v1212_v58 = vpop.xlane.xlu0 %1211  ;;  %v3340_v21 = vpop.eup %3339  ;;  %2639 = vst [vmem:[#allocation6 + $0x248] sm:$0xff] %v2511_v7  ;;  %v2131_v16 = vadd.f32 1.0, %v3338_v4  ;;  %3365 = vpow2.f32 %v2794_v3  ;;  %v1561_v2 = vadd.f32 %v4299_v25, %v1215_v31  ;;  %v4710_v35 = vmul.f32 %v4404_v33, %v1014_v26 }
 0x1cb   :  { %v1560_v36 = vadd.f32 %v4299_v25, %v1212_v58  ;;  %v3342_v13 = vpop.eup %3341  ;;  %2638 = vst [vmem:[#allocation6 + $0x240] sm:$0xff] %v2510_v6  ;;  %v2130_v8 = vadd.f32 1.0, %v3340_v21  ;;  %3367 = vpow2.f32 %v2793_v30  ;;  %v4718_v60 = vadd.f32 %v4715_v47, %v3205_v5 }
 0x1cc   :  { %v3344_v52 = vpop.eup %3343  ;;  %v2449_v57 = vmul.f32 %v3779_v9, %v3342_v13  ;;  %3369 = vrcp.f32 %v2131_v16  ;;  %v2732_v34 = vmul.f32 -1.442695, %v1561_v2  ;;  %1508 = vadd.xlane.f32.xlu1 %v4570_v59  ;;  %v4724_v3 = vsel %vm1155_vm0, %v4680_v11, 0.0  ;;  %v3786_v9 = vld [vmem:[#allocation3 + $0x60] sm:$0xff] }
 0x1cd   :  { %v2731_v56 = vmul.f32 -1.442695, %v1560_v36  ;;  %1505 = vadd.xlane.f32.xlu0 %v4579_v17  ;;  %v3346_v24 = vpop.eup %3345  ;;  %v2448_v32 = vmul.f32 %v3780_v43, %v3344_v52  ;;  %3371 = vrcp.f32 %v2130_v8  ;;  %v1407_v39 = vpop.xlane.xlu1 %1406  ;;  %v4727_v30 = vadd.f32 %v4715_v47, %v873_v62  ;;  %v4738_v36 = vld [vmem:[%s4895_s3] ss:$0 sm:$0xff]  ;;  %s3936_s3 = smov [#allocation6]  }
 0x1ce   :  { %v1404_v48 = vpop.xlane.xlu0 %1403  ;;  %v3348_v15 = vpop.eup %3347  ;;  %2577 = vst [vmem:[#allocation6 + $0x58] sm:$0xff] %v2449_v57  ;;  %v2069_v59 = vadd.f32 1.0, %v3346_v24  ;;  %3373 = vpow2.f32 %v2732_v34  ;;  %v1625_v17 = vadd.f32 %v4299_v25, %v1407_v39  ;;  %v4733_v31 = vsel %vm1155_vm0, %v4689_v18, 0.0  ;;  %s2699_s18 = sshll.u32 %s3936_s3, 4  ;;  %s2700_s18 = int_to_ptr.vmem [resolvable:$true] %s2699_s18 }
 0x1cf   :  { %v1624_v29 = vadd.f32 %v4299_v25, %v1404_v48  ;;  %v3350_v19 = vpop.eup %3349  ;;  %2576 = vst [vmem:[#allocation6 + $0x50] sm:$0xff] %v2448_v32  ;;  %v2068_v42 = vadd.f32 1.0, %v3348_v15  ;;  %3375 = vpow2.f32 %v2731_v56  ;;  %v4741_v13 = vmul.f32 %v4738_v36, %v953_v44  ;;  %v3112_v32 = vpop.f32.mrf.mxu0  ;;  %s3909_s19 = scalar_lea.vmem %s2700_s18, 16384  ;;  %p3914_p6 = scmp.lt.s32.totalorder %s2700_s18, %s2700_s18 }
 0x1d0   :  { %v3352_v20 = vpop.eup %3351  ;;  %v2513_v40 = vmul.f32 %v3781_v22, %v3350_v19  ;;  %3377 = vrcp.f32 %v2069_v59  ;;  %v2796_v51 = vmul.f32 -1.442695, %v1625_v17  ;;  %1322 = vadd.xlane.f32.xlu1 %v4599_v10  ;;  %v952_v34 = vmax.f32 %v4705_v50, 0.0  ;;  %p3910_p5 = scmp.ne.s32.totalorder %s2700_s18, %s3909_s19  ;;  %p3915_p7 = scmp.lt.s32.totalorder %s3909_s19, %s3909_s19 }
 0x1d1   :  { %v2795_v45 = vmul.f32 -1.442695, %v1624_v29  ;;  %1319 = vadd.xlane.f32.xlu0 %v4621_v23  ;;  %v3354_v54 = vpop.eup %3353  ;;  %v2512_v41 = vmul.f32 %v3782_v12, %v3352_v20  ;;  %3379 = vrcp.f32 %v2068_v42  ;;  %v1221_v55 = vpop.xlane.xlu1 %1220  ;;  %v1017_v56 = vmax.f32 %v4718_v60, 0.0  ;;  %v3787_v42 = vld [vmem:[#allocation3 + $0x268] sm:$0xff] }
 0x1d2   :  { %v1218_v61 = vpop.xlane.xlu0 %1217  ;;  %v3356_v10 = vpop.eup %3355  ;;  %2641 = vst [vmem:[#allocation6 + $0x258] sm:$0xff] %v2513_v40  ;;  %v2133_v23 = vadd.f32 1.0, %v3354_v54  ;;  %3381 = vpow2.f32 %v2796_v51  ;;  %v1563_v63 = vadd.f32 %v4299_v25, %v1221_v55  ;;  %v1330_v43 = vsel %vm1155_vm0, %v4695_v53, 0.0  ;;  %v3788_v53 = vld [vmem:[#allocation3 + $0x260] sm:$0xff]  ;;  %p3916_p8 = por %p3915_p7, %p3914_p6 }
 0x1d3   :  { %v1562_v1 = vadd.f32 %v4299_v25, %v1218_v61  ;;  %v3358_v7 = vpop.eup %3357  ;;  %2640 = vst [vmem:[#allocation6 + $0x250] sm:$0xff] %v2512_v41  ;;  %v2132_v33 = vadd.f32 1.0, %v3356_v10  ;;  %3383 = vpow2.f32 %v2795_v45  ;;  %v1016_v29 = vmax.f32 %v4727_v30, 0.0  ;;  %v563_v12 = vpop.f32.mrf.mxu0  ;;  %v3790_v30 = vld [vmem:[#allocation3 + $0x70] sm:$0xff] }
 0x1d4   :  { %v3360_v4 = vpop.eup %3359  ;;  %3385 = vrcp.f32 %v2133_v23  ;;  %v2071_v0 = vadd.f32 1.0, %v3358_v7  ;;  %v2734_v6 = vmul.f32 -1.442695, %v1563_v63  ;;  %1514 = vadd.xlane.f32.xlu1 %v4608_v27  ;;  %v4755_v22 = vadd.f32 %v4715_v47, %v3112_v32  ;;  %v3208_v41 = vpop.f32.mrf.mxu1  ;;  %p3917_p9 = pnand %p3916_p8, %p3910_p5 }
 0x1d5   :  { %1511 = vadd.xlane.f32.xlu0 %v4631_v46  ;;  %v3362_v58 = vpop.eup %3361  ;;  %3387 = vrcp.f32 %v2132_v33  ;;  %v2070_v21 = vadd.f32 1.0, %v3360_v4  ;;  %v2733_v11 = vmul.f32 -1.442695, %v1562_v1  ;;  %v1413_v16 = vpop.xlane.xlu1 %1412  ;;  %v3785_v46 = vld [vmem:[#allocation3 + $0x68] sm:$0xff]  ;;  %v4759_v40 = vsel %vm1155_vm0, %v4710_v35, 0.0  ;;  %v3789_v1 = vld [vmem:[#allocation3 + $0x78] sm:$0xff] }
 0x1d6   :  { %v1410_v2 = vpop.xlane.xlu0 %1409  ;;  %v3364_v27 = vpop.eup %3363  ;;  %v2451_v8 = vmul.f32 %v3785_v46, %v3362_v58  ;;  %3389 = vrcp.f32 %v2071_v0  ;;  %v1627_v18 = vadd.f32 %v4299_v25, %v1413_v16  ;;  %v4764_v54 = vmul.f32 %v4738_v36, %v952_v34 }
 0x1d7   :  { %v1626_v26 = vadd.f32 %v4299_v25, %v1410_v2  ;;  %v3366_v52 = vpop.eup %3365  ;;  %v2450_v57 = vmul.f32 %v3786_v9, %v3364_v27  ;;  %3391 = vrcp.f32 %v2070_v21  ;;  %v4767_v23 = vmul.f32 %v4738_v36, %v1017_v56  ;;  %v883_v2 = vpop.f32.mrf.mxu1 }
 0x1d8   :  { %v3368_v38 = vpop.eup %3367  ;;  %2579 = vst [vmem:[#allocation6 + $0x68] sm:$0xff] %v2451_v8  ;;  %v2135_v5 = vadd.f32 1.0, %v3366_v52  ;;  %3393 = vpow2.f32 %v2734_v6  ;;  %v2798_v24 = vmul.f32 -1.442695, %v1627_v18  ;;  %1328 = vadd.xlane.f32.xlu1 %v4653_v28  ;;  %v4772_v0 = vadd.f32 %v4715_v47, %v563_v12 }
 0x1d9   :  { %1325 = vadd.xlane.f32.xlu0 %v4672_v49  ;;  %v3370_v39 = vpop.eup %3369  ;;  %2578 = vst [vmem:[#allocation6 + $0x60] sm:$0xff] %v2450_v57  ;;  %v2134_v48 = vadd.f32 1.0, %v3368_v38  ;;  %3395 = vpow2.f32 %v2733_v11  ;;  %v2797_v15 = vmul.f32 -1.442695, %v1626_v26  ;;  %v1227_v59 = vpop.xlane.xlu1 %1226  ;;  %v4775_v6 = vadd.f32 %v4715_v47, %v3208_v41  ;;  %v3791_v57 = vld [vmem:[#allocation3 + $0x278] sm:$0xff] }
 0x1da   :  { %v1224_v17 = vpop.xlane.xlu0 %1223  ;;  %v3372_v19 = vpop.eup %3371  ;;  %v2515_v44 = vmul.f32 %v3787_v42, %v3370_v39  ;;  %3397 = vrcp.f32 %v2135_v5  ;;  %v1565_v28 = vadd.f32 %v4299_v25, %v1227_v59  ;;  %v4779_v16 = vmul.f32 %v4738_v36, %v1016_v29  ;;  %v3792_v5 = vld [vmem:[#allocation3 + $0x270] sm:$0xff] }
 0x1db   :  { %v1564_v49 = vadd.f32 %v4299_v25, %v1224_v17  ;;  %v3374_v50 = vpop.eup %3373  ;;  %v2514_v20 = vmul.f32 %v3788_v53, %v3372_v19  ;;  %3399 = vrcp.f32 %v2134_v48  ;;  %v955_v52 = vmax.f32 %v4755_v22, 0.0  ;;  %v3793_v48 = vld [vmem:[#allocation3 + $0x88] sm:$0xff]  ;;  %v3794_v19 = vld [vmem:[#allocation3 + $0x80] sm:$0xff] }
 0x1dc   :  { %v3376_v51 = vpop.eup %3375  ;;  %2643 = vst [vmem:[#allocation6 + $0x268] sm:$0xff] %v2515_v44  ;;  %v2073_v45 = vadd.f32 1.0, %v3374_v50  ;;  %3401 = vpow2.f32 %v2798_v24  ;;  %v2736_v62 = vmul.f32 -1.442695, %v1565_v28  ;;  %1520 = vadd.xlane.f32.xlu1 %v4684_v14  ;;  %v4787_v32 = vadd.f32 %v4715_v47, %v883_v2 }
 0x1dd   :  { %1517 = vadd.xlane.f32.xlu0 %v4699_v37  ;;  %v3378_v55 = vpop.eup %3377  ;;  %2642 = vst [vmem:[#allocation6 + $0x260] sm:$0xff] %v2514_v20  ;;  %v2072_v61 = vadd.f32 1.0, %v3376_v51  ;;  %3403 = vpow2.f32 %v2797_v15  ;;  %v2735_v35 = vmul.f32 -1.442695, %v1564_v49  ;;  %v1419_v60 = vpop.xlane.xlu1 %1418  ;;  %v954_v47 = vmax.f32 %v4772_v0, 0.0 }
 0x1de   :  { %v1416_v10 = vpop.xlane.xlu0 %1415  ;;  %v3380_v63 = vpop.eup %3379  ;;  %v2453_v14 = vmul.f32 %v3789_v1, %v3378_v55  ;;  %3405 = vrcp.f32 %v2073_v45  ;;  %v1629_v37 = vadd.f32 %v4299_v25, %v1419_v60  ;;  %v1019_v28 = vmax.f32 %v4775_v6, 0.0 }
 0x1df   :  { %v1628_v7 = vadd.f32 %v4299_v25, %v1416_v10  ;;  %v3382_v33 = vpop.eup %3381  ;;  %v2452_v4 = vmul.f32 %v3790_v30, %v3380_v63  ;;  %3407 = vrcp.f32 %v2072_v61  ;;  %v1531_v51 = vsel %vm1155_vm0, %v4767_v23, 0.0 }
 0x1e0   :  { %v3384_v58 = vpop.eup %3383  ;;  %2581 = vst [vmem:[#allocation6 + $0x78] sm:$0xff] %v2453_v14  ;;  %v2137_v21 = vadd.f32 1.0, %v3382_v33  ;;  %3409 = vpow2.f32 %v2736_v62  ;;  %v2800_v11 = vmul.f32 -1.442695, %v1629_v37  ;;  %1334 = vadd.xlane.f32.xlu1 %v4724_v3  ;;  %v3795_v62 = vld [vmem:[#allocation3 + $0x288] sm:$0xff]  ;;  %v1090_v10 = vmul.f32 %v4738_v36, %v955_v52 }
 0x1e1   :  { %1331 = vadd.xlane.f32.xlu0 %v1330_v43  ;;  %v3386_v27 = vpop.eup %3385  ;;  %2580 = vst [vmem:[#allocation6 + $0x70] sm:$0xff] %v2452_v4  ;;  %v2136_v46 = vadd.f32 1.0, %v3384_v58  ;;  %3411 = vpow2.f32 %v2735_v35  ;;  %v2799_v8 = vmul.f32 -1.442695, %v1628_v7  ;;  %v1233_v18 = vpop.xlane.xlu1 %1232  ;;  %v1339_v43 = vsel %vm1155_vm0, %v4741_v13, 0.0  ;;  %v3796_v35 = vld [vmem:[#allocation3 + $0x280] sm:$0xff] }
 0x1e2   :  { %v1230_v26 = vpop.xlane.xlu0 %1229  ;;  %v3388_v9 = vpop.eup %3387  ;;  %v2517_v34 = vmul.f32 %v3791_v57, %v3386_v27  ;;  %3413 = vrcp.f32 %v2137_v21  ;;  %v1567_v3 = vadd.f32 %v4299_v25, %v1233_v18  ;;  %v1089_v4 = vmul.f32 %v4738_v36, %v954_v47  ;;  %v3797_v58 = vld [vmem:[#allocation3 + $0x98] sm:$0xff] }
 0x1e3   :  { %v1566_v56 = vadd.f32 %v4299_v25, %v1230_v26  ;;  %v3390_v38 = vpop.eup %3389  ;;  %v2516_v24 = vmul.f32 %v3792_v5, %v3388_v9  ;;  %3415 = vrcp.f32 %v2136_v46  ;;  %v1528_v0 = vsel %vm1155_vm0, %v4779_v16, 0.0  ;;  %v3798_v46 = vld [vmem:[#allocation3 + $0x90] sm:$0xff] }
 0x1e4   :  { %v3392_v39 = vpop.eup %3391  ;;  %2645 = vst [vmem:[#allocation6 + $0x278] sm:$0xff] %v2517_v34  ;;  %v2455_v15 = vmul.f32 %v3793_v48, %v3390_v38  ;;  %3417 = vpow2.f32 %v2800_v11  ;;  %v2738_v59 = vmul.f32 -1.442695, %v1567_v3  ;;  %1526 = vadd.xlane.f32.xlu1 %v4733_v31  ;;  %v1154_v18 = vmul.f32 %v4738_v36, %v1019_v28 }
 0x1e5   :  { %v2737_v17 = vmul.f32 -1.442695, %v1566_v56  ;;  %1523 = vadd.xlane.f32.xlu0 %v4759_v40  ;;  %v3394_v29 = vpop.eup %3393  ;;  %2644 = vst [vmem:[#allocation6 + $0x270] sm:$0xff] %v2516_v24  ;;  %v2454_v42 = vmul.f32 %v3794_v19, %v3392_v39  ;;  %3419 = vpow2.f32 %v2799_v8  ;;  %v1425_v13 = vpop.xlane.xlu1 %1424  ;;  %v1336_v40 = vsel %vm1155_vm0, %v4764_v54, 0.0 }
 0x1e6   :  { %v1422_v44 = vpop.xlane.xlu0 %1421  ;;  %v3396_v49 = vpop.eup %3395  ;;  %2583 = vst [vmem:[#allocation6 + $0x88] sm:$0xff] %v2455_v15  ;;  %v2075_v50 = vadd.f32 1.0, %v3394_v29  ;;  %3421 = vpow2.f32 %v2738_v59  ;;  %v1631_v53 = vadd.f32 %v4299_v25, %v1425_v13  ;;  %v1018_v54 = vmax.f32 %v4787_v32, 0.0  ;;  %v3800_v59 = vld [vmem:[#allocation3 + $0x290] sm:$0xff] }
 0x1e7   :  { %v1630_v31 = vadd.f32 %v4299_v25, %v1422_v44  ;;  %v3398_v20 = vpop.eup %3397  ;;  %2582 = vst [vmem:[#allocation6 + $0x80] sm:$0xff] %v2454_v42  ;;  %v2074_v22 = vadd.f32 1.0, %v3396_v49  ;;  %3423 = vpow2.f32 %v2737_v17  ;;  %v1345_v5 = vsel %vm1155_vm0, %v1090_v10, 0.0 }
 0x1e8   :  { %v3400_v45 = vpop.eup %3399  ;;  %v2519_v12 = vmul.f32 %v3795_v62, %v3398_v20  ;;  %3425 = vrcp.f32 %v2075_v50  ;;  %v2802_v41 = vmul.f32 -1.442695, %v1631_v53  ;;  %1340 = vadd.xlane.f32.xlu1 %v1339_v43  ;;  %v1153_v26 = vmul.f32 %v4738_v36, %v1018_v54  ;;  %v3799_v36 = vld [vmem:[#allocation3 + $0x298] sm:$0xff] }
 0x1e9   :  { %v2801_v55 = vmul.f32 -1.442695, %v1630_v31  ;;  %1337 = vadd.xlane.f32.xlu0 %v1336_v40  ;;  %v3402_v61 = vpop.eup %3401  ;;  %v2518_v60 = vmul.f32 %v3796_v35, %v3400_v45  ;;  %3427 = vrcp.f32 %v2074_v22  ;;  %v1239_v63 = vpop.xlane.xlu1 %1238  ;;  %v1342_v24 = vsel %vm1155_vm0, %v1089_v4, 0.0 }
 0x1ea   :  { %v1236_v1 = vpop.xlane.xlu0 %1235  ;;  %v3404_v14 = vpop.eup %3403  ;;  %2647 = vst [vmem:[#allocation6 + $0x288] sm:$0xff] %v2519_v12  ;;  %v2139_v23 = vadd.f32 1.0, %v3402_v61  ;;  %3429 = vpow2.f32 %v2802_v41  ;;  %v1569_v37 = vadd.f32 %v4299_v25, %v1239_v63  ;;  %v1537_v50 = vsel %vm1155_vm0, %v1154_v18, 0.0  ;;  %v3802_v63 = vld [vmem:[#allocation3 + $0xa0] sm:$0xff] }
 0x1eb   :  { %v1568_v7 = vadd.f32 %v4299_v25, %v1236_v1  ;;  %v3406_v33 = vpop.eup %3405  ;;  %2646 = vst [vmem:[#allocation6 + $0x280] sm:$0xff] %v2518_v60  ;;  %v2138_v30 = vadd.f32 1.0, %v3404_v14  ;;  %3431 = vpow2.f32 %v2801_v55  ;;  %v1534_v53 = vsel %vm1155_vm0, %v1153_v26, 0.0  ;;  %v3801_v55 = vld [vmem:[#allocation3 + $0xa8] sm:$0xff] }
 0x1ec   :  { %v3408_v6 = vpop.eup %3407  ;;  %v2457_v21 = vmul.f32 %v3797_v58, %v3406_v33  ;;  %3433 = vrcp.f32 %v2139_v23  ;;  %v2740_v11 = vmul.f32 -1.442695, %v1569_v37  ;;  %1532 = vadd.xlane.f32.xlu1 %v1531_v51 }
 0x1ed   :  { %v2739_v2 = vmul.f32 -1.442695, %v1568_v7  ;;  %1529 = vadd.xlane.f32.xlu0 %v1528_v0  ;;  %v3410_v27 = vpop.eup %3409  ;;  %v2456_v8 = vmul.f32 %v3798_v46, %v3408_v6  ;;  %3435 = vrcp.f32 %v2138_v30  ;;  %v1431_v52 = vpop.xlane.xlu1 %1430  ;;  %v3803_v6 = vld [vmem:[#allocation3 + $0x2a8] sm:$0xff] }
 0x1ee   :  { %v1428_v9 = vpop.xlane.xlu0 %1427  ;;  %v3412_v57 = vpop.eup %3411  ;;  %2585 = vst [vmem:[#allocation6 + $0x98] sm:$0xff] %v2457_v21  ;;  %v2077_v16 = vadd.f32 1.0, %v3410_v27  ;;  %3437 = vpow2.f32 %v2740_v11  ;;  %v1633_v34 = vadd.f32 %v4299_v25, %v1431_v52  ;;  %v3804_v27 = vld [vmem:[#allocation3 + $0x2a0] sm:$0xff] }
 0x1ef   :  { %v1632_v3 = vadd.f32 %v4299_v25, %v1428_v9  ;;  %v3414_v56 = vpop.eup %3413  ;;  %2584 = vst [vmem:[#allocation6 + $0x90] sm:$0xff] %v2456_v8  ;;  %v2076_v38 = vadd.f32 1.0, %v3412_v57  ;;  %3439 = vpow2.f32 %v2739_v2 }
 0x1f0   :  { %v3416_v43 = vpop.eup %3415  ;;  %v2521_v32 = vmul.f32 %v3799_v36, %v3414_v56  ;;  %3441 = vrcp.f32 %v2077_v16  ;;  %v2804_v39 = vmul.f32 -1.442695, %v1633_v34  ;;  %1346 = vadd.xlane.f32.xlu1 %v1345_v5  ;;  %v3805_v56 = vld [vmem:[#allocation3 + $0xb8] sm:$0xff]  ;;  %v3806_v36 = vld [vmem:[#allocation3 + $0xb0] sm:$0xff] }
 0x1f1   :  { %v2803_v48 = vmul.f32 -1.442695, %v1632_v3  ;;  %1343 = vadd.xlane.f32.xlu0 %v1342_v24  ;;  %v3418_v15 = vpop.eup %3417  ;;  %v2520_v17 = vmul.f32 %v3800_v59, %v3416_v43  ;;  %3443 = vrcp.f32 %v2076_v38  ;;  %v1245_v29 = vpop.xlane.xlu1 %1244 }
 0x1f2   :  { %v1242_v19 = vpop.xlane.xlu0 %1241  ;;  %v3420_v42 = vpop.eup %3419  ;;  %2649 = vst [vmem:[#allocation6 + $0x298] sm:$0xff] %v2521_v32  ;;  %v2141_v13 = vadd.f32 1.0, %v3418_v15  ;;  %3445 = vpow2.f32 %v2804_v39  ;;  %v1571_v44 = vadd.f32 %v4299_v25, %v1245_v29 }
 0x1f3   :  { %v1570_v47 = vadd.f32 %v4299_v25, %v1242_v19  ;;  %v3422_v28 = vpop.eup %3421  ;;  %2648 = vst [vmem:[#allocation6 + $0x290] sm:$0xff] %v2520_v17  ;;  %v2140_v49 = vadd.f32 1.0, %v3420_v42  ;;  %3447 = vpow2.f32 %v2803_v48 }
 0x1f4   :  { %v3424_v31 = vpop.eup %3423  ;;  %3449 = vrcp.f32 %v2141_v13  ;;  %v2079_v20 = vadd.f32 1.0, %v3422_v28  ;;  %v2742_v22 = vmul.f32 -1.442695, %v1571_v44  ;;  %1538 = vadd.xlane.f32.xlu1 %v1537_v50  ;;  %v3807_v44 = vld [vmem:[#allocation3 + $0x2b8] sm:$0xff] }
 0x1f5   :  { %1535 = vadd.xlane.f32.xlu0 %v1534_v53  ;;  %v3426_v40 = vpop.eup %3425  ;;  %3451 = vrcp.f32 %v2140_v49  ;;  %v2078_v51 = vadd.f32 1.0, %v3424_v31  ;;  %v2741_v45 = vmul.f32 -1.442695, %v1570_v47  ;;  %v1437_v62 = vpop.xlane.xlu1 %1436  ;;  %v3808_v53 = vld [vmem:[#allocation3 + $0x2b0] sm:$0xff] }
 0x1f6   :  { %v1434_v12 = vpop.xlane.xlu0 %1433  ;;  %v3428_v41 = vpop.eup %3427  ;;  %v2459_v61 = vmul.f32 %v3801_v55, %v3426_v40  ;;  %3453 = vrcp.f32 %v2079_v20  ;;  %v1635_v35 = vadd.f32 %v4299_v25, %v1437_v62 }
 0x1f7   :  { %v1634_v60 = vadd.f32 %v4299_v25, %v1434_v12  ;;  %v3430_v10 = vpop.eup %3429  ;;  %v2458_v1 = vmul.f32 %v3802_v63, %v3428_v41  ;;  %3455 = vrcp.f32 %v2078_v51  ;;  %v3810_v12 = vld [vmem:[#allocation3 + $0xc0] sm:$0xff] }
 0x1f8   :  { %v3432_v54 = vpop.eup %3431  ;;  %2587 = vst [vmem:[#allocation6 + $0xa8] sm:$0xff] %v2459_v61  ;;  %v2143_v14 = vadd.f32 1.0, %v3430_v10  ;;  %3457 = vpow2.f32 %v2742_v22  ;;  %v2806_v23 = vmul.f32 -1.442695, %v1635_v35  ;;  %v3809_v22 = vld [vmem:[#allocation3 + $0xc8] sm:$0xff] }
 0x1f9   :  { %v3434_v37 = vpop.eup %3433  ;;  %2586 = vst [vmem:[#allocation6 + $0xa0] sm:$0xff] %v2458_v1  ;;  %v2142_v7 = vadd.f32 1.0, %v3432_v54  ;;  %3459 = vpow2.f32 %v2741_v45  ;;  %v2805_v33 = vmul.f32 -1.442695, %v1634_v60  ;;  %v1251_v30 = vpop.xlane.xlu1 %1250 }
 0x1fa   :  { %v1248_v4 = vpop.xlane.xlu0 %1247  ;;  %v3436_v0 = vpop.eup %3435  ;;  %v2523_v58 = vmul.f32 %v3803_v6, %v3434_v37  ;;  %3461 = vrcp.f32 %v2143_v14  ;;  %v1573_v21 = vadd.f32 %v4299_v25, %v1251_v30 }
 0x1fb   :  { %v1572_v11 = vadd.f32 %v4299_v25, %v1248_v4  ;;  %v3438_v2 = vpop.eup %3437  ;;  %v2522_v46 = vmul.f32 %v3804_v27, %v3436_v0  ;;  %3463 = vrcp.f32 %v2142_v7  ;;  %v3812_v4 = vld [vmem:[#allocation3 + $0x2c0] sm:$0xff] }
 0x1fc   :  { %v3440_v8 = vpop.eup %3439  ;;  %2651 = vst [vmem:[#allocation6 + $0x2a8] sm:$0xff] %v2523_v58  ;;  %v2081_v18 = vadd.f32 1.0, %v3438_v2  ;;  %3465 = vpow2.f32 %v2806_v23  ;;  %v2744_v26 = vmul.f32 -1.442695, %v1573_v21  ;;  %v3811_v23 = vld [vmem:[#allocation3 + $0x2c8] sm:$0xff] }
 0x1fd   :  { %v3442_v52 = vpop.eup %3441  ;;  %2650 = vst [vmem:[#allocation6 + $0x2a0] sm:$0xff] %v2522_v46  ;;  %v2080_v9 = vadd.f32 1.0, %v3440_v8  ;;  %3467 = vpow2.f32 %v2805_v33  ;;  %v2743_v57 = vmul.f32 -1.442695, %v1572_v11  ;;  %v1443_v16 = vpop.xlane.xlu1 %1442 }
 0x1fe   :  { %v1440_v34 = vpop.xlane.xlu0 %1439  ;;  %v3444_v3 = vpop.eup %3443  ;;  %v2461_v38 = vmul.f32 %v3805_v56, %v3442_v52  ;;  %3469 = vrcp.f32 %v2081_v18  ;;  %v1637_v5 = vadd.f32 %v4299_v25, %v1443_v16 }
 0x1ff   :  { %v1636_v24 = vadd.f32 %v4299_v25, %v1440_v34  ;;  %v3446_v43 = vpop.eup %3445  ;;  %v2460_v32 = vmul.f32 %v3806_v36, %v3444_v3  ;;  %3471 = vrcp.f32 %v2080_v9  ;;  %v3814_v34 = vld [vmem:[#allocation3 + $0xd0] sm:$0xff] }
 0x200   :  { %v3448_v39 = vpop.eup %3447  ;;  %2589 = vst [vmem:[#allocation6 + $0xb8] sm:$0xff] %v2461_v38  ;;  %v2145_v48 = vadd.f32 1.0, %v3446_v43  ;;  %3473 = vpow2.f32 %v2744_v26  ;;  %v2808_v15 = vmul.f32 -1.442695, %v1637_v5  ;;  %v3813_v26 = vld [vmem:[#allocation3 + $0xd8] sm:$0xff] }
 0x201   :  { %v3450_v59 = vpop.eup %3449  ;;  %2588 = vst [vmem:[#allocation6 + $0xb0] sm:$0xff] %v2460_v32  ;;  %v2144_v17 = vadd.f32 1.0, %v3448_v39  ;;  %3475 = vpow2.f32 %v2743_v57  ;;  %v2807_v29 = vmul.f32 -1.442695, %v1636_v24  ;;  %v1257_v19 = vpop.xlane.xlu1 %1256 }
 0x202   :  { %v1254_v42 = vpop.xlane.xlu0 %1253  ;;  %v3452_v13 = vpop.eup %3451  ;;  %v2525_v47 = vmul.f32 %v3807_v44, %v3450_v59  ;;  %3477 = vrcp.f32 %v2145_v48  ;;  %v1575_v28 = vadd.f32 %v4299_v25, %v1257_v19 }
 0x203   :  { %v1574_v49 = vadd.f32 %v4299_v25, %v1254_v42  ;;  %v3454_v50 = vpop.eup %3453  ;;  %v2524_v31 = vmul.f32 %v3808_v53, %v3452_v13  ;;  %3479 = vrcp.f32 %v2144_v17  ;;  %v3816_v42 = vld [vmem:[#allocation3 + $0x2d0] sm:$0xff] }
 0x204   :  { %v3456_v20 = vpop.eup %3455  ;;  %2653 = vst [vmem:[#allocation6 + $0x2b8] sm:$0xff] %v2525_v47  ;;  %v2463_v40 = vmul.f32 %v3809_v22, %v3454_v50  ;;  %3481 = vpow2.f32 %v2808_v15  ;;  %v2746_v51 = vmul.f32 -1.442695, %v1575_v28  ;;  %v3815_v15 = vld [vmem:[#allocation3 + $0x2d8] sm:$0xff] }
 0x205   :  { %v2745_v45 = vmul.f32 -1.442695, %v1574_v49  ;;  %v3458_v62 = vpop.eup %3457  ;;  %2652 = vst [vmem:[#allocation6 + $0x2b0] sm:$0xff] %v2524_v31  ;;  %v2462_v41 = vmul.f32 %v3810_v12, %v3456_v20  ;;  %3483 = vpow2.f32 %v2807_v29  ;;  %v1449_v55 = vpop.xlane.xlu1 %1448 }
 0x206   :  { %v1446_v61 = vpop.xlane.xlu0 %1445  ;;  %v3460_v35 = vpop.eup %3459  ;;  %2591 = vst [vmem:[#allocation6 + $0xc8] sm:$0xff] %v2463_v40  ;;  %v2083_v60 = vadd.f32 1.0, %v3458_v62  ;;  %3485 = vpow2.f32 %v2746_v51  ;;  %v1639_v10 = vadd.f32 %v4299_v25, %v1449_v55 }
 0x207   :  { %v1638_v63 = vadd.f32 %v4299_v25, %v1446_v61  ;;  %v3462_v1 = vpop.eup %3461  ;;  %2590 = vst [vmem:[#allocation6 + $0xc0] sm:$0xff] %v2462_v41  ;;  %v2082_v54 = vadd.f32 1.0, %v3460_v35  ;;  %3487 = vpow2.f32 %v2745_v45  ;;  %v3817_v35 = vld [vmem:[#allocation3 + $0xe8] sm:$0xff] }
 0x208   :  { %v3464_v14 = vpop.eup %3463  ;;  %v2527_v37 = vmul.f32 %v3811_v23, %v3462_v1  ;;  %3489 = vrcp.f32 %v2083_v60  ;;  %v2810_v7 = vmul.f32 -1.442695, %v1639_v10 }
 0x209   :  { %v2809_v33 = vmul.f32 -1.442695, %v1638_v63  ;;  %v3466_v30 = vpop.eup %3465  ;;  %v2526_v0 = vmul.f32 %v3812_v4, %v3464_v14  ;;  %3491 = vrcp.f32 %v2082_v54  ;;  %v1263_v6 = vpop.xlane.xlu1 %1262  ;;  %v3818_v54 = vld [vmem:[#allocation3 + $0xe0] sm:$0xff] }
 0x20a   :  { %v1260_v58 = vpop.xlane.xlu0 %1259  ;;  %v3468_v21 = vpop.eup %3467  ;;  %2655 = vst [vmem:[#allocation6 + $0x2c8] sm:$0xff] %v2527_v37  ;;  %v2147_v11 = vadd.f32 1.0, %v3466_v30  ;;  %3493 = vpow2.f32 %v2810_v7  ;;  %v1577_v2 = vadd.f32 %v4299_v25, %v1263_v6 }
 0x20b   :  { %v1576_v27 = vadd.f32 %v4299_v25, %v1260_v58  ;;  %v3470_v46 = vpop.eup %3469  ;;  %2654 = vst [vmem:[#allocation6 + $0x2c0] sm:$0xff] %v2526_v0  ;;  %v2146_v8 = vadd.f32 1.0, %v3468_v21  ;;  %3495 = vpow2.f32 %v2809_v33  ;;  %v3819_v21 = vld [vmem:[#allocation3 + $0x2e8] sm:$0xff] }
 0x20c   :  { %v3472_v18 = vpop.eup %3471  ;;  %v2465_v52 = vmul.f32 %v3813_v26, %v3470_v46  ;;  %3497 = vrcp.f32 %v2147_v11  ;;  %v2748_v9 = vmul.f32 -1.442695, %v1577_v2 }
 0x20d   :  { %v2747_v57 = vmul.f32 -1.442695, %v1576_v27  ;;  %v3474_v16 = vpop.eup %3473  ;;  %v2464_v3 = vmul.f32 %v3814_v34, %v3472_v18  ;;  %3499 = vrcp.f32 %v2146_v8  ;;  %v1455_v56 = vpop.xlane.xlu1 %1454  ;;  %v3820_v8 = vld [vmem:[#allocation3 + $0x2e0] sm:$0xff] }
 0x20e   :  { %v1452_v38 = vpop.xlane.xlu0 %1451  ;;  %v3476_v5 = vpop.eup %3475  ;;  %2593 = vst [vmem:[#allocation6 + $0xd8] sm:$0xff] %v2465_v52  ;;  %v2085_v24 = vadd.f32 1.0, %v3474_v16  ;;  %3501 = vpow2.f32 %v2748_v9  ;;  %v1641_v43 = vadd.f32 %v4299_v25, %v1455_v56 }
 0x20f   :  { %v1640_v36 = vadd.f32 %v4299_v25, %v1452_v38  ;;  %v3478_v32 = vpop.eup %3477  ;;  %2592 = vst [vmem:[#allocation6 + $0xd0] sm:$0xff] %v2464_v3  ;;  %v2084_v39 = vadd.f32 1.0, %v3476_v5  ;;  %3503 = vpow2.f32 %v2747_v57  ;;  %v3821_v5 = vld [vmem:[#allocation3 + $0xf8] sm:$0xff] }
 0x210   :  { %v3480_v48 = vpop.eup %3479  ;;  %v2529_v59 = vmul.f32 %v3815_v15, %v3478_v32  ;;  %3505 = vrcp.f32 %v2085_v24  ;;  %v2812_v17 = vmul.f32 -1.442695, %v1641_v43 }
 0x211   :  { %v2811_v29 = vmul.f32 -1.442695, %v1640_v36  ;;  %v3482_v19 = vpop.eup %3481  ;;  %v2528_v13 = vmul.f32 %v3816_v42, %v3480_v48  ;;  %3507 = vrcp.f32 %v2084_v39  ;;  %v1269_v44 = vpop.xlane.xlu1 %1268  ;;  %v3822_v39 = vld [vmem:[#allocation3 + $0xf0] sm:$0xff] }
 0x212   :  { %v1266_v47 = vpop.xlane.xlu0 %1265  ;;  %v3484_v28 = vpop.eup %3483  ;;  %2657 = vst [vmem:[#allocation6 + $0x2d8] sm:$0xff] %v2529_v59  ;;  %v2149_v49 = vadd.f32 1.0, %v3482_v19  ;;  %3509 = vpow2.f32 %v2812_v17  ;;  %v1579_v50 = vadd.f32 %v4299_v25, %v1269_v44 }
 0x213   :  { %v1578_v53 = vadd.f32 %v4299_v25, %v1266_v47  ;;  %v3486_v31 = vpop.eup %3485  ;;  %2656 = vst [vmem:[#allocation6 + $0x2d0] sm:$0xff] %v2528_v13  ;;  %v2148_v20 = vadd.f32 1.0, %v3484_v28  ;;  %3511 = vpow2.f32 %v2811_v29  ;;  %v3823_v28 = vld [vmem:[#allocation3 + $0x2f8] sm:$0xff] }
 0x214   :  { %v3488_v22 = vpop.eup %3487  ;;  %3513 = vrcp.f32 %v2149_v49  ;;  %v2087_v40 = vadd.f32 1.0, %v3486_v31  ;;  %v2750_v51 = vmul.f32 -1.442695, %v1579_v50 }
 0x215   :  { %v3490_v45 = vpop.eup %3489  ;;  %3515 = vrcp.f32 %v2148_v20  ;;  %v2086_v62 = vadd.f32 1.0, %v3488_v22  ;;  %v2749_v12 = vmul.f32 -1.442695, %v1578_v53  ;;  %v1461_v41 = vpop.xlane.xlu1 %1460  ;;  %v3824_v20 = vld [vmem:[#allocation3 + $0x2f0] sm:$0xff] }
 0x216   :  { %v1458_v55 = vpop.xlane.xlu0 %1457  ;;  %v3492_v61 = vpop.eup %3491  ;;  %v2467_v60 = vmul.f32 %v3817_v35, %v3490_v45  ;;  %3517 = vrcp.f32 %v2087_v40  ;;  %v1643_v10 = vadd.f32 %v4299_v25, %v1461_v41 }
 0x217   :  { %v1642_v63 = vadd.f32 %v4299_v25, %v1458_v55  ;;  %v3494_v1 = vpop.eup %3493  ;;  %v2466_v14 = vmul.f32 %v3818_v54, %v3492_v61  ;;  %3519 = vrcp.f32 %v2086_v62  ;;  %v3826_v55 = vld [vmem:[#allocation3 + $0x100] sm:$0xff] }
 0x218   :  { %v3496_v23 = vpop.eup %3495  ;;  %2595 = vst [vmem:[#allocation6 + $0xe8] sm:$0xff] %v2467_v60  ;;  %v2151_v37 = vadd.f32 1.0, %v3494_v1  ;;  %3521 = vpow2.f32 %v2750_v51  ;;  %v2814_v7 = vmul.f32 -1.442695, %v1643_v10  ;;  %v3825_v51 = vld [vmem:[#allocation3 + $0x108] sm:$0xff] }
 0x219   :  { %v3498_v33 = vpop.eup %3497  ;;  %2594 = vst [vmem:[#allocation6 + $0xe0] sm:$0xff] %v2466_v14  ;;  %v2150_v30 = vadd.f32 1.0, %v3496_v23  ;;  %3523 = vpow2.f32 %v2749_v12  ;;  %v2813_v4 = vmul.f32 -1.442695, %v1642_v63  ;;  %v1275_v0 = vpop.xlane.xlu1 %1274 }
 0x21a   :  { %v1272_v6 = vpop.xlane.xlu0 %1271  ;;  %v3500_v58 = vpop.eup %3499  ;;  %v2531_v11 = vmul.f32 %v3819_v21, %v3498_v33  ;;  %3525 = vrcp.f32 %v2151_v37  ;;  %v1581_v2 = vadd.f32 %v4299_v25, %v1275_v0 }
 0x21b   :  { %v1580_v27 = vadd.f32 %v4299_v25, %v1272_v6  ;;  %v3502_v46 = vpop.eup %3501  ;;  %v2530_v18 = vmul.f32 %v3820_v8, %v3500_v58  ;;  %3527 = vrcp.f32 %v2150_v30  ;;  %v3828_v6 = vld [vmem:[#allocation3 + $0x300] sm:$0xff] }
 0x21c   :  { %v3504_v26 = vpop.eup %3503  ;;  %2659 = vst [vmem:[#allocation6 + $0x2e8] sm:$0xff] %v2531_v11  ;;  %v2089_v52 = vadd.f32 1.0, %v3502_v46  ;;  %3529 = vpow2.f32 %v2814_v7  ;;  %v2752_v9 = vmul.f32 -1.442695, %v1581_v2  ;;  %v3827_v7 = vld [vmem:[#allocation3 + $0x308] sm:$0xff] }
 0x21d   :  { %v3506_v57 = vpop.eup %3505  ;;  %2658 = vst [vmem:[#allocation6 + $0x2e0] sm:$0xff] %v2530_v18  ;;  %v2088_v16 = vadd.f32 1.0, %v3504_v26  ;;  %3531 = vpow2.f32 %v2813_v4  ;;  %v2751_v34 = vmul.f32 -1.442695, %v1580_v27  ;;  %v1467_v3 = vpop.xlane.xlu1 %1466 }
 0x21e   :  { %v1464_v56 = vpop.xlane.xlu0 %1463  ;;  %v3508_v38 = vpop.eup %3507  ;;  %v2469_v24 = vmul.f32 %v3821_v5, %v3506_v57  ;;  %3533 = vrcp.f32 %v2089_v52  ;;  %v1645_v43 = vadd.f32 %v4299_v25, %v1467_v3 }
 0x21f   :  { %v1644_v36 = vadd.f32 %v4299_v25, %v1464_v56  ;;  %v3510_v32 = vpop.eup %3509  ;;  %v2468_v48 = vmul.f32 %v3822_v39, %v3508_v38  ;;  %3535 = vrcp.f32 %v2088_v16  ;;  %v3830_v56 = vld [vmem:[#allocation3 + $0x110] sm:$0xff] }
 0x220   :  { %v3512_v15 = vpop.eup %3511  ;;  %2597 = vst [vmem:[#allocation6 + $0xf8] sm:$0xff] %v2469_v24  ;;  %v2153_v59 = vadd.f32 1.0, %v3510_v32  ;;  %3537 = vpow2.f32 %v2752_v9  ;;  %v2816_v17 = vmul.f32 -1.442695, %v1645_v43  ;;  %v3829_v9 = vld [vmem:[#allocation3 + $0x118] sm:$0xff] }
 0x221   :  { %v3514_v29 = vpop.eup %3513  ;;  %2596 = vst [vmem:[#allocation6 + $0xf0] sm:$0xff] %v2468_v48  ;;  %v2152_v19 = vadd.f32 1.0, %v3512_v15  ;;  %3539 = vpow2.f32 %v2751_v34  ;;  %v2815_v42 = vmul.f32 -1.442695, %v1644_v36  ;;  %v1281_v13 = vpop.xlane.xlu1 %1280 }
 0x222   :  { %v1278_v44 = vpop.xlane.xlu0 %1277  ;;  %v3516_v47 = vpop.eup %3515  ;;  %v2533_v49 = vmul.f32 %v3823_v28, %v3514_v29  ;;  %3541 = vrcp.f32 %v2153_v59  ;;  %v1583_v50 = vadd.f32 %v4299_v25, %v1281_v13 }
 0x223   :  { %v1582_v53 = vadd.f32 %v4299_v25, %v1278_v44  ;;  %v3518_v31 = vpop.eup %3517  ;;  %v2532_v22 = vmul.f32 %v3824_v20, %v3516_v47  ;;  %3543 = vrcp.f32 %v2152_v19  ;;  %v3832_v44 = vld [vmem:[#allocation3 + $0x310] sm:$0xff] }
 0x224   :  { %v3520_v40 = vpop.eup %3519  ;;  %2661 = vst [vmem:[#allocation6 + $0x2f8] sm:$0xff] %v2533_v49  ;;  %v2471_v45 = vmul.f32 %v3825_v51, %v3518_v31  ;;  %3545 = vpow2.f32 %v2816_v17  ;;  %v2754_v62 = vmul.f32 -1.442695, %v1583_v50  ;;  %v3831_v17 = vld [vmem:[#allocation3 + $0x318] sm:$0xff] }
 0x225   :  { %v2753_v12 = vmul.f32 -1.442695, %v1582_v53  ;;  %v3522_v41 = vpop.eup %3521  ;;  %2660 = vst [vmem:[#allocation6 + $0x2f0] sm:$0xff] %v2532_v22  ;;  %v2470_v61 = vmul.f32 %v3826_v55, %v3520_v40  ;;  %3547 = vpow2.f32 %v2815_v42  ;;  %v1473_v35 = vpop.xlane.xlu1 %1472 }
 0x226   :  { %v1470_v60 = vpop.xlane.xlu0 %1469  ;;  %v3524_v10 = vpop.eup %3523  ;;  %2599 = vst [vmem:[#allocation6 + $0x108] sm:$0xff] %v2471_v45  ;;  %v2091_v63 = vadd.f32 1.0, %v3522_v41  ;;  %3549 = vpow2.f32 %v2754_v62  ;;  %v1647_v1 = vadd.f32 %v4299_v25, %v1473_v35 }
 0x227   :  { %v1646_v54 = vadd.f32 %v4299_v25, %v1470_v60  ;;  %v3526_v14 = vpop.eup %3525  ;;  %2598 = vst [vmem:[#allocation6 + $0x100] sm:$0xff] %v2470_v61  ;;  %v2090_v23 = vadd.f32 1.0, %v3524_v10  ;;  %3551 = vpow2.f32 %v2753_v12  ;;  %v3833_v10 = vld [vmem:[#allocation3 + $0x128] sm:$0xff] }
 0x228   :  { %v3528_v37 = vpop.eup %3527  ;;  %v2535_v33 = vmul.f32 %v3827_v7, %v3526_v14  ;;  %3553 = vrcp.f32 %v2091_v63  ;;  %v2818_v30 = vmul.f32 -1.442695, %v1647_v1 }
 0x229   :  { %v2817_v4 = vmul.f32 -1.442695, %v1646_v54  ;;  %v3530_v0 = vpop.eup %3529  ;;  %v2534_v58 = vmul.f32 %v3828_v6, %v3528_v37  ;;  %3555 = vrcp.f32 %v2090_v23  ;;  %v1287_v21 = vpop.xlane.xlu1 %1286  ;;  %v3834_v23 = vld [vmem:[#allocation3 + $0x120] sm:$0xff] }
 0x22a   :  { %v1284_v11 = vpop.xlane.xlu0 %1283  ;;  %v3532_v2 = vpop.eup %3531  ;;  %2663 = vst [vmem:[#allocation6 + $0x308] sm:$0xff] %v2535_v33  ;;  %v2155_v27 = vadd.f32 1.0, %v3530_v0  ;;  %3557 = vpow2.f32 %v2818_v30  ;;  %v1585_v46 = vadd.f32 %v4299_v25, %v1287_v21 }
 0x22b   :  { %v1584_v8 = vadd.f32 %v4299_v25, %v1284_v11  ;;  %v3534_v18 = vpop.eup %3533  ;;  %2662 = vst [vmem:[#allocation6 + $0x300] sm:$0xff] %v2534_v58  ;;  %v2154_v26 = vadd.f32 1.0, %v3532_v2  ;;  %3559 = vpow2.f32 %v2817_v4  ;;  %v3835_v2 = vld [vmem:[#allocation3 + $0x328] sm:$0xff] }
 0x22c   :  { %v3536_v52 = vpop.eup %3535  ;;  %v2473_v57 = vmul.f32 %v3829_v9, %v3534_v18  ;;  %3561 = vrcp.f32 %v2155_v27  ;;  %v2756_v16 = vmul.f32 -1.442695, %v1585_v46 }
 0x22d   :  { %v2755_v34 = vmul.f32 -1.442695, %v1584_v8  ;;  %v3538_v3 = vpop.eup %3537  ;;  %v2472_v38 = vmul.f32 %v3830_v56, %v3536_v52  ;;  %3563 = vrcp.f32 %v2154_v26  ;;  %v1479_v5 = vpop.xlane.xlu1 %1478  ;;  %v3836_v26 = vld [vmem:[#allocation3 + $0x320] sm:$0xff] }
 0x22e   :  { %v1476_v24 = vpop.xlane.xlu0 %1475  ;;  %v3540_v43 = vpop.eup %3539  ;;  %2601 = vst [vmem:[#allocation6 + $0x118] sm:$0xff] %v2473_v57  ;;  %v2093_v36 = vadd.f32 1.0, %v3538_v3  ;;  %3565 = vpow2.f32 %v2756_v16  ;;  %v1649_v32 = vadd.f32 %v4299_v25, %v1479_v5 }
 0x22f   :  { %v1648_v39 = vadd.f32 %v4299_v25, %v1476_v24  ;;  %v3542_v48 = vpop.eup %3541  ;;  %2600 = vst [vmem:[#allocation6 + $0x110] sm:$0xff] %v2472_v38  ;;  %v2092_v15 = vadd.f32 1.0, %v3540_v43  ;;  %3567 = vpow2.f32 %v2755_v34  ;;  %v3837_v43 = vld [vmem:[#allocation3 + $0x138] sm:$0xff] }
 0x230   :  { %v3544_v59 = vpop.eup %3543  ;;  %v2537_v29 = vmul.f32 %v3831_v17, %v3542_v48  ;;  %3569 = vrcp.f32 %v2093_v36  ;;  %v2820_v19 = vmul.f32 -1.442695, %v1649_v32 }
 0x231   :  { %v2819_v42 = vmul.f32 -1.442695, %v1648_v39  ;;  %v3546_v13 = vpop.eup %3545  ;;  %v2536_v47 = vmul.f32 %v3832_v44, %v3544_v59  ;;  %3571 = vrcp.f32 %v2092_v15  ;;  %v1293_v28 = vpop.xlane.xlu1 %1292  ;;  %v3838_v15 = vld [vmem:[#allocation3 + $0x130] sm:$0xff] }
 0x232   :  { %v1290_v49 = vpop.xlane.xlu0 %1289  ;;  %v3548_v50 = vpop.eup %3547  ;;  %2665 = vst [vmem:[#allocation6 + $0x318] sm:$0xff] %v2537_v29  ;;  %v2157_v53 = vadd.f32 1.0, %v3546_v13  ;;  %3573 = vpow2.f32 %v2820_v19  ;;  %v1587_v31 = vadd.f32 %v4299_v25, %v1293_v28 }
 0x233   :  { %v1586_v20 = vadd.f32 %v4299_v25, %v1290_v49  ;;  %v3550_v22 = vpop.eup %3549  ;;  %2664 = vst [vmem:[#allocation6 + $0x310] sm:$0xff] %v2536_v47  ;;  %v2156_v40 = vadd.f32 1.0, %v3548_v50  ;;  %3575 = vpow2.f32 %v2819_v42  ;;  %v3839_v50 = vld [vmem:[#allocation3 + $0x338] sm:$0xff] }
 0x234   :  { %v3552_v51 = vpop.eup %3551  ;;  %3577 = vrcp.f32 %v2157_v53  ;;  %v2095_v45 = vadd.f32 1.0, %v3550_v22  ;;  %v2758_v62 = vmul.f32 -1.442695, %v1587_v31 }
 0x235   :  { %v3554_v12 = vpop.eup %3553  ;;  %3579 = vrcp.f32 %v2156_v40  ;;  %v2094_v41 = vadd.f32 1.0, %v3552_v51  ;;  %v2757_v55 = vmul.f32 -1.442695, %v1586_v20  ;;  %v1485_v61 = vpop.xlane.xlu1 %1484  ;;  %v3840_v40 = vld [vmem:[#allocation3 + $0x330] sm:$0xff] }
 0x236   :  { %v1482_v35 = vpop.xlane.xlu0 %1481  ;;  %v3556_v60 = vpop.eup %3555  ;;  %v2475_v63 = vmul.f32 %v3833_v10, %v3554_v12  ;;  %3581 = vrcp.f32 %v2095_v45  ;;  %v1651_v1 = vadd.f32 %v4299_v25, %v1485_v61 }
 0x237   :  { %v1650_v54 = vadd.f32 %v4299_v25, %v1482_v35  ;;  %v3558_v14 = vpop.eup %3557  ;;  %v2474_v37 = vmul.f32 %v3834_v23, %v3556_v60  ;;  %3583 = vrcp.f32 %v2094_v41  ;;  %v3842_v35 = vld [vmem:[#allocation3 + $0x140] sm:$0xff] }
 0x238   :  { %v3560_v7 = vpop.eup %3559  ;;  %2603 = vst [vmem:[#allocation6 + $0x128] sm:$0xff] %v2475_v63  ;;  %v2159_v33 = vadd.f32 1.0, %v3558_v14  ;;  %3585 = vpow2.f32 %v2758_v62  ;;  %v2822_v30 = vmul.f32 -1.442695, %v1651_v1  ;;  %v3841_v62 = vld [vmem:[#allocation3 + $0x148] sm:$0xff] }
 0x239   :  { %v3562_v4 = vpop.eup %3561  ;;  %2602 = vst [vmem:[#allocation6 + $0x120] sm:$0xff] %v2474_v37  ;;  %v2158_v0 = vadd.f32 1.0, %v3560_v7  ;;  %3587 = vpow2.f32 %v2757_v55  ;;  %v2821_v6 = vmul.f32 -1.442695, %v1650_v54  ;;  %v1299_v58 = vpop.xlane.xlu1 %1298 }
 0x23a   :  { %v1296_v21 = vpop.xlane.xlu0 %1295  ;;  %v3564_v11 = vpop.eup %3563  ;;  %v2539_v27 = vmul.f32 %v3835_v2, %v3562_v4  ;;  %3589 = vrcp.f32 %v2159_v33  ;;  %v1589_v46 = vadd.f32 %v4299_v25, %v1299_v58 }
 0x23b   :  { %v1588_v8 = vadd.f32 %v4299_v25, %v1296_v21  ;;  %v3566_v18 = vpop.eup %3565  ;;  %v2538_v52 = vmul.f32 %v3836_v26, %v3564_v11  ;;  %3591 = vrcp.f32 %v2158_v0  ;;  %v3844_v21 = vld [vmem:[#allocation3 + $0x340] sm:$0xff] }
 0x23c   :  { %v3568_v9 = vpop.eup %3567  ;;  %2667 = vst [vmem:[#allocation6 + $0x328] sm:$0xff] %v2539_v27  ;;  %v2097_v57 = vadd.f32 1.0, %v3566_v18  ;;  %3593 = vpow2.f32 %v2822_v30  ;;  %v2760_v16 = vmul.f32 -1.442695, %v1589_v46  ;;  %v3843_v30 = vld [vmem:[#allocation3 + $0x348] sm:$0xff] }
 0x23d   :  { %v3570_v34 = vpop.eup %3569  ;;  %2666 = vst [vmem:[#allocation6 + $0x320] sm:$0xff] %v2538_v52  ;;  %v2096_v3 = vadd.f32 1.0, %v3568_v9  ;;  %3595 = vpow2.f32 %v2821_v6  ;;  %v2759_v56 = vmul.f32 -1.442695, %v1588_v8  ;;  %v1491_v38 = vpop.xlane.xlu1 %1490 }
 0x23e   :  { %v1488_v5 = vpop.xlane.xlu0 %1487  ;;  %v3572_v24 = vpop.eup %3571  ;;  %v2477_v36 = vmul.f32 %v3837_v43, %v3570_v34  ;;  %3597 = vrcp.f32 %v2097_v57  ;;  %v1653_v32 = vadd.f32 %v4299_v25, %v1491_v38 }
 0x23f   :  { %v1652_v39 = vadd.f32 %v4299_v25, %v1488_v5  ;;  %v3574_v48 = vpop.eup %3573  ;;  %v2476_v59 = vmul.f32 %v3838_v15, %v3572_v24  ;;  %3599 = vrcp.f32 %v2096_v3  ;;  %v3846_v5 = vld [vmem:[#allocation3 + $0x150] sm:$0xff] }
 0x240   :  { %v3576_v17 = vpop.eup %3575  ;;  %2605 = vst [vmem:[#allocation6 + $0x138] sm:$0xff] %v2477_v36  ;;  %v2161_v29 = vadd.f32 1.0, %v3574_v48  ;;  %3601 = vpow2.f32 %v2760_v16  ;;  %v2824_v19 = vmul.f32 -1.442695, %v1653_v32  ;;  %v3845_v16 = vld [vmem:[#allocation3 + $0x158] sm:$0xff] }
 0x241   :  { %v3578_v42 = vpop.eup %3577  ;;  %2604 = vst [vmem:[#allocation6 + $0x130] sm:$0xff] %v2476_v59  ;;  %v2160_v13 = vadd.f32 1.0, %v3576_v17  ;;  %3603 = vpow2.f32 %v2759_v56  ;;  %v2823_v44 = vmul.f32 -1.442695, %v1652_v39  ;;  %v1305_v47 = vpop.xlane.xlu1 %1304 }
 0x242   :  { %v1302_v28 = vpop.xlane.xlu0 %1301  ;;  %v3580_v49 = vpop.eup %3579  ;;  %v2541_v53 = vmul.f32 %v3839_v50, %v3578_v42  ;;  %3605 = vrcp.f32 %v2161_v29  ;;  %v1591_v31 = vadd.f32 %v4299_v25, %v1305_v47 }
 0x243   :  { %v1590_v20 = vadd.f32 %v4299_v25, %v1302_v28  ;;  %v3582_v22 = vpop.eup %3581  ;;  %v2540_v51 = vmul.f32 %v3840_v40, %v3580_v49  ;;  %3607 = vrcp.f32 %v2160_v13  ;;  %v3848_v28 = vld [vmem:[#allocation3 + $0x350] sm:$0xff] }
 0x244   :  { %v3584_v45 = vpop.eup %3583  ;;  %2669 = vst [vmem:[#allocation6 + $0x338] sm:$0xff] %v2541_v53  ;;  %v2479_v12 = vmul.f32 %v3841_v62, %v3582_v22  ;;  %3609 = vpow2.f32 %v2824_v19  ;;  %v2762_v41 = vmul.f32 -1.442695, %v1591_v31  ;;  %v3847_v19 = vld [vmem:[#allocation3 + $0x358] sm:$0xff] }
 0x245   :  { %v2761_v55 = vmul.f32 -1.442695, %v1590_v20  ;;  %v3586_v61 = vpop.eup %3585  ;;  %2668 = vst [vmem:[#allocation6 + $0x330] sm:$0xff] %v2540_v51  ;;  %v2478_v60 = vmul.f32 %v3842_v35, %v3584_v45  ;;  %3611 = vpow2.f32 %v2823_v44  ;;  %v1497_v10 = vpop.xlane.xlu1 %1496 }
 0x246   :  { %v1494_v63 = vpop.xlane.xlu0 %1493  ;;  %v3588_v1 = vpop.eup %3587  ;;  %2607 = vst [vmem:[#allocation6 + $0x148] sm:$0xff] %v2479_v12  ;;  %v2099_v54 = vadd.f32 1.0, %v3586_v61  ;;  %3613 = vpow2.f32 %v2762_v41  ;;  %v1655_v14 = vadd.f32 %v4299_v25, %v1497_v10 }
 0x247   :  { %v1654_v23 = vadd.f32 %v4299_v25, %v1494_v63  ;;  %v3590_v37 = vpop.eup %3589  ;;  %2606 = vst [vmem:[#allocation6 + $0x140] sm:$0xff] %v2478_v60  ;;  %v2098_v7 = vadd.f32 1.0, %v3588_v1  ;;  %3615 = vpow2.f32 %v2761_v55  ;;  %v3849_v1 = vld [vmem:[#allocation3 + $0x168] sm:$0xff] }
 0x248   :  { %v3592_v33 = vpop.eup %3591  ;;  %v2543_v4 = vmul.f32 %v3843_v30, %v3590_v37  ;;  %3617 = vrcp.f32 %v2099_v54  ;;  %v2826_v0 = vmul.f32 -1.442695, %v1655_v14 }
 0x249   :  { %v2825_v6 = vmul.f32 -1.442695, %v1654_v23  ;;  %v3594_v58 = vpop.eup %3593  ;;  %v2542_v11 = vmul.f32 %v3844_v21, %v3592_v33  ;;  %3619 = vrcp.f32 %v2098_v7  ;;  %v1311_v2 = vpop.xlane.xlu1 %1310  ;;  %v3850_v7 = vld [vmem:[#allocation3 + $0x160] sm:$0xff] }
 0x24a   :  { %v1308_v27 = vpop.xlane.xlu0 %1307  ;;  %v3596_v46 = vpop.eup %3595  ;;  %2671 = vst [vmem:[#allocation6 + $0x348] sm:$0xff] %v2543_v4  ;;  %v2163_v8 = vadd.f32 1.0, %v3594_v58  ;;  %3621 = vpow2.f32 %v2826_v0  ;;  %v1593_v18 = vadd.f32 %v4299_v25, %v1311_v2 }
 0x24b   :  { %v1592_v26 = vadd.f32 %v4299_v25, %v1308_v27  ;;  %v3598_v52 = vpop.eup %3597  ;;  %2670 = vst [vmem:[#allocation6 + $0x340] sm:$0xff] %v2542_v11  ;;  %v2162_v9 = vadd.f32 1.0, %v3596_v46  ;;  %3623 = vpow2.f32 %v2825_v6  ;;  %v3851_v46 = vld [vmem:[#allocation3 + $0x368] sm:$0xff] }
 0x24c   :  { %v3600_v57 = vpop.eup %3599  ;;  %v2481_v34 = vmul.f32 %v3845_v16, %v3598_v52  ;;  %3625 = vrcp.f32 %v2163_v8  ;;  %v2764_v3 = vmul.f32 -1.442695, %v1593_v18 }
 0x24d   :  { %v2763_v56 = vmul.f32 -1.442695, %v1592_v26  ;;  %v3602_v38 = vpop.eup %3601  ;;  %v2480_v24 = vmul.f32 %v3846_v5, %v3600_v57  ;;  %3627 = vrcp.f32 %v2162_v9  ;;  %v1503_v43 = vpop.xlane.xlu1 %1502  ;;  %v3852_v9 = vld [vmem:[#allocation3 + $0x360] sm:$0xff] }
 0x24e   :  { %v1500_v36 = vpop.xlane.xlu0 %1499  ;;  %v3604_v32 = vpop.eup %3603  ;;  %2609 = vst [vmem:[#allocation6 + $0x158] sm:$0xff] %v2481_v34  ;;  %v2101_v39 = vadd.f32 1.0, %v3602_v38  ;;  %3629 = vpow2.f32 %v2764_v3  ;;  %v1657_v48 = vadd.f32 %v4299_v25, %v1503_v43 }
 0x24f   :  { %v1656_v15 = vadd.f32 %v4299_v25, %v1500_v36  ;;  %v3606_v59 = vpop.eup %3605  ;;  %2608 = vst [vmem:[#allocation6 + $0x150] sm:$0xff] %v2480_v24  ;;  %v2100_v17 = vadd.f32 1.0, %v3604_v32  ;;  %3631 = vpow2.f32 %v2763_v56  ;;  %v3853_v32 = vld [vmem:[#allocation3 + $0x178] sm:$0xff] }
 0x250   :  { %v3608_v29 = vpop.eup %3607  ;;  %v2545_v42 = vmul.f32 %v3847_v19, %v3606_v59  ;;  %3633 = vrcp.f32 %v2101_v39  ;;  %v2828_v13 = vmul.f32 -1.442695, %v1657_v48 }
 0x251   :  { %v2827_v44 = vmul.f32 -1.442695, %v1656_v15  ;;  %v3610_v47 = vpop.eup %3609  ;;  %v2544_v49 = vmul.f32 %v3848_v28, %v3608_v29  ;;  %3635 = vrcp.f32 %v2100_v17  ;;  %v1317_v50 = vpop.xlane.xlu1 %1316  ;;  %v3854_v17 = vld [vmem:[#allocation3 + $0x170] sm:$0xff] }
 0x252   :  { %v1314_v53 = vpop.xlane.xlu0 %1313  ;;  %v3612_v31 = vpop.eup %3611  ;;  %2673 = vst [vmem:[#allocation6 + $0x358] sm:$0xff] %v2545_v42  ;;  %v2165_v20 = vadd.f32 1.0, %v3610_v47  ;;  %3637 = vpow2.f32 %v2828_v13  ;;  %v1595_v22 = vadd.f32 %v4299_v25, %v1317_v50 }
 0x253   :  { %v1594_v40 = vadd.f32 %v4299_v25, %v1314_v53  ;;  %v3614_v51 = vpop.eup %3613  ;;  %2672 = vst [vmem:[#allocation6 + $0x350] sm:$0xff] %v2544_v49  ;;  %v2164_v45 = vadd.f32 1.0, %v3612_v31  ;;  %3639 = vpow2.f32 %v2827_v44  ;;  %v3855_v31 = vld [vmem:[#allocation3 + $0x378] sm:$0xff] }
 0x254   :  { %v3616_v62 = vpop.eup %3615  ;;  %3641 = vrcp.f32 %v2165_v20  ;;  %v2103_v12 = vadd.f32 1.0, %v3614_v51  ;;  %v2766_v41 = vmul.f32 -1.442695, %v1595_v22 }
 0x255   :  { %v3618_v55 = vpop.eup %3617  ;;  %3643 = vrcp.f32 %v2164_v45  ;;  %v2102_v61 = vadd.f32 1.0, %v3616_v62  ;;  %v2765_v35 = vmul.f32 -1.442695, %v1594_v40  ;;  %v1509_v60 = vpop.xlane.xlu1 %1508  ;;  %v3856_v45 = vld [vmem:[#allocation3 + $0x370] sm:$0xff] }
 0x256   :  { %v1506_v10 = vpop.xlane.xlu0 %1505  ;;  %v3620_v63 = vpop.eup %3619  ;;  %v2483_v54 = vmul.f32 %v3849_v1, %v3618_v55  ;;  %3645 = vrcp.f32 %v2103_v12  ;;  %v1659_v14 = vadd.f32 %v4299_v25, %v1509_v60 }
 0x257   :  { %v1658_v23 = vadd.f32 %v4299_v25, %v1506_v10  ;;  %v3622_v37 = vpop.eup %3621  ;;  %v2482_v33 = vmul.f32 %v3850_v7, %v3620_v63  ;;  %3647 = vrcp.f32 %v2102_v61  ;;  %v3858_v10 = vld [vmem:[#allocation3 + $0x180] sm:$0xff] }
 0x258   :  { %v3624_v30 = vpop.eup %3623  ;;  %2611 = vst [vmem:[#allocation6 + $0x168] sm:$0xff] %v2483_v54  ;;  %v2167_v4 = vadd.f32 1.0, %v3622_v37  ;;  %3649 = vpow2.f32 %v2766_v41  ;;  %v2830_v0 = vmul.f32 -1.442695, %v1659_v14  ;;  %v3857_v41 = vld [vmem:[#allocation3 + $0x188] sm:$0xff] }
 0x259   :  { %v3626_v6 = vpop.eup %3625  ;;  %2610 = vst [vmem:[#allocation6 + $0x160] sm:$0xff] %v2482_v33  ;;  %v2166_v58 = vadd.f32 1.0, %v3624_v30  ;;  %3651 = vpow2.f32 %v2765_v35  ;;  %v2829_v21 = vmul.f32 -1.442695, %v1658_v23  ;;  %v1323_v11 = vpop.xlane.xlu1 %1322 }
 0x25a   :  { %v1320_v2 = vpop.xlane.xlu0 %1319  ;;  %v3628_v27 = vpop.eup %3627  ;;  %v2547_v8 = vmul.f32 %v3851_v46, %v3626_v6  ;;  %3653 = vrcp.f32 %v2167_v4  ;;  %v1597_v18 = vadd.f32 %v4299_v25, %v1323_v11 }
 0x25b   :  { %v1596_v26 = vadd.f32 %v4299_v25, %v1320_v2  ;;  %v3630_v52 = vpop.eup %3629  ;;  %v2546_v57 = vmul.f32 %v3852_v9, %v3628_v27  ;;  %3655 = vrcp.f32 %v2166_v58  ;;  %v3860_v2 = vld [vmem:[#allocation3 + $0x380] sm:$0xff] }
 0x25c   :  { %v3632_v16 = vpop.eup %3631  ;;  %2675 = vst [vmem:[#allocation6 + $0x368] sm:$0xff] %v2547_v8  ;;  %v2105_v34 = vadd.f32 1.0, %v3630_v52  ;;  %3657 = vpow2.f32 %v2830_v0  ;;  %v2768_v3 = vmul.f32 -1.442695, %v1597_v18  ;;  %v3859_v0 = vld [vmem:[#allocation3 + $0x388] sm:$0xff] }
 0x25d   :  { %v3634_v56 = vpop.eup %3633  ;;  %2674 = vst [vmem:[#allocation6 + $0x360] sm:$0xff] %v2546_v57  ;;  %v2104_v38 = vadd.f32 1.0, %v3632_v16  ;;  %3659 = vpow2.f32 %v2829_v21  ;;  %v2767_v5 = vmul.f32 -1.442695, %v1596_v26  ;;  %v1515_v24 = vpop.xlane.xlu1 %1514 }
 0x25e   :  { %v1512_v43 = vpop.xlane.xlu0 %1511  ;;  %v3636_v36 = vpop.eup %3635  ;;  %v2485_v39 = vmul.f32 %v3853_v32, %v3634_v56  ;;  %3661 = vrcp.f32 %v2105_v34  ;;  %v1661_v48 = vadd.f32 %v4299_v25, %v1515_v24 }
 0x25f   :  { %v1660_v15 = vadd.f32 %v4299_v25, %v1512_v43  ;;  %v3638_v59 = vpop.eup %3637  ;;  %v2484_v29 = vmul.f32 %v3854_v17, %v3636_v36  ;;  %3663 = vrcp.f32 %v2104_v38  ;;  %v3862_v43 = vld [vmem:[#allocation3 + $0x190] sm:$0xff] }
 0x260   :  { %v3640_v19 = vpop.eup %3639  ;;  %2613 = vst [vmem:[#allocation6 + $0x178] sm:$0xff] %v2485_v39  ;;  %v2169_v42 = vadd.f32 1.0, %v3638_v59  ;;  %3665 = vpow2.f32 %v2768_v3  ;;  %v2832_v13 = vmul.f32 -1.442695, %v1661_v48  ;;  %v3861_v3 = vld [vmem:[#allocation3 + $0x198] sm:$0xff] }
 0x261   :  { %v3642_v44 = vpop.eup %3641  ;;  %2612 = vst [vmem:[#allocation6 + $0x170] sm:$0xff] %v2484_v29  ;;  %v2168_v47 = vadd.f32 1.0, %v3640_v19  ;;  %3667 = vpow2.f32 %v2767_v5  ;;  %v2831_v28 = vmul.f32 -1.442695, %v1660_v15  ;;  %v1329_v49 = vpop.xlane.xlu1 %1328 }
 0x262   :  { %v1326_v50 = vpop.xlane.xlu0 %1325  ;;  %v3644_v53 = vpop.eup %3643  ;;  %v2549_v20 = vmul.f32 %v3855_v31, %v3642_v44  ;;  %3669 = vrcp.f32 %v2169_v42  ;;  %v1599_v22 = vadd.f32 %v4299_v25, %v1329_v49 }
 0x263   :  { %v1598_v40 = vadd.f32 %v4299_v25, %v1326_v50  ;;  %v3646_v51 = vpop.eup %3645  ;;  %v2548_v62 = vmul.f32 %v3856_v45, %v3644_v53  ;;  %3671 = vrcp.f32 %v2168_v47  ;;  %v3864_v50 = vld [vmem:[#allocation3 + $0x390] sm:$0xff] }
 0x264   :  { %v3648_v12 = vpop.eup %3647  ;;  %2677 = vst [vmem:[#allocation6 + $0x378] sm:$0xff] %v2549_v20  ;;  %v2487_v55 = vmul.f32 %v3857_v41, %v3646_v51  ;;  %3673 = vpow2.f32 %v2832_v13  ;;  %v2770_v61 = vmul.f32 -1.442695, %v1599_v22  ;;  %v3863_v13 = vld [vmem:[#allocation3 + $0x398] sm:$0xff] }
 0x265   :  { %v2769_v35 = vmul.f32 -1.442695, %v1598_v40  ;;  %v3650_v60 = vpop.eup %3649  ;;  %2676 = vst [vmem:[#allocation6 + $0x370] sm:$0xff] %v2548_v62  ;;  %v2486_v63 = vmul.f32 %v3858_v10, %v3648_v12  ;;  %3675 = vpow2.f32 %v2831_v28  ;;  %v1521_v1 = vpop.xlane.xlu1 %1520 }
 0x266   :  { %v1518_v54 = vpop.xlane.xlu0 %1517  ;;  %v3652_v14 = vpop.eup %3651  ;;  %2615 = vst [vmem:[#allocation6 + $0x188] sm:$0xff] %v2487_v55  ;;  %v2107_v23 = vadd.f32 1.0, %v3650_v60  ;;  %3677 = vpow2.f32 %v2770_v61  ;;  %v1663_v37 = vadd.f32 %v4299_v25, %v1521_v1 }
 0x267   :  { %v1662_v7 = vadd.f32 %v4299_v25, %v1518_v54  ;;  %v3654_v33 = vpop.eup %3653  ;;  %2614 = vst [vmem:[#allocation6 + $0x180] sm:$0xff] %v2486_v63  ;;  %v2106_v30 = vadd.f32 1.0, %v3652_v14  ;;  %3679 = vpow2.f32 %v2769_v35  ;;  %v3865_v14 = vld [vmem:[#allocation3 + $0x1a8] sm:$0xff] }
 0x268   :  { %v3656_v4 = vpop.eup %3655  ;;  %v2551_v6 = vmul.f32 %v3859_v0, %v3654_v33  ;;  %3681 = vrcp.f32 %v2107_v23  ;;  %v2834_v58 = vmul.f32 -1.442695, %v1663_v37 }
 0x269   :  { %v2833_v21 = vmul.f32 -1.442695, %v1662_v7  ;;  %v3658_v11 = vpop.eup %3657  ;;  %v2550_v27 = vmul.f32 %v3860_v2, %v3656_v4  ;;  %3683 = vrcp.f32 %v2106_v30  ;;  %v1335_v46 = vpop.xlane.xlu1 %1334  ;;  %v3866_v30 = vld [vmem:[#allocation3 + $0x1a0] sm:$0xff] }
 0x26a   :  { %v1332_v8 = vpop.xlane.xlu0 %1331  ;;  %v3660_v18 = vpop.eup %3659  ;;  %2679 = vst [vmem:[#allocation6 + $0x388] sm:$0xff] %v2551_v6  ;;  %v2171_v26 = vadd.f32 1.0, %v3658_v11  ;;  %3685 = vpow2.f32 %v2834_v58  ;;  %v1601_v52 = vadd.f32 %v4299_v25, %v1335_v46 }
 0x26b   :  { %v1600_v9 = vadd.f32 %v4299_v25, %v1332_v8  ;;  %v3662_v57 = vpop.eup %3661  ;;  %2678 = vst [vmem:[#allocation6 + $0x380] sm:$0xff] %v2550_v27  ;;  %v2170_v16 = vadd.f32 1.0, %v3660_v18  ;;  %3687 = vpow2.f32 %v2833_v21  ;;  %v3867_v18 = vld [vmem:[#allocation3 + $0x3a8] sm:$0xff] }
 0x26c   :  { %v3664_v34 = vpop.eup %3663  ;;  %v2489_v56 = vmul.f32 %v3861_v3, %v3662_v57  ;;  %3689 = vrcp.f32 %v2171_v26  ;;  %v2772_v38 = vmul.f32 -1.442695, %v1601_v52 }
 0x26d   :  { %v2771_v5 = vmul.f32 -1.442695, %v1600_v9  ;;  %v3666_v24 = vpop.eup %3665  ;;  %v2488_v36 = vmul.f32 %v3862_v43, %v3664_v34  ;;  %3691 = vrcp.f32 %v2170_v16  ;;  %v1527_v32 = vpop.xlane.xlu1 %1526  ;;  %v3868_v16 = vld [vmem:[#allocation3 + $0x3a0] sm:$0xff] }
 0x26e   :  { %v1524_v39 = vpop.xlane.xlu0 %1523  ;;  %v3668_v48 = vpop.eup %3667  ;;  %2617 = vst [vmem:[#allocation6 + $0x198] sm:$0xff] %v2489_v56  ;;  %v2109_v15 = vadd.f32 1.0, %v3666_v24  ;;  %3693 = vpow2.f32 %v2772_v38  ;;  %v1665_v59 = vadd.f32 %v4299_v25, %v1527_v32 }
 0x26f   :  { %v1664_v17 = vadd.f32 %v4299_v25, %v1524_v39  ;;  %v3670_v29 = vpop.eup %3669  ;;  %2616 = vst [vmem:[#allocation6 + $0x190] sm:$0xff] %v2488_v36  ;;  %v2108_v19 = vadd.f32 1.0, %v3668_v48  ;;  %3695 = vpow2.f32 %v2771_v5  ;;  %v3869_v48 = vld [vmem:[#allocation3 + $0x1b8] sm:$0xff] }
 0x270   :  { %v3672_v42 = vpop.eup %3671  ;;  %v2553_v44 = vmul.f32 %v3863_v13, %v3670_v29  ;;  %3697 = vrcp.f32 %v2109_v15  ;;  %v2836_v47 = vmul.f32 -1.442695, %v1665_v59 }
 0x271   :  { %v2835_v28 = vmul.f32 -1.442695, %v1664_v17  ;;  %v3674_v49 = vpop.eup %3673  ;;  %v2552_v53 = vmul.f32 %v3864_v50, %v3672_v42  ;;  %3699 = vrcp.f32 %v2108_v19  ;;  %v1341_v31 = vpop.xlane.xlu1 %1340  ;;  %v3870_v19 = vld [vmem:[#allocation3 + $0x1b0] sm:$0xff] }
 0x272   :  { %v1338_v20 = vpop.xlane.xlu0 %1337  ;;  %v3676_v22 = vpop.eup %3675  ;;  %2681 = vst [vmem:[#allocation6 + $0x398] sm:$0xff] %v2553_v44  ;;  %v2173_v40 = vadd.f32 1.0, %v3674_v49  ;;  %3701 = vpow2.f32 %v2836_v47  ;;  %v1603_v51 = vadd.f32 %v4299_v25, %v1341_v31  ;;  %v3871_v31 = vld [vmem:[#allocation3 + $0x3b8] sm:$0xff] }
 0x273   :  { %v1602_v45 = vadd.f32 %v4299_v25, %v1338_v20  ;;  %v3678_v62 = vpop.eup %3677  ;;  %2680 = vst [vmem:[#allocation6 + $0x390] sm:$0xff] %v2552_v53  ;;  %v2172_v12 = vadd.f32 1.0, %v3676_v22  ;;  %3703 = vpow2.f32 %v2835_v28 }
 0x274   :  { %v3680_v41 = vpop.eup %3679  ;;  %3705 = vrcp.f32 %v2173_v40  ;;  %v2111_v55 = vadd.f32 1.0, %v3678_v62  ;;  %v2774_v61 = vmul.f32 -1.442695, %v1603_v51 }
 0x275   :  { %v3682_v35 = vpop.eup %3681  ;;  %3707 = vrcp.f32 %v2172_v12  ;;  %v2110_v60 = vadd.f32 1.0, %v3680_v41  ;;  %v2773_v10 = vmul.f32 -1.442695, %v1602_v45  ;;  %v1533_v63 = vpop.xlane.xlu1 %1532  ;;  %v3873_v45 = vld [vmem:[#allocation3 + $0x1c8] sm:$0xff]  ;;  %v3874_v41 = vld [vmem:[#allocation3 + $0x1c0] sm:$0xff] }
 0x276   :  { %v1530_v1 = vpop.xlane.xlu0 %1529  ;;  %v3684_v54 = vpop.eup %3683  ;;  %v2491_v23 = vmul.f32 %v3865_v14, %v3682_v35  ;;  %3709 = vrcp.f32 %v2111_v55  ;;  %v1667_v37 = vadd.f32 %v4299_v25, %v1533_v63 }
 0x277   :  { %v1666_v7 = vadd.f32 %v4299_v25, %v1530_v1  ;;  %v3686_v33 = vpop.eup %3685  ;;  %v2490_v4 = vmul.f32 %v3866_v30, %v3684_v54  ;;  %3711 = vrcp.f32 %v2110_v60  ;;  %v3875_v1 = vld [vmem:[#allocation3 + $0x3c8] sm:$0xff] }
 0x278   :  { %v3688_v0 = vpop.eup %3687  ;;  %2619 = vst [vmem:[#allocation6 + $0x1a8] sm:$0xff] %v2491_v23  ;;  %v2175_v6 = vadd.f32 1.0, %v3686_v33  ;;  %3713 = vpow2.f32 %v2774_v61  ;;  %v2838_v58 = vmul.f32 -1.442695, %v1667_v37  ;;  %v3876_v23 = vld [vmem:[#allocation3 + $0x3c0] sm:$0xff] }
 0x279   :  { %v3690_v21 = vpop.eup %3689  ;;  %2618 = vst [vmem:[#allocation6 + $0x1a0] sm:$0xff] %v2490_v4  ;;  %v2174_v11 = vadd.f32 1.0, %v3688_v0  ;;  %3715 = vpow2.f32 %v2773_v10  ;;  %v2837_v2 = vmul.f32 -1.442695, %v1666_v7  ;;  %v1347_v27 = vpop.xlane.xlu1 %1346 }
 0x27a   :  { %v1344_v46 = vpop.xlane.xlu0 %1343  ;;  %v3692_v8 = vpop.eup %3691  ;;  %v2555_v26 = vmul.f32 %v3867_v18, %v3690_v21  ;;  %3717 = vrcp.f32 %v2175_v6  ;;  %v1605_v52 = vadd.f32 %v4299_v25, %v1347_v27  ;;  %v3877_v6 = vld [vmem:[#allocation3 + $0x1d8] sm:$0xff] }
 0x27b   :  { %v1604_v9 = vadd.f32 %v4299_v25, %v1344_v46  ;;  %v3694_v57 = vpop.eup %3693  ;;  %v2554_v34 = vmul.f32 %v3868_v16, %v3692_v8  ;;  %3719 = vrcp.f32 %v2174_v11  ;;  %v3878_v11 = vld [vmem:[#allocation3 + $0x1d0] sm:$0xff] }
 0x27c   :  { %v3696_v3 = vpop.eup %3695  ;;  %2683 = vst [vmem:[#allocation6 + $0x3a8] sm:$0xff] %v2555_v26  ;;  %v2113_v56 = vadd.f32 1.0, %v3694_v57  ;;  %3721 = vpow2.f32 %v2838_v58  ;;  %v2776_v38 = vmul.f32 -1.442695, %v1605_v52  ;;  %v3879_v52 = vld [vmem:[#allocation3 + $0x3d8] sm:$0xff]  ;;  %v3880_v16 = vld [vmem:[#allocation3 + $0x3d0] sm:$0xff] }
 0x27d   :  { %v3698_v5 = vpop.eup %3697  ;;  %2682 = vst [vmem:[#allocation6 + $0x3a0] sm:$0xff] %v2554_v34  ;;  %v2112_v24 = vadd.f32 1.0, %v3696_v3  ;;  %3723 = vpow2.f32 %v2837_v2  ;;  %v2775_v43 = vmul.f32 -1.442695, %v1604_v9  ;;  %v1539_v36 = vpop.xlane.xlu1 %1538 }
 0x27e   :  { %v1536_v32 = vpop.xlane.xlu0 %1535  ;;  %v3700_v39 = vpop.eup %3699  ;;  %v2493_v15 = vmul.f32 %v3869_v48, %v3698_v5  ;;  %3725 = vrcp.f32 %v2113_v56  ;;  %v1669_v59 = vadd.f32 %v4299_v25, %v1539_v36 }
 0x27f   :  { %v1668_v17 = vadd.f32 %v4299_v25, %v1536_v32  ;;  %v3702_v29 = vpop.eup %3701  ;;  %v2492_v42 = vmul.f32 %v3870_v19, %v3700_v39  ;;  %3727 = vrcp.f32 %v2112_v24  ;;  %v3872_v25 = vld [vmem:[#allocation3 + $0x3b0] sm:$0xff]  ;;  %v3882_v32 = vld [vmem:[#allocation3 + $0x1e0] sm:$0xff] }
 0x280   :  { %v3704_v13 = vpop.eup %3703  ;;  %2621 = vst [vmem:[#allocation6 + $0x1b8] sm:$0xff] %v2493_v15  ;;  %v2177_v44 = vadd.f32 1.0, %v3702_v29  ;;  %3729 = vpow2.f32 %v2776_v38  ;;  %v2840_v47 = vmul.f32 -1.442695, %v1669_v59  ;;  %v3883_v59 = vld [vmem:[#allocation3 + $0x3e8] sm:$0xff]  ;;  %v3884_v29 = vld [vmem:[#allocation3 + $0x3e0] sm:$0xff] }
 0x281   :  { %v3706_v28 = vpop.eup %3705  ;;  %2620 = vst [vmem:[#allocation6 + $0x1b0] sm:$0xff] %v2492_v42  ;;  %v2176_v49 = vadd.f32 1.0, %v3704_v13  ;;  %3731 = vpow2.f32 %v2775_v43  ;;  %v2839_v50 = vmul.f32 -1.442695, %v1668_v17  ;;  %v3881_v43 = vld [vmem:[#allocation3 + $0x1e8] sm:$0xff] }
 0x282   :  { %v3708_v53 = vpop.eup %3707  ;;  %v2557_v20 = vmul.f32 %v3871_v31, %v3706_v28  ;;  %3733 = vrcp.f32 %v2177_v44  ;;  %v3885_v44 = vld [vmem:[#allocation3 + $0x1f8] sm:$0xff]  ;;  %v3886_v28 = vld [vmem:[#allocation3 + $0x1f0] sm:$0xff] }
 0x283   :  { %v3710_v22 = vpop.eup %3709  ;;  %v2556_v40 = vmul.f32 %v3872_v25, %v3708_v53  ;;  %3735 = vrcp.f32 %v2176_v49  ;;  %v3887_v31 = vld [vmem:[#allocation3 + $0x3f8] sm:$0xff] }
 0x284   :  { %v3712_v51 = vpop.eup %3711  ;;  %2685 = vst [vmem:[#allocation6 + $0x3b8] sm:$0xff] %v2557_v20  ;;  %v2495_v62 = vmul.f32 %v3873_v45, %v3710_v22  ;;  %3737 = vpow2.f32 %v2840_v47  ;;  %v3888_v22 = vld [vmem:[#allocation3 + $0x3f0] sm:$0xff] }
 0x285   :  { %v3714_v12 = vpop.eup %3713  ;;  %2684 = vst [vmem:[#allocation6 + $0x3b0] sm:$0xff] %v2556_v40  ;;  %v2494_v55 = vmul.f32 %v3874_v41, %v3712_v51  ;;  %3739 = vpow2.f32 %v2839_v50 }
 0x286   :  { %v3716_v61 = vpop.eup %3715  ;;  %2623 = vst [vmem:[#allocation6 + $0x1c8] sm:$0xff] %v2495_v62  ;;  %v2115_v35 = vadd.f32 1.0, %v3714_v12 }
 0x287   :  { %v3718_v60 = vpop.eup %3717  ;;  %2622 = vst [vmem:[#allocation6 + $0x1c0] sm:$0xff] %v2494_v55  ;;  %v2114_v10 = vadd.f32 1.0, %v3716_v61 }
 0x288   :  { %v3720_v63 = vpop.eup %3719  ;;  %v2559_v54 = vmul.f32 %v3875_v1, %v3718_v60  ;;  %3741 = vrcp.f32 %v2115_v35 }
 0x289   :  { %v3722_v14 = vpop.eup %3721  ;;  %v2558_v37 = vmul.f32 %v3876_v23, %v3720_v63  ;;  %3743 = vrcp.f32 %v2114_v10 }
 0x28a   :  { %v3724_v7 = vpop.eup %3723  ;;  %2687 = vst [vmem:[#allocation6 + $0x3c8] sm:$0xff] %v2559_v54  ;;  %v2179_v33 = vadd.f32 1.0, %v3722_v14 }
 0x28b   :  { %v3726_v30 = vpop.eup %3725  ;;  %2686 = vst [vmem:[#allocation6 + $0x3c0] sm:$0xff] %v2558_v37  ;;  %v2178_v4 = vadd.f32 1.0, %v3724_v7 }
 0x28c   :  { %v3728_v0 = vpop.eup %3727  ;;  %v2497_v58 = vmul.f32 %v3877_v6, %v3726_v30  ;;  %3745 = vrcp.f32 %v2179_v33 }
 0x28d   :  { %v3730_v21 = vpop.eup %3729  ;;  %v2496_v2 = vmul.f32 %v3878_v11, %v3728_v0  ;;  %3747 = vrcp.f32 %v2178_v4 }
 0x28e   :  { %v3732_v27 = vpop.eup %3731  ;;  %2625 = vst [vmem:[#allocation6 + $0x1d8] sm:$0xff] %v2497_v58  ;;  %v2117_v46 = vadd.f32 1.0, %v3730_v21 }
 0x28f   :  { %v3734_v8 = vpop.eup %3733  ;;  %2624 = vst [vmem:[#allocation6 + $0x1d0] sm:$0xff] %v2496_v2  ;;  %v2116_v18 = vadd.f32 1.0, %v3732_v27 }
 0x290   :  { %v3736_v26 = vpop.eup %3735  ;;  %v2561_v9 = vmul.f32 %v3879_v52, %v3734_v8  ;;  %3749 = vrcp.f32 %v2117_v46 }
 0x291   :  { %v3738_v57 = vpop.eup %3737  ;;  %v2560_v34 = vmul.f32 %v3880_v16, %v3736_v26  ;;  %3751 = vrcp.f32 %v2116_v18 }
 0x292   :  { %v3740_v3 = vpop.eup %3739  ;;  %2689 = vst [vmem:[#allocation6 + $0x3d8] sm:$0xff] %v2561_v9  ;;  %v2181_v56 = vadd.f32 1.0, %v3738_v57 }
 0x293   :  { %2688 = vst [vmem:[#allocation6 + $0x3d0] sm:$0xff] %v2560_v34  ;;  %v2180_v38 = vadd.f32 1.0, %v3740_v3 }
 0x294   :  { %3753 = vrcp.f32 %v2181_v56 }
 0x295   :  { %v3742_v5 = vpop.eup %3741  ;;  %3755 = vrcp.f32 %v2180_v38 }
 0x296   :  { %v3744_v24 = vpop.eup %3743  ;;  %v2499_v36 = vmul.f32 %v3881_v43, %v3742_v5 }
 0x297   :  { %v2498_v39 = vmul.f32 %v3882_v32, %v3744_v24 }
 0x298   :  { %2627 = vst [vmem:[#allocation6 + $0x1e8] sm:$0xff] %v2499_v36 }
 0x299   :  { %v3746_v48 = vpop.eup %3745  ;;  %2626 = vst [vmem:[#allocation6 + $0x1e0] sm:$0xff] %v2498_v39 }
 0x29a   :  { %v3748_v15 = vpop.eup %3747  ;;  %v2563_v17 = vmul.f32 %v3883_v59, %v3746_v48 }
 0x29b   :  { %v2562_v19 = vmul.f32 %v3884_v29, %v3748_v15 }
 0x29c   :  { %2691 = vst [vmem:[#allocation6 + $0x3e8] sm:$0xff] %v2563_v17 }
 0x29d   :  { %v3750_v42 = vpop.eup %3749  ;;  %2690 = vst [vmem:[#allocation6 + $0x3e0] sm:$0xff] %v2562_v19 }
 0x29e   :  { %v3752_v13 = vpop.eup %3751  ;;  %v2501_v47 = vmul.f32 %v3885_v44, %v3750_v42 }
 0x29f   :  { %v2500_v49 = vmul.f32 %v3886_v28, %v3752_v13 }
 0x2a0   :  { %2629 = vst [vmem:[#allocation6 + $0x1f8] sm:$0xff] %v2501_v47 }
 0x2a1   :  { %v3754_v50 = vpop.eup %3753  ;;  %2628 = vst [vmem:[#allocation6 + $0x1f0] sm:$0xff] %v2500_v49 }
 0x2a2   :  { %v3756_v53 = vpop.eup %3755  ;;  %v2565_v20 = vmul.f32 %v3887_v31, %v3754_v50 }
 0x2a3   :  { %v2564_v25 = vmul.f32 %v3888_v22, %v3756_v53 }
 0x2a4   :  { %2693 = vst [vmem:[#allocation6 + $0x3f8] sm:$0xff] %v2565_v20 }
 0x2a5   :  { %2692 = vst [vmem:[#allocation6 + $0x3f0] sm:$0xff] %v2564_v25 }
 0x2a6   :  { %3920 = shalt.err (!%p3917_p9)
}
 0x2a7   :  { %2705 = dma.vmem_to_hbm [thread:$0]  %s2700_s18, 16384, %s4897_s5, [#allocation5], %s3934_s21, %s3934_s21, %s3935_s22  }
 0x2a8   :  { %3931 = dma.done.wait [#allocation5], 16384  }
 0x2a9   :  { %3932 = vsyncadd [#allocation5], 4294950912 }
 0x2aa   :  { %2709 = vsyncpa [#allocation4], 1 }
 0x2ab   :  { %2710 = vsyncpa [#allocation5], 1 }

</bundles_post_ra>
